<compile_context>
chip_gen: v5e
topology: v5e:2x2
jax: 0.10.0
libtpu: 0.0.40
codegen_flags: <defaults>
</compile_context>

<pallas_src>
import functools

import jax
import jax.numpy as jnp
import numpy as np
from jax.experimental import pallas as pl
from jax.experimental.pallas import tpu as pltpu

LRELU_SLOPE = 0.2
BN_EPS = 1e-5

# Scoped-VMEM cap below v7x's 64 MiB physical budget (v5e/v6e have 128 MiB;
# the tiles below need far less either way).
_CPARAMS_KW = dict(vmem_limit_bytes=48 << 20)


def _round_up(a, b):
    return (a + b - 1) // b * b


def _pick_tm(m):
    """Row tile that divides m exactly when possible (no pad rows / slice copy)."""
    for t in (512, 256, 128, 64):
        if m >= t and m % t == 0:
            return t
    if m <= 1024:
        return _round_up(m, 8)          # single (possibly padded) tile
    return 512                          # pad + mask/slice fallback


# ---------------- Pallas kernels ----------------

def gemm_bias_lrelu_kernel(x_ref, w_ref, b_ref, o_ref):
    """Single-K-block GEMM + bias + LeakyReLU (conv1 as matmul over packed rows)."""
    y = jnp.dot(x_ref[...], w_ref[...], preferred_element_type=jnp.float32)
    y = y + b_ref[...]
    o_ref[...] = jnp.where(y > 0, y, LRELU_SLOPE * y).astype(o_ref.dtype)


def conv2_bnstats_kernel(x_ref, w_ref, b_ref, o_ref, sum_ref, sq_ref, *,
                         m_valid, tm, mask_rows):
    """Single-K-block GEMM + bias with BatchNorm2d statistics fused into the
    epilogue: stores the raw (pre-BN) activation in bf16 plus per-tile channel
    sum / sum-of-squares partials (reduced by a tiny XLA finalize outside)."""
    y = jnp.dot(x_ref[...], w_ref[...], preferred_element_type=jnp.float32)
    y = y + b_ref[...]
    o_ref[...] = y.astype(o_ref.dtype)
    if mask_rows:                                          # only when M was padded
        row = pl.program_id(0) * tm + jax.lax.broadcasted_iota(jnp.int32, y.shape, 0)
        y = jnp.where(row < m_valid, y, 0.0)
    sum_ref[...] = jnp.sum(y, axis=0, keepdims=True).reshape(sum_ref.shape)
    sq_ref[...] = jnp.sum(y * y, axis=0, keepdims=True).reshape(sq_ref.shape)


def fc1_bnapply_kernel(x_ref, scale_ref, shift_ref, w_ref, b_ref, o_ref, acc_ref):
    """fc1 weight-streaming GEMV with BN2-apply + LeakyReLU fused into the
    x-side via per-K scale/shift vectors.
    grid = (N tiles "parallel", K tiles "arbitrary"); f32 VMEM accumulator."""
    k = pl.program_id(1)

    @pl.when(k == 0)
    def _():
        acc_ref[...] = jnp.zeros_like(acc_ref)

    z = x_ref[...].astype(jnp.float32) * scale_ref[...] + shift_ref[...]
    z = jnp.where(z > 0, z, LRELU_SLOPE * z)
    acc_ref[...] += jnp.dot(z.astype(jnp.bfloat16), w_ref[...],
                            preferred_element_type=jnp.float32)

    @pl.when(k == pl.num_programs(1) - 1)
    def _():
        o_ref[...] = acc_ref[...] + b_ref[...]


def fc_tail_kernel(h_ref, g_ref, beta_ref, w2_ref, b2_ref, o_ref, *,
                   n_valid, mask_rows):
    """BatchNorm1d (two-pass variance, masked) -> LeakyReLU -> Linear -> Sigmoid.
    Batch is tiny; everything fits in one VMEM block."""
    h = h_ref[...]
    if mask_rows:
        valid = jax.lax.broadcasted_iota(jnp.int32, h.shape, 0) < n_valid
        hm = jnp.where(valid, h, 0.0)
    else:
        hm = h
    inv_n = 1.0 / float(n_valid)
    mean = jnp.sum(hm, axis=0, keepdims=True) * inv_n
    d = h - mean
    dm = jnp.where(valid, d, 0.0) if mask_rows else d
    var = jnp.sum(dm * dm, axis=0, keepdims=True) * inv_n
    z = d * jax.lax.rsqrt(var + BN_EPS) * g_ref[...] + beta_ref[...]
    z = jnp.where(z > 0, z, LRELU_SLOPE * z)
    logits = jnp.dot(z.astype(jnp.bfloat16), w2_ref[...],
                     preferred_element_type=jnp.float32) + b2_ref[...]
    o_ref[...] = jax.nn.sigmoid(logits)


# ---------------- layout glue (NHWC throughout) ----------------

def im2col_nhwc(x, k, s, p):
    """x: (N, H, W, C) -> patches (N*OH*OW, k*k*C), K ordered (kh, kw, C)."""
    # TODO(synk): gather the 4x4 stride-2 windows in-kernel (strided DMA /
    # Element index_map) instead of materializing the 4x-duplicated patch
    # matrix in HBM; patches stay bf16 meanwhile to halve the cost.
    N, H, W, C = x.shape
    xp = jnp.pad(x, ((0, 0), (p, p), (p, p), (0, 0)))
    OH = (H + 2 * p - k) // s + 1
    OW = (W + 2 * p - k) // s + 1
    cols = []
    for kh in range(k):
        for kw in range(k):
            cols.append(xp[:, kh:kh + s * OH:s, kw:kw + s * OW:s, :])   # (N,OH,OW,C)
    cols = jnp.stack(cols, axis=3)                                      # (N,OH,OW,k*k,C)
    return cols.reshape(N * OH * OW, k * k * C), OH, OW


# ---------------- pallas_call wrappers ----------------

def pallas_conv1_lrelu(x_nhwc, w_hwio, b):
    """Conv2d(Cin,64,4,2,1) + LeakyReLU.  Full-extent K block (no HBM K pad);
    pairs of output rows packed into one 128-lane row via a block-diagonal
    weight so stores are lane-dense."""
    N = x_nhwc.shape[0]
    kh, kw, cin, cout = w_hwio.shape
    K = kh * kw * cin
    patches, OH, OW = im2col_nhwc(x_nhwc.astype(jnp.bfloat16), 4, 2, 1)
    M = patches.shape[0]

    P = 128 // cout if (128 % cout == 0 and M % max(128 // cout, 1) == 0) else 1
    w_flat = w_hwio.reshape(K, cout).astype(jnp.bfloat16)
    if P > 1:
        wp = jnp.zeros((P * K, P * cout), jnp.bfloat16)
        for q in range(P):                       # tiny, static slices
            wp = wp.at[q * K:(q + 1) * K, q * cout:(q + 1) * cout].set(w_flat)
        bp = jnp.tile(b.astype(jnp.float32), P).reshape(1, P * cout)
        x2 = patches.reshape(M // P, P * K)      # free row-major reshape
    else:
        wp, bp, x2 = w_flat, b.astype(jnp.float32).reshape(1, cout), patches

    Mr, Kr = x2.shape
    Nr = wp.shape[1]
    tm = _pick_tm(Mr)
    Mp = _round_up(Mr, tm)
    if Mp != Mr:
        x2 = jnp.pad(x2, ((0, Mp - Mr), (0, 0)))

    out = pl.pallas_call(
        gemm_bias_lrelu_kernel,
        out_shape=jax.ShapeDtypeStruct((Mp, Nr), jnp.bfloat16),
        grid_spec=pltpu.PrefetchScalarGridSpec(
            num_scalar_prefetch=0, grid=(Mp // tm,),
            in_specs=[pl.BlockSpec((tm, Kr), lambda i: (i, 0)),
                      pl.BlockSpec((Kr, Nr), lambda i: (0, 0)),
                      pl.BlockSpec((1, Nr), lambda i: (0, 0))],
            out_specs=pl.BlockSpec((tm, Nr), lambda i: (i, 0)),
        ),
        compiler_params=pltpu.CompilerParams(
            dimension_semantics=("parallel",), **_CPARAMS_KW),
    )(x2, wp, bp)
    if Mp != Mr:
        out = out[:Mr]
    return out.reshape(N, OH, OW, cout)


def pallas_conv2_bnstats(y1_nhwc, w_hwio, b):
    """Conv2d(64,128,4,2,1) with BN2 statistics fused into the GEMM epilogue.
    Returns raw bf16 activation rows (M2, 128) + per-tile channel partials."""
    kh, kw, cin, cout = w_hwio.shape
    K = kh * kw * cin                                   # 1024 -> single K block
    patches, OH, OW = im2col_nhwc(y1_nhwc, 4, 2, 1)     # already bf16
    M = patches.shape[0]
    tm = _pick_tm(M)
    Mp = _round_up(M, tm)
    if Mp != M:
        patches = jnp.pad(patches, ((0, Mp - M), (0, 0)))
    G = Mp // tm

    act, psum, psq = pl.pallas_call(
        functools.partial(conv2_bnstats_kernel, m_valid=M, tm=tm,
                          mask_rows=(Mp != M)),
        out_shape=(jax.ShapeDtypeStruct((Mp, cout), jnp.bfloat16),
                   jax.ShapeDtypeStruct((G, 1, cout), jnp.float32),
                   jax.ShapeDtypeStruct((G, 1, cout), jnp.float32)),
        grid_spec=pltpu.PrefetchScalarGridSpec(
            num_scalar_prefetch=0, grid=(G,),
            in_specs=[pl.BlockSpec((tm, K), lambda i: (i, 0)),
                      pl.BlockSpec((K, cout), lambda i: (0, 0)),
                      pl.BlockSpec((1, cout), lambda i: (0, 0))],
            out_specs=(pl.BlockSpec((tm, cout), lambda i: (i, 0)),
                       pl.BlockSpec((1, 1, cout), lambda i: (i, 0, 0)),
                       pl.BlockSpec((1, 1, cout), lambda i: (i, 0, 0))),
        ),
        compiler_params=pltpu.CompilerParams(
            dimension_semantics=("parallel",), **_CPARAMS_KW),
    )(patches, w_hwio.reshape(K, cout).astype(jnp.bfloat16),
      b.astype(jnp.float32).reshape(1, cout))
    if Mp != M:
        act = act[:M]
    return act, psum, psq, OH, OW, M


def bn2_finalize(psum, psq, m_valid, gamma, beta):
    """Tiny XLA finalize: (G,1,C) partials -> per-channel BN scale/shift."""
    s = jnp.sum(psum, axis=(0, 1))
    q = jnp.sum(psq, axis=(0, 1))
    mean = s / float(m_valid)
    # E[x^2]-E[x]^2 in f32: fine for conv-scale activations (means ~0 here).
    var = q / float(m_valid) - mean * mean
    scale = gamma.astype(jnp.float32) * jax.lax.rsqrt(var + BN_EPS)
    shift = beta.astype(jnp.float32) - mean * scale
    return scale, shift


def pallas_fc1_bnapply(x2d, scale, shift, n_spatial, w1, b1):
    """Linear(K,1024) over BN2-applied + LeakyReLU'd conv2 rows; the BN apply is
    fused into the x-side as K-length (tiled per-channel) scale/shift vectors."""
    B, Kf = x2d.shape
    Np = _round_up(B, 8)
    if Np != B:
        x2d = jnp.pad(x2d, ((0, Np - B), (0, 0)))
    scale_k = jnp.tile(scale, n_spatial).reshape(1, Kf).astype(jnp.float32)
    shift_k = jnp.tile(shift, n_spatial).reshape(1, Kf).astype(jnp.float32)
    Nout = w1.shape[1]
    tn = 512 if (Nout % 512 == 0 and Nout >= 512) else Nout
    tk = next(t for t in (2048, 1024, 512, 256, 128) if Kf % t == 0)
    tk = min(tk, Kf)
    grid = (Nout // tn, Kf // tk)

    out = pl.pallas_call(
        fc1_bnapply_kernel,
        out_shape=jax.ShapeDtypeStruct((Np, Nout), jnp.float32),
        grid_spec=pltpu.PrefetchScalarGridSpec(
            num_scalar_prefetch=0, grid=grid,
            in_specs=[pl.BlockSpec((Np, tk), lambda n, k: (0, k)),
                      pl.BlockSpec((1, tk), lambda n, k: (0, k)),
                      pl.BlockSpec((1, tk), lambda n, k: (0, k)),
                      pl.BlockSpec((tk, tn), lambda n, k: (k, n)),
                      pl.BlockSpec((1, tn), lambda n, k: (0, n))],
            out_specs=pl.BlockSpec((Np, tn), lambda n, k: (0, n)),
            scratch_shapes=[pltpu.VMEM((Np, tn), jnp.float32)],
        ),
        compiler_params=pltpu.CompilerParams(
            dimension_semantics=("parallel", "arbitrary"), **_CPARAMS_KW),
    )(x2d, scale_k, shift_k, w1.astype(jnp.bfloat16),
      b1.astype(jnp.float32).reshape(1, Nout))
    return out            # (Np, Nout) f32; rows >= B are junk, masked downstream


def pallas_fc_tail(h_pad, n_valid, gamma, beta, w2, b2, out_dim):
    Np, H = h_pad.shape
    Nout_p = _round_up(out_dim, 128)                 # lane-dense padded logits
    w2p = jnp.pad(w2.astype(jnp.bfloat16), ((0, 0), (0, Nout_p - out_dim)))
    b2p = jnp.pad(b2.astype(jnp.float32), (0, Nout_p - out_dim)).reshape(1, Nout_p)
    vmem = pl.BlockSpec(memory_space=pltpu.MemorySpace.VMEM)
    out = pl.pallas_call(
        functools.partial(fc_tail_kernel, n_valid=n_valid,
                          mask_rows=(Np != n_valid)),
        out_shape=jax.ShapeDtypeStruct((Np, Nout_p), jnp.float32),
        in_specs=[vmem] * 5,
        out_specs=vmem,
        compiler_params=pltpu.CompilerParams(**_CPARAMS_KW),
    )(h_pad, gamma.reshape(1, H).astype(jnp.float32),
      beta.reshape(1, H).astype(jnp.float32), w2p, b2p)
    return out[:n_valid, :out_dim]


# ---------------- full forward ----------------

def discriminator_forward(x_nchw, pp, out_dim):
    # one-time layout change; NHWC from here on (channels on the 128-lane axis)
    x_nhwc = jnp.transpose(x_nchw, (0, 2, 3, 1))
    y1 = pallas_conv1_lrelu(x_nhwc, pp["conv1_w_hwio"], pp["conv1_b"])
    act2, psum, psq, oh, ow, m2 = pallas_conv2_bnstats(
        y1, pp["conv2_w_hwio"], pp["conv2_b"])
    scale, shift = bn2_finalize(psum, psq, m2, pp["bn2_g"], pp["bn2_b"])
    n = x_nchw.shape[0]
    cout2 = act2.shape[-1]
    x_fc = act2.reshape(n, oh * ow * cout2)          # free NHWC flatten (fc1 rows pre-permuted)
    h_pad = pallas_fc1_bnapply(x_fc, scale, shift, oh * ow,
                               pp["fc1_w_nhwc"], pp["fc1_b"])
    return pallas_fc_tail(h_pad, n, pp["bn1d_g"], pp["bn1d_b"],
                          pp["fc2_w"], pp["fc2_b"], out_dim)


# ---------------- parameters ----------------

def init_params(key, input_dim, output_dim, input_size):
    """PyTorch-layout parameters (conv OIHW, fc1 rows in NCHW-flatten order)."""
    flat = 128 * (input_size // 4) * (input_size // 4)
    ks = jax.random.split(key, 6)
    return {
        "conv1_w": 0.02 * jax.random.normal(ks[0], (64, input_dim, 4, 4), jnp.float32),
        "conv1_b": jnp.zeros((64,), jnp.float32),
        "conv2_w": 0.02 * jax.random.normal(ks[1], (128, 64, 4, 4), jnp.float32),
        "conv2_b": jnp.zeros((128,), jnp.float32),
        "bn2_g": 1.0 + 0.02 * jax.random.normal(ks[2], (128,), jnp.float32),
        "bn2_b": jnp.zeros((128,), jnp.float32),
        # stored transposed vs torch Linear: (in_features, out_features)
        "fc1_w": 0.02 * jax.random.normal(ks[3], (flat, 1024), jnp.float32),
        "fc1_b": jnp.zeros((1024,), jnp.float32),
        "bn1d_g": 1.0 + 0.02 * jax.random.normal(ks[4], (1024,), jnp.float32),
        "bn1d_b": jnp.zeros((1024,), jnp.float32),
        "fc2_w": 0.02 * jax.random.normal(ks[5], (1024, output_dim), jnp.float32),
        "fc2_b": jnp.zeros((output_dim,), jnp.float32),
    }


def prep_params(p, input_size):
    """One-time layout prep: conv weights OIHW -> HWIO, fc1 rows permuted from
    NCHW-flatten to NHWC-flatten order, GEMM weights in bf16."""
    oh = input_size // 4
    c2 = 128
    perm = np.arange(c2 * oh * oh).reshape(c2, oh, oh).transpose(1, 2, 0).reshape(-1)
    return {
        "conv1_w_hwio": jnp.transpose(p["conv1_w"], (2, 3, 1, 0)).astype(jnp.bfloat16),
        "conv1_b": p["conv1_b"],
        "conv2_w_hwio": jnp.transpose(p["conv2_w"], (2, 3, 1, 0)).astype(jnp.bfloat16),
        "conv2_b": p["conv2_b"],
        "bn2_g": p["bn2_g"], "bn2_b": p["bn2_b"],
        "fc1_w_nhwc": p["fc1_w"][perm].astype(jnp.bfloat16),
        "fc1_b": p["fc1_b"],
        "bn1d_g": p["bn1d_g"], "bn1d_b": p["bn1d_b"],
        "fc2_w": p["fc2_w"].astype(jnp.bfloat16),
        "fc2_b": p["fc2_b"],
    }


# ---- pure-JAX reference (mirrors the kernel's bf16 rounding points) ----

def reference_forward(x, p):
    dn = ("NCHW", "OIHW", "NCHW")
    lrelu = lambda t: jnp.where(t > 0, t, LRELU_SLOPE * t)
    y = jax.lax.conv_general_dilated(
        x.astype(jnp.bfloat16), p["conv1_w"].astype(jnp.bfloat16),
        (2, 2), ((1, 1), (1, 1)), dimension_numbers=dn,
        preferred_element_type=jnp.float32)
    y = lrelu(y + p["conv1_b"][None, :, None, None]).astype(jnp.bfloat16)
    y = jax.lax.conv_general_dilated(
        y, p["conv2_w"].astype(jnp.bfloat16), (2, 2), ((1, 1), (1, 1)),
        dimension_numbers=dn, preferred_element_type=jnp.float32)
    y = y + p["conv2_b"][None, :, None, None]
    m = y.mean(axis=(0, 2, 3), keepdims=True)             # stats on f32 (as kernel)
    v = ((y - m) ** 2).mean(axis=(0, 2, 3), keepdims=True)
    yb = y.astype(jnp.bfloat16).astype(jnp.float32)        # kernel stores act in bf16
    z = (yb - m) * jax.lax.rsqrt(v + BN_EPS) * p["bn2_g"][None, :, None, None] \
        + p["bn2_b"][None, :, None, None]
    z = lrelu(z).astype(jnp.bfloat16)
    f = z.reshape(z.shape[0], -1)                          # NCHW flatten (torch .view)
    h = jnp.dot(f, p["fc1_w"].astype(jnp.bfloat16),
                preferred_element_type=jnp.float32) + p["fc1_b"]
    m1 = h.mean(axis=0, keepdims=True)
    v1 = ((h - m1) ** 2).mean(axis=0, keepdims=True)
    h = (h - m1) * jax.lax.rsqrt(v1 + BN_EPS) * p["bn1d_g"] + p["bn1d_b"]
    h = lrelu(h).astype(jnp.bfloat16)
    logits = jnp.dot(h, p["fc2_w"].astype(jnp.bfloat16),
                     preferred_element_type=jnp.float32) + p["fc2_b"]
    return jax.nn.sigmoid(logits)


if __name__ == "__main__":
    # small shapes consistent with the module: input_dim=1, output_dim=1, input_size=16
    input_dim, output_dim, input_size, batch = 1, 1, 16, 2
    key = jax.random.PRNGKey(0)
    kx, kp = jax.random.split(key)
    x = jax.random.normal(kx, (batch, input_dim, input_size, input_size), jnp.float32)
    params = init_params(kp, input_dim, output_dim, input_size)
    pp = prep_params(params, input_size)

    fwd = jax.jit(functools.partial(discriminator_forward, out_dim=output_dim))
    out = jax.block_until_ready(fwd(x, pp))
    assert out.shape == (batch, output_dim), out.shape

    ref = jax.block_until_ready(reference_forward(x, params))
    np.testing.assert_allclose(np.asarray(out), np.asarray(ref), rtol=5e-3, atol=5e-3)

    print("KERNEL_OK")
</pallas_src>

<mosaic_0001>
module attributes {stable_mosaic.version = 11 : i64} {
  func.func @gemm_bias_lrelu_kernel(%arg0: i32, %arg1: memref<64x32xbf16, #tpu.memory_space<vmem>>, %arg2: memref<32x128xbf16, #tpu.memory_space<vmem>>, %arg3: memref<1x128xf32, #tpu.memory_space<vmem>>, %arg4: memref<64x128xbf16, #tpu.memory_space<vmem>>) attributes {dimension_semantics = [#tpu.dimension_semantics<parallel>], iteration_bounds = array<i64: 1>, scalar_prefetch = 0 : i64, scratch_operands = 0 : i64, tpu.core_type = #tpu.core_type<tc>, window_params = [{transform_indices = @transform_0, window_bounds = array<i64: 64, 32>}, {pipeline_mode = #tpu.pipeline_mode<synchronous>, transform_indices = @transform_1, window_bounds = array<i64: 32, 128>}, {pipeline_mode = #tpu.pipeline_mode<synchronous>, transform_indices = @transform_2, window_bounds = array<i64: 1, 128>}, {transform_indices = @transform_3, window_bounds = array<i64: 64, 128>}]} {
    %c0 = arith.constant 0 : index
    %c0_0 = arith.constant 0 : index
    %0 = vector.load %arg1[%c0, %c0_0] : memref<64x32xbf16, #tpu.memory_space<vmem>>, vector<64x32xbf16>
    %c0_1 = arith.constant 0 : index
    %c0_2 = arith.constant 0 : index
    %1 = vector.load %arg2[%c0_1, %c0_2] : memref<32x128xbf16, #tpu.memory_space<vmem>>, vector<32x128xbf16>
    %cst = arith.constant dense<0.000000e+00> : vector<64x128xf32>
    %2 = tpu.matmul %0, %1, %cst {dimension_numbers = #tpu.dot_dimension_numbers<[1], [0], [0], [1], [0, 0, 1, 1], [], []>} : vector<64x32xbf16>, vector<32x128xbf16>, vector<64x128xf32> -> vector<64x128xf32>
    %c0_3 = arith.constant 0 : index
    %c0_4 = arith.constant 0 : index
    %3 = vector.load %arg3[%c0_3, %c0_4] : memref<1x128xf32, #tpu.memory_space<vmem>>, vector<1x128xf32>
    %4 = vector.broadcast %3 : vector<1x128xf32> to vector<64x128xf32>
    %5 = arith.addf %2, %4 : vector<64x128xf32>
    %cst_5 = arith.constant 0.000000e+00 : f32
    %6 = vector.broadcast %cst_5 : f32 to vector<64x128xf32>
    %7 = arith.cmpf ogt, %5, %6 : vector<64x128xf32>
    %cst_6 = arith.constant 2.000000e-01 : f32
    %8 = vector.broadcast %cst_6 : f32 to vector<64x128xf32>
    %9 = arith.mulf %8, %5 : vector<64x128xf32>
    %10 = arith.select %7, %5, %9 : vector<64x128xi1>, vector<64x128xf32>
    %11 = arith.truncf %10 : vector<64x128xf32> to vector<64x128xbf16>
    %c0_7 = arith.constant 0 : index
    %c0_8 = arith.constant 0 : index
    %12 = vector.load %arg4[%c0_7, %c0_8] : memref<64x128xbf16, #tpu.memory_space<vmem>>, vector<64x128xbf16>
    tpu.vector_store %arg4[%c0_7, %c0_8], %11 {strides = array<i32>} : memref<64x128xbf16, #tpu.memory_space<vmem>>, vector<64x128xbf16>,
    return
  }
  func.func @transform_0(%arg0: i32) -> (i32, i32) {
    %c0_i32 = arith.constant 0 : i32
    %c0_i32_0 = arith.constant 0 : i32
    return %arg0, %c0_i32 : i32, i32
  }
  func.func @transform_1(%arg0: i32) -> (i32, i32) {
    %c0_i32 = arith.constant 0 : i32
    %c0_i32_0 = arith.constant 0 : i32
    %c0_i32_1 = arith.constant 0 : i32
    return %c0_i32, %c0_i32_0 : i32, i32
  }
  func.func @transform_2(%arg0: i32) -> (i32, i32) {
    %c0_i32 = arith.constant 0 : i32
    %c0_i32_0 = arith.constant 0 : i32
    %c0_i32_1 = arith.constant 0 : i32
    return %c0_i32, %c0_i32_0 : i32, i32
  }
  func.func @transform_3(%arg0: i32) -> (i32, i32) {
    %c0_i32 = arith.constant 0 : i32
    %c0_i32_0 = arith.constant 0 : i32
    return %arg0, %c0_i32 : i32, i32
  }
}

module attributes {stable_mosaic.version = 11 : i64} {
  func.func @conv2_bnstats_kernel(%arg0: i32, %arg1: memref<32x1024xbf16, #tpu.memory_space<vmem>>, %arg2: memref<1024x128xbf16, #tpu.memory_space<vmem>>, %arg3: memref<1x128xf32, #tpu.memory_space<vmem>>, %arg4: memref<32x128xbf16, #tpu.memory_space<vmem>>, %arg5: memref<1x1x128xf32, #tpu.memory_space<vmem>>, %arg6: memref<1x1x128xf32, #tpu.memory_space<vmem>>) attributes {dimension_semantics = [#tpu.dimension_semantics<parallel>], iteration_bounds = array<i64: 1>, scalar_prefetch = 0 : i64, scratch_operands = 0 : i64, tpu.core_type = #tpu.core_type<tc>, window_params = [{transform_indices = @transform_0, window_bounds = array<i64: 32, 1024>}, {pipeline_mode = #tpu.pipeline_mode<synchronous>, transform_indices = @transform_1, window_bounds = array<i64: 1024, 128>}, {pipeline_mode = #tpu.pipeline_mode<synchronous>, transform_indices = @transform_2, window_bounds = array<i64: 1, 128>}, {transform_indices = @transform_3, window_bounds = array<i64: 32, 128>}, {transform_indices = @transform_4, window_bounds = array<i64: 1, 1, 128>}, {transform_indices = @transform_5, window_bounds = array<i64: 1, 1, 128>}]} {
    %c0 = arith.constant 0 : index
    %c0_0 = arith.constant 0 : index
    %0 = vector.load %arg1[%c0, %c0_0] : memref<32x1024xbf16, #tpu.memory_space<vmem>>, vector<32x1024xbf16>
    %c0_1 = arith.constant 0 : index
    %c0_2 = arith.constant 0 : index
    %1 = vector.load %arg2[%c0_1, %c0_2] : memref<1024x128xbf16, #tpu.memory_space<vmem>>, vector<1024x128xbf16>
    %cst = arith.constant dense<0.000000e+00> : vector<32x128xf32>
    %2 = tpu.matmul %0, %1, %cst {dimension_numbers = #tpu.dot_dimension_numbers<[1], [0], [0], [1], [0, 0, 1, 1], [], []>} : vector<32x1024xbf16>, vector<1024x128xbf16>, vector<32x128xf32> -> vector<32x128xf32>
    %c0_3 = arith.constant 0 : index
    %c0_4 = arith.constant 0 : index
    %3 = vector.load %arg3[%c0_3, %c0_4] : memref<1x128xf32, #tpu.memory_space<vmem>>, vector<1x128xf32>
    %4 = vector.broadcast %3 : vector<1x128xf32> to vector<32x128xf32>
    %5 = arith.addf %2, %4 : vector<32x128xf32>
    %6 = arith.truncf %5 : vector<32x128xf32> to vector<32x128xbf16>
    %c0_5 = arith.constant 0 : index
    %c0_6 = arith.constant 0 : index
    %7 = vector.load %arg4[%c0_5, %c0_6] : memref<32x128xbf16, #tpu.memory_space<vmem>>, vector<32x128xbf16>
    tpu.vector_store %arg4[%c0_5, %c0_6], %6 {strides = array<i32>} : memref<32x128xbf16, #tpu.memory_space<vmem>>, vector<32x128xbf16>,
    %cst_7 = arith.constant dense<0.000000e+00> : vector<128xf32>
    %8 = vector.multi_reduction <add>, %5, %cst_7 [0] : vector<32x128xf32> to vector<128xf32>
    %9 = vector.shape_cast %8 : vector<128xf32> to vector<1x128xf32>
    %10 = vector.shape_cast %9 : vector<1x128xf32> to vector<1x1x128xf32>
    %c0_8 = arith.constant 0 : index
    %c0_9 = arith.constant 0 : index
    %c0_10 = arith.constant 0 : index
    %11 = vector.load %arg5[%c0_8, %c0_9, %c0_10] : memref<1x1x128xf32, #tpu.memory_space<vmem>>, vector<1x1x128xf32>
    tpu.vector_store %arg5[%c0_8, %c0_9, %c0_10], %10 {strides = array<i32>} : memref<1x1x128xf32, #tpu.memory_space<vmem>>, vector<1x1x128xf32>,
    %12 = arith.mulf %5, %5 : vector<32x128xf32>
    %cst_11 = arith.constant dense<0.000000e+00> : vector<128xf32>
    %13 = vector.multi_reduction <add>, %12, %cst_11 [0] : vector<32x128xf32> to vector<128xf32>
    %14 = vector.shape_cast %13 : vector<128xf32> to vector<1x128xf32>
    %15 = vector.shape_cast %14 : vector<1x128xf32> to vector<1x1x128xf32>
    %c0_12 = arith.constant 0 : index
    %c0_13 = arith.constant 0 : index
    %c0_14 = arith.constant 0 : index
    %16 = vector.load %arg6[%c0_12, %c0_13, %c0_14] : memref<1x1x128xf32, #tpu.memory_space<vmem>>, vector<1x1x128xf32>
    tpu.vector_store %arg6[%c0_12, %c0_13, %c0_14], %15 {strides = array<i32>} : memref<1x1x128xf32, #tpu.memory_space<vmem>>, vector<1x1x128xf32>,
    return
  }
  func.func @transform_0(%arg0: i32) -> (i32, i32) {
    %c0_i32 = arith.constant 0 : i32
    %c0_i32_0 = arith.constant 0 : i32
    return %arg0, %c0_i32 : i32, i32
  }
  func.func @transform_1(%arg0: i32) -> (i32, i32) {
    %c0_i32 = arith.constant 0 : i32
    %c0_i32_0 = arith.constant 0 : i32
    %c0_i32_1 = arith.constant 0 : i32
    return %c0_i32, %c0_i32_0 : i32, i32
  }
  func.func @transform_2(%arg0: i32) -> (i32, i32) {
    %c0_i32 = arith.constant 0 : i32
    %c0_i32_0 = arith.constant 0 : i32
    %c0_i32_1 = arith.constant 0 : i32
    return %c0_i32, %c0_i32_0 : i32, i32
  }
  func.func @transform_3(%arg0: i32) -> (i32, i32) {
    %c0_i32 = arith.constant 0 : i32
    %c0_i32_0 = arith.constant 0 : i32
    return %arg0, %c0_i32 : i32, i32
  }
  func.func @transform_4(%arg0: i32) -> (i32, i32, i32) {
    %c0_i32 = arith.constant 0 : i32
    %c0_i32_0 = arith.constant 0 : i32
    %c0_i32_1 = arith.constant 0 : i32
    return %arg0, %c0_i32, %c0_i32_0 : i32, i32, i32
  }
  func.func @transform_5(%arg0: i32) -> (i32, i32, i32) {
    %c0_i32 = arith.constant 0 : i32
    %c0_i32_0 = arith.constant 0 : i32
    %c0_i32_1 = arith.constant 0 : i32
    return %arg0, %c0_i32, %c0_i32_0 : i32, i32, i32
  }
}

module attributes {stable_mosaic.version = 11 : i64} {
  func.func @fc1_bnapply_kernel(%arg0: i32, %arg1: i32, %arg2: memref<8x2048xbf16, #tpu.memory_space<vmem>>, %arg3: memref<1x2048xf32, #tpu.memory_space<vmem>>, %arg4: memref<1x2048xf32, #tpu.memory_space<vmem>>, %arg5: memref<2048x512xbf16, #tpu.memory_space<vmem>>, %arg6: memref<1x512xf32, #tpu.memory_space<vmem>>, %arg7: memref<8x512xf32, #tpu.memory_space<vmem>>, %arg8: memref<8x512xf32, #tpu.memory_space<vmem>>) attributes {dimension_semantics = [#tpu.dimension_semantics<parallel>, #tpu.dimension_semantics<arbitrary>], iteration_bounds = array<i64: 2, 1>, scalar_prefetch = 0 : i64, scratch_operands = 1 : i64, tpu.core_type = #tpu.core_type<tc>, window_params = [{transform_indices = @transform_0, window_bounds = array<i64: 8, 2048>}, {transform_indices = @transform_1, window_bounds = array<i64: 1, 2048>}, {transform_indices = @transform_2, window_bounds = array<i64: 1, 2048>}, {transform_indices = @transform_3, window_bounds = array<i64: 2048, 512>}, {transform_indices = @transform_4, window_bounds = array<i64: 1, 512>}, {transform_indices = @transform_5, window_bounds = array<i64: 8, 512>}]} {
    %c0_i32 = arith.constant 0 : i32
    %0 = arith.cmpi eq, %arg1, %c0_i32 : i32
    %1 = arith.extui %0 : i1 to i32
    %c0_i32_0 = arith.constant 0 : i32
    %2 = arith.cmpi ne, %1, %c0_i32_0 : i32
    scf.if %2 {
      %cst_16 = arith.constant 0.000000e+00 : f32
      %25 = vector.broadcast %cst_16 : f32 to vector<8x512xf32>
      %c0_17 = arith.constant 0 : index
      %c0_18 = arith.constant 0 : index
      %26 = vector.load %arg8[%c0_17, %c0_18] : memref<8x512xf32, #tpu.memory_space<vmem>>, vector<8x512xf32>
      tpu.vector_store %arg8[%c0_17, %c0_18], %25 {strides = array<i32>} : memref<8x512xf32, #tpu.memory_space<vmem>>, vector<8x512xf32>,
    } else {
    }
    %c0 = arith.constant 0 : index
    %c0_1 = arith.constant 0 : index
    %3 = vector.load %arg2[%c0, %c0_1] : memref<8x2048xbf16, #tpu.memory_space<vmem>>, vector<8x2048xbf16>
    %4 = arith.extf %3 : vector<8x2048xbf16> to vector<8x2048xf32>
    %c0_2 = arith.constant 0 : index
    %c0_3 = arith.constant 0 : index
    %5 = vector.load %arg3[%c0_2, %c0_3] : memref<1x2048xf32, #tpu.memory_space<vmem>>, vector<1x2048xf32>
    %6 = vector.broadcast %5 : vector<1x2048xf32> to vector<8x2048xf32>
    %7 = arith.mulf %4, %6 : vector<8x2048xf32>
    %c0_4 = arith.constant 0 : index
    %c0_5 = arith.constant 0 : index
    %8 = vector.load %arg4[%c0_4, %c0_5] : memref<1x2048xf32, #tpu.memory_space<vmem>>, vector<1x2048xf32>
    %9 = vector.broadcast %8 : vector<1x2048xf32> to vector<8x2048xf32>
    %10 = arith.addf %7, %9 : vector<8x2048xf32>
    %cst = arith.constant 0.000000e+00 : f32
    %11 = vector.broadcast %cst : f32 to vector<8x2048xf32>
    %12 = arith.cmpf ogt, %10, %11 : vector<8x2048xf32>
    %cst_6 = arith.constant 2.000000e-01 : f32
    %13 = vector.broadcast %cst_6 : f32 to vector<8x2048xf32>
    %14 = arith.mulf %13, %10 : vector<8x2048xf32>
    %15 = arith.select %12, %10, %14 : vector<8x2048xi1>, vector<8x2048xf32>
    %c0_7 = arith.constant 0 : index
    %c0_8 = arith.constant 0 : index
    %16 = vector.load %arg8[%c0_7, %c0_8] : memref<8x512xf32, #tpu.memory_space<vmem>>, vector<8x512xf32>
    %17 = arith.truncf %15 : vector<8x2048xf32> to vector<8x2048xbf16>
    %c0_9 = arith.constant 0 : index
    %c0_10 = arith.constant 0 : index
    %18 = vector.load %arg5[%c0_9, %c0_10] : memref<2048x512xbf16, #tpu.memory_space<vmem>>, vector<2048x512xbf16>
    %cst_11 = arith.constant dense<0.000000e+00> : vector<8x512xf32>
    %19 = tpu.matmul %17, %18, %cst_11 {dimension_numbers = #tpu.dot_dimension_numbers<[1], [0], [0], [1], [0, 0, 1, 1], [], []>} : vector<8x2048xbf16>, vector<2048x512xbf16>, vector<8x512xf32> -> vector<8x512xf32>
    %20 = arith.addf %16, %19 : vector<8x512xf32>
    %c0_12 = arith.constant 0 : index
    %c0_13 = arith.constant 0 : index
    %21 = vector.load %arg8[%c0_12, %c0_13] : memref<8x512xf32, #tpu.memory_space<vmem>>, vector<8x512xf32>
    tpu.vector_store %arg8[%c0_12, %c0_13], %20 {strides = array<i32>} : memref<8x512xf32, #tpu.memory_space<vmem>>, vector<8x512xf32>,
    %c0_i32_14 = arith.constant 0 : i32
    %22 = arith.cmpi eq, %arg1, %c0_i32_14 : i32
    %23 = arith.extui %22 : i1 to i32
    %c0_i32_15 = arith.constant 0 : i32
    %24 = arith.cmpi ne, %23, %c0_i32_15 : i32
    scf.if %24 {
      %c0_16 = arith.constant 0 : index
      %c0_17 = arith.constant 0 : index
      %25 = vector.load %arg8[%c0_16, %c0_17] : memref<8x512xf32, #tpu.memory_space<vmem>>, vector<8x512xf32>
      %c0_18 = arith.constant 0 : index
      %c0_19 = arith.constant 0 : index
      %26 = vector.load %arg6[%c0_18, %c0_19] : memref<1x512xf32, #tpu.memory_space<vmem>>, vector<1x512xf32>
      %27 = vector.broadcast %26 : vector<1x512xf32> to vector<8x512xf32>
      %28 = arith.addf %25, %27 : vector<8x512xf32>
      %c0_20 = arith.constant 0 : index
      %c0_21 = arith.constant 0 : index
      %29 = vector.load %arg7[%c0_20, %c0_21] : memref<8x512xf32, #tpu.memory_space<vmem>>, vector<8x512xf32>
      tpu.vector_store %arg7[%c0_20, %c0_21], %28 {strides = array<i32>} : memref<8x512xf32, #tpu.memory_space<vmem>>, vector<8x512xf32>,
    } else {
    }
    return
  }
  func.func @transform_0(%arg0: i32, %arg1: i32) -> (i32, i32) {
    %c0_i32 = arith.constant 0 : i32
    %c0_i32_0 = arith.constant 0 : i32
    return %c0_i32, %arg1 : i32, i32
  }
  func.func @transform_1(%arg0: i32, %arg1: i32) -> (i32, i32) {
    %c0_i32 = arith.constant 0 : i32
    %c0_i32_0 = arith.constant 0 : i32
    return %c0_i32, %arg1 : i32, i32
  }
  func.func @transform_2(%arg0: i32, %arg1: i32) -> (i32, i32) {
    %c0_i32 = arith.constant 0 : i32
    %c0_i32_0 = arith.constant 0 : i32
    return %c0_i32, %arg1 : i32, i32
  }
  func.func @transform_3(%arg0: i32, %arg1: i32) -> (i32, i32) {
    %c0_i32 = arith.constant 0 : i32
    return %arg1, %arg0 : i32, i32
  }
  func.func @transform_4(%arg0: i32, %arg1: i32) -> (i32, i32) {
    %c0_i32 = arith.constant 0 : i32
    %c0_i32_0 = arith.constant 0 : i32
    return %c0_i32, %arg0 : i32, i32
  }
  func.func @transform_5(%arg0: i32, %arg1: i32) -> (i32, i32) {
    %c0_i32 = arith.constant 0 : i32
    %c0_i32_0 = arith.constant 0 : i32
    return %c0_i32, %arg0 : i32, i32
  }
}

module attributes {stable_mosaic.version = 11 : i64} {
  func.func @fc_tail_kernel(%arg0: memref<8x1024xf32, #tpu.memory_space<vmem>>, %arg1: memref<1x1024xf32, #tpu.memory_space<vmem>>, %arg2: memref<1x1024xf32, #tpu.memory_space<vmem>>, %arg3: memref<1024x128xbf16, #tpu.memory_space<vmem>>, %arg4: memref<1x128xf32, #tpu.memory_space<vmem>>, %arg5: memref<8x128xf32, #tpu.memory_space<vmem>>) attributes {dimension_semantics = [], scalar_prefetch = 0 : i64, scratch_operands = 0 : i64, tpu.core_type = #tpu.core_type<tc>} {
    %c0 = arith.constant 0 : index
    %c0_0 = arith.constant 0 : index
    %0 = vector.load %arg0[%c0, %c0_0] : memref<8x1024xf32, #tpu.memory_space<vmem>>, vector<8x1024xf32>
    %1 = tpu.iota {dimensions = array<i32: 0>} : vector<8x1024xi32>
    %c2_i32 = arith.constant 2 : i32
    %2 = vector.broadcast %c2_i32 : i32 to vector<8x1024xi32>
    %3 = arith.cmpi slt, %1, %2 : vector<8x1024xi32>
    %cst = arith.constant 0.000000e+00 : f32
    %4 = vector.broadcast %cst : f32 to vector<8x1024xf32>
    %5 = arith.select %3, %0, %4 : vector<8x1024xi1>, vector<8x1024xf32>
    %cst_1 = arith.constant dense<0.000000e+00> : vector<1024xf32>
    %6 = vector.multi_reduction <add>, %5, %cst_1 [0] : vector<8x1024xf32> to vector<1024xf32>
    %7 = vector.shape_cast %6 : vector<1024xf32> to vector<1x1024xf32>
    %cst_2 = arith.constant 5.000000e-01 : f32
    %8 = vector.broadcast %cst_2 : f32 to vector<1x1024xf32>
    %9 = arith.mulf %7, %8 : vector<1x1024xf32>
    %10 = vector.broadcast %9 : vector<1x1024xf32> to vector<8x1024xf32>
    %11 = arith.subf %0, %10 : vector<8x1024xf32>
    %cst_3 = arith.constant 0.000000e+00 : f32
    %12 = vector.broadcast %cst_3 : f32 to vector<8x1024xf32>
    %13 = arith.select %3, %11, %12 : vector<8x1024xi1>, vector<8x1024xf32>
    %14 = arith.mulf %13, %13 : vector<8x1024xf32>
    %cst_4 = arith.constant dense<0.000000e+00> : vector<1024xf32>
    %15 = vector.multi_reduction <add>, %14, %cst_4 [0] : vector<8x1024xf32> to vector<1024xf32>
    %16 = vector.shape_cast %15 : vector<1024xf32> to vector<1x1024xf32>
    %cst_5 = arith.constant 5.000000e-01 : f32
    %17 = vector.broadcast %cst_5 : f32 to vector<1x1024xf32>
    %18 = arith.mulf %16, %17 : vector<1x1024xf32>
    %cst_6 = arith.constant 9.99999974E-6 : f32
    %19 = vector.broadcast %cst_6 : f32 to vector<1x1024xf32>
    %20 = arith.addf %18, %19 : vector<1x1024xf32>
    %21 = math.rsqrt %20 : vector<1x1024xf32>
    %22 = vector.broadcast %21 : vector<1x1024xf32> to vector<8x1024xf32>
    %23 = arith.mulf %11, %22 : vector<8x1024xf32>
    %c0_7 = arith.constant 0 : index
    %c0_8 = arith.constant 0 : index
    %24 = vector.load %arg1[%c0_7, %c0_8] : memref<1x1024xf32, #tpu.memory_space<vmem>>, vector<1x1024xf32>
    %25 = vector.broadcast %24 : vector<1x1024xf32> to vector<8x1024xf32>
    %26 = arith.mulf %23, %25 : vector<8x1024xf32>
    %c0_9 = arith.constant 0 : index
    %c0_10 = arith.constant 0 : index
    %27 = vector.load %arg2[%c0_9, %c0_10] : memref<1x1024xf32, #tpu.memory_space<vmem>>, vector<1x1024xf32>
    %28 = vector.broadcast %27 : vector<1x1024xf32> to vector<8x1024xf32>
    %29 = arith.addf %26, %28 : vector<8x1024xf32>
    %cst_11 = arith.constant 0.000000e+00 : f32
    %30 = vector.broadcast %cst_11 : f32 to vector<8x1024xf32>
    %31 = arith.cmpf ogt, %29, %30 : vector<8x1024xf32>
    %cst_12 = arith.constant 2.000000e-01 : f32
    %32 = vector.broadcast %cst_12 : f32 to vector<8x1024xf32>
    %33 = arith.mulf %32, %29 : vector<8x1024xf32>
    %34 = arith.select %31, %29, %33 : vector<8x1024xi1>, vector<8x1024xf32>
    %35 = arith.truncf %34 : vector<8x1024xf32> to vector<8x1024xbf16>
    %c0_13 = arith.constant 0 : index
    %c0_14 = arith.constant 0 : index
    %36 = vector.load %arg3[%c0_13, %c0_14] : memref<1024x128xbf16, #tpu.memory_space<vmem>>, vector<1024x128xbf16>
    %cst_15 = arith.constant dense<0.000000e+00> : vector<8x128xf32>
    %37 = tpu.matmul %35, %36, %cst_15 {dimension_numbers = #tpu.dot_dimension_numbers<[1], [0], [0], [1], [0, 0, 1, 1], [], []>} : vector<8x1024xbf16>, vector<1024x128xbf16>, vector<8x128xf32> -> vector<8x128xf32>
    %c0_16 = arith.constant 0 : index
    %c0_17 = arith.constant 0 : index
    %38 = vector.load %arg4[%c0_16, %c0_17] : memref<1x128xf32, #tpu.memory_space<vmem>>, vector<1x128xf32>
    %39 = vector.broadcast %38 : vector<1x128xf32> to vector<8x128xf32>
    %40 = arith.addf %37, %39 : vector<8x128xf32>
    %41 = arith.negf %40 : vector<8x128xf32>
    %42 = math.exp %41 : vector<8x128xf32>
    %cst_18 = arith.constant 1.000000e+00 : f32
    %43 = vector.broadcast %cst_18 : f32 to vector<8x128xf32>
    %44 = arith.addf %43, %42 : vector<8x128xf32>
    %45 = arith.divf %43, %44 : vector<8x128xf32>
    %c0_19 = arith.constant 0 : index
    %c0_20 = arith.constant 0 : index
    %46 = vector.load %arg5[%c0_19, %c0_20] : memref<8x128xf32, #tpu.memory_space<vmem>>, vector<8x128xf32>
    tpu.vector_store %arg5[%c0_19, %c0_20], %45 {strides = array<i32>} : memref<8x128xf32, #tpu.memory_space<vmem>>, vector<8x128xf32>,
    return
  }
}

</mosaic_0001>

<bundles_post_ra>
// kernel: tile.18
= control target key start
LH: loop header
LB: loop body
LE: loop exit
PB: predicated region body
PF: predicated region fallthrough
CT: control target
= control target key end

     0   :  { %2 = vsyncpa [#allocation1], 0  ;;  %s48_s8 = smov [#allocation0]   ;;  %s65_s0 = inlined_call_operand.hbm [shape: f32[64], index: 0, kind: input, shape index: {}]   ;;  %s66_s1 = inlined_call_operand.vmem [shape: f32[2,64], index: 1, kind: output, shape index: {}]  }
   0x1   :  { %s8_s0 = sshll.u32 %s65_s0, 4  ;;  %s10_s9 = sshll.u32 %s48_s8, 4  ;;  %s9_s0 = int_to_ptr.hbm [resolvable:$true] %s8_s0  ;;  %s11_s9 = int_to_ptr.vmem [resolvable:$true] %s10_s9 }
   0x2   :  { %13 = dma.hbm_to_vmem [thread:$0]  %s9_s0, 16, %s11_s9, [#allocation1]  }
   0x3   :  { %46 = dma.done.wait [#allocation1], 16  }
   0x4   :  { %47 = vsyncadd [#allocation1], 4294967280  ;;  %v18_v0 = vld [vmem:[#allocation0] ss:$0 sm:$0xff] }
   0x5   :  { %19 = vst [vmem:[%s66_s1] sm:$0x3] %v18_v0 }
   0x6   :  { %20 = vsyncpa [#allocation1], 1 }

// kernel: tile.19
= control target key start
LH: loop header
LB: loop body
LE: loop exit
PB: predicated region body
PF: predicated region fallthrough
CT: control target
= control target key end

     0   :  { %vm7_vm0 = vcmask 523264   ;;  %vm13_vm1 = vcmask 1048064   ;;  %s39_s0 = inlined_call_operand.vmem [shape: f32[2,64], index: 0, kind: input, shape index: {}]   ;;  %s40_s1 = inlined_call_operand.vmem [shape: f32[1,128], index: 1, kind: output, shape index: {}]  }
   0x1   :  { %v4_v0 = vld [vmem:[%s39_s0] sm:$0x3]  ;;  %s22_s0 = smov 64  }
   0x2   :  { %5 = vst [vmem:[#allocation1] sm:$0x3] %v4_v0 }
   0x9   :  { %v10_v1 = vld [vmem:[#allocation1 + $0x1] sm:$0x1]   ;;  %v6_v2 = vld [vmem:[#allocation1] sm:$0x1]  }
   0xa   :  { %11 = vrot.lane.b32.xlu0 %v10_v1, %s22_s0  ;;  %8 = vst.msk [vmem:[#allocation0] sm:$0x1] %vm7_vm0, %v6_v2  }
  0x7c   :  { %v12_v3 = vpop.permute.xlu0 %11  }
  0x7d   :  { %14 = vst.msk [vmem:[#allocation0] sm:$0x1] %vm13_vm1, %v12_v3  }
  0x84   :  { %v17_v4 = vld [vmem:[#allocation0] sm:$0x1] }
  0x85   :  { %20 = vst [vmem:[%s40_s1] sm:$0x1] %v17_v4 }

// kernel: discriminator_forward.4
= control target key start
LH: loop header
LB: loop body
LE: loop exit
PB: predicated region body
PF: predicated region fallthrough
CT: control target
= control target key end

     0   :  { %vm63_vm0 = vcmask 261120   ;;  %s266_s1 = inlined_call_operand.vmem [shape: bf16[32,128], index: 1, kind: input, shape index: {}]   ;;  %s267_s2 = inlined_call_operand.vmem [shape: f32[1,128], index: 2, kind: input, shape index: {}]   ;;  %s268_s0 = inlined_call_operand.vmem [shape: bf16[64,32], index: 0, kind: input, shape index: {}]   ;;  %s269_s3 = inlined_call_operand.vmem [shape: bf16[64,128], index: 3, kind: output, shape index: {}]  }
   0x1   :  { %v182_v0 = vld [vmem:[%s266_s1 + $0x8] sm:$0xff]  ;;  %v181_v1 = vld [vmem:[%s266_s1] sm:$0xff]  ;;  %v179_v4 = vld [vmem:[%s268_s0 + $0x10] sm:$0xff] }
   0x2   :  { %82 = vmatpush.bf16.msra.mxu0 %v182_v0  ;;  %206 = vmatpush.bf16.msra.mxu1 %v182_v0  ;;  %v177_v2 = vld [vmem:[%s268_s0] sm:$0xff]  ;;  %v178_v3 = vld [vmem:[%s268_s0 + $0x8] sm:$0xff]  ;;  %v180_v5 = vld [vmem:[%s268_s0 + $0x18] sm:$0xff] }
   0x3   :  { %207 = vmatpush.bf16.msra.mxu2 %v182_v0  ;;  %208 = vmatpush.bf16.msra.mxu3 %v182_v0  ;;  %v212_v8 = vld [vmem:[%s267_s2] ss:$0 sm:$0xff] }
   0x6   :  { %83 = vmatpush.bf16.msra.mxu0 %v181_v1  ;;  %209 = vmatpush.bf16.msra.mxu1 %v181_v1 }
   0x7   :  { %210 = vmatpush.bf16.msra.mxu2 %v181_v1  ;;  %211 = vmatpush.bf16.msra.mxu3 %v181_v1 }
   0x9   :  { %173 = vmatmul.msk.bf16.vlgmr.msra.gmra.mxu0 %vm63_vm0, %v177_v2  ;;  %174 = vmatmul.msk.bf16.vlgmr.msra.gmra.mxu1 %vm63_vm0, %v178_v3 }
   0xa   :  { %175 = vmatmul.msk.bf16.vlgmr.msra.gmra.mxu2 %vm63_vm0, %v179_v4  ;;  %176 = vmatmul.msk.bf16.vlgmr.msra.gmra.mxu3 %vm63_vm0, %v180_v5 }
  0x86   :  { %v85_v6 = vpop.f32.mrf.mxu0  ;;  %v90_v7 = vpop.f32.mrf.mxu1 }
  0x87   :  { %v86_v9 = vadd.f32 %v212_v8, %v85_v6  ;;  %v91_v10 = vadd.f32 %v212_v8, %v90_v7 }
  0x89   :  { %v113_v15 = vmul.f32 0.2, %v86_v9  ;;  %v115_v16 = vmul.f32 0.2, %v91_v10  ;;  %vm105_vm1 = vcmp.gt.f32.partialorder %v86_v9, 0.0  ;;  %vm107_vm2 = vcmp.gt.f32.partialorder %v91_v10, 0.0 }
  0x8b   :  { %v121_v23 = vsel %vm105_vm1, %v86_v9, %v113_v15  ;;  %v123_v24 = vsel %vm107_vm2, %v91_v10, %v115_v16 }
  0x8d   :  { %v95_v11 = vpop.f32.mrf.mxu2  ;;  %v100_v12 = vpop.f32.mrf.mxu3 }
  0x8e   :  { %v87_v13 = vpop.f32.mrf.mxu0  ;;  %v92_v14 = vpop.f32.mrf.mxu1  ;;  %v96_v21 = vadd.f32 %v212_v8, %v95_v11  ;;  %v101_v22 = vadd.f32 %v212_v8, %v100_v12 }
  0x8f   :  { %v88_v17 = vadd.f32 %v212_v8, %v87_v13  ;;  %v93_v18 = vadd.f32 %v212_v8, %v92_v14 }
  0x90   :  { %v117_v31 = vmul.f32 0.2, %v96_v21  ;;  %v119_v32 = vmul.f32 0.2, %v101_v22  ;;  %vm109_vm5 = vcmp.gt.f32.partialorder %v96_v21, 0.0  ;;  %vm111_vm6 = vcmp.gt.f32.partialorder %v101_v22, 0.0 }
  0x91   :  { %vm106_vm3 = vcmp.gt.f32.partialorder %v88_v17, 0.0  ;;  %v114_v19 = vmul.f32 0.2, %v88_v17  ;;  %vm108_vm4 = vcmp.gt.f32.partialorder %v93_v18, 0.0  ;;  %v116_v20 = vmul.f32 0.2, %v93_v18 }
  0x92   :  { %v125_v37 = vsel %vm109_vm5, %v96_v21, %v117_v31  ;;  %v127_v38 = vsel %vm111_vm6, %v101_v22, %v119_v32 }
  0x93   :  { %v122_v25 = vsel %vm106_vm3, %v88_v17, %v114_v19  ;;  %v124_v26 = vsel %vm108_vm4, %v93_v18, %v116_v20 }
  0x94   :  { %v186_v27 = vpack.c.bf16 %v122_v25, %v121_v23  ;;  %v191_v28 = vpack.c.bf16 %v124_v26, %v123_v24 }
  0x95   :  { %v97_v29 = vpop.f32.mrf.mxu2  ;;  %v102_v30 = vpop.f32.mrf.mxu3 }
  0x96   :  { %187 = vst [vmem:[%s269_s3] sm:$0xff] %v186_v27   ;;  %v98_v33 = vadd.f32 %v212_v8, %v97_v29  ;;  %v103_v34 = vadd.f32 %v212_v8, %v102_v30 }
  0x97   :  { %203 = vst [vmem:[%s269_s3 + $0x8] sm:$0xff] %v191_v28  }
  0x98   :  { %vm110_vm7 = vcmp.gt.f32.partialorder %v98_v33, 0.0  ;;  %v118_v35 = vmul.f32 0.2, %v98_v33  ;;  %vm112_vm8 = vcmp.gt.f32.partialorder %v103_v34, 0.0  ;;  %v120_v36 = vmul.f32 0.2, %v103_v34 }
  0x9a   :  { %v126_v39 = vsel %vm110_vm7, %v98_v33, %v118_v35  ;;  %v128_v40 = vsel %vm112_vm8, %v103_v34, %v120_v36 }
  0x9b   :  { %v196_v41 = vpack.c.bf16 %v126_v39, %v125_v37  ;;  %v201_v42 = vpack.c.bf16 %v128_v40, %v127_v38 }
  0x9d   :  { %204 = vst [vmem:[%s269_s3 + $0x10] sm:$0xff] %v196_v41  }
  0x9e   :  { %205 = vst [vmem:[%s269_s3 + $0x18] sm:$0xff] %v201_v42  }

// kernel: tile.23
= control target key start
LH: loop header
LB: loop body
LE: loop exit
PB: predicated region body
PF: predicated region fallthrough
CT: control target
= control target key end

     0   :  { %s28_s0 = inlined_call_operand.vmem [shape: f32[128], index: 0, kind: input, shape index: {}]   ;;  %s29_s1 = inlined_call_operand.vmem [shape: f32[16,128], index: 1, kind: output, shape index: {}]  }
   0x1   :  { %v4_v0 = vld [vmem:[%s28_s0] ss:$0 sm:$0xff] }
   0x2   :  { %5 = vst [vmem:[%s29_s1] sm:$0xff] %v4_v0 }
   0x3   :  { %8 = vst [vmem:[%s29_s1 + $0x8] sm:$0xff] %v4_v0 }

// kernel: discriminator_forward.5
= control target key start
LH: loop header
LB: loop body
LE: loop exit
PB: predicated region body
PF: predicated region fallthrough
CT: control target
= control target key end

     0   :  { %11 = vsyncpa [#allocation3], 0  ;;  %s1473_s0 = inlined_call_operand.vmem [shape: bf16[32,1024], index: 0, kind: input, shape index: {}]   ;;  %s1474_s1 = inlined_call_operand.hbm [shape: bf16[1024,128], index: 1, kind: input, shape index: {}]   ;;  %s1475_s2 = inlined_call_operand.hbm [shape: f32[1,128], index: 2, kind: input, shape index: {}]   ;;  %s1476_s3 = inlined_call_operand.vmem [shape: bf16[32,128], index: 3, kind: output, shape index: {0}]   ;;  %s1477_s4 = inlined_call_operand.vmem [shape: f32[1,1,128], index: 4, kind: output, shape index: {1}]   ;;  %s1478_s5 = inlined_call_operand.vmem [shape: f32[1,1,128], index: 5, kind: output, shape index: {2}]  }
   0x1   :  { %s19_s20 = sshll.u32 %s1474_s1, 4  ;;  %s20_s20 = int_to_ptr.hbm [resolvable:$true] %s19_s20 }
   0x2   :  { %12 = vsyncpa [#allocation5], 0  ;;  %s1325_s21 = smov [#allocation2]   ;;  %s33_s25 = sshll.u32 %s1475_s2, 4  ;;  %s34_s25 = int_to_ptr.hbm [resolvable:$true] %s33_s25 }
   0x3   :  { %s21_s22 = sshll.u32 %s1325_s21, 4  ;;  %s1326_s26 = smov 64   ;;  %s22_s22 = int_to_ptr.vmem [resolvable:$true] %s21_s22 }
   0x4   :  { %s1327_s27 = smov 4   ;;  %s1328_s28 = smov [#allocation4]  }
   0x5   :  { %27 = dma.hbm_to_vmem [thread:$0]  %s20_s20, 8192, %s22_s22, [#allocation3], %s1326_s26, %s1326_s26, %s1327_s27  }
   0x6   :  { %s35_s29 = sshll.u32 %s1328_s28, 4  ;;  %s36_s29 = int_to_ptr.vmem [resolvable:$true] %s35_s29 }
   0x7   :  { %38 = dma.hbm_to_vmem [thread:$0]  %s34_s25, 16, %s36_s29, [#allocation5]  }
   0x8   :  { %1321 = dma.done.wait [#allocation3], 8192  }
   0x9   :  { %1322 = vsyncadd [#allocation3], 4294959104 }
   0xa   :  { %1323 = dma.done.wait [#allocation5], 16  }
   0xb   :  { %1324 = vsyncadd [#allocation5], 4294967280  ;;  %v1200_v0 = vld [vmem:[#allocation2 + $0x38] sm:$0xff]  ;;  %v1199_v4 = vld [vmem:[#allocation2 + $0x30] sm:$0xff] }
   0xc   :  { %v1208_v1 = vld [vmem:[#allocation2 + $0x78] sm:$0xff]  ;;  %659 = vmatpush.bf16.msra.mxu0 %v1200_v0  ;;  %v1207_v5 = vld [vmem:[#allocation2 + $0x70] sm:$0xff]  ;;  %v1198_v8 = vld [vmem:[#allocation2 + $0x28] sm:$0xff] }
   0xd   :  { %v1216_v2 = vld [vmem:[#allocation2 + $0xb8] sm:$0xff]  ;;  %678 = vmatpush.bf16.msra.mxu1 %v1208_v1  ;;  %v1215_v6 = vld [vmem:[#allocation2 + $0xb0] sm:$0xff]  ;;  %v1206_v9 = vld [vmem:[#allocation2 + $0x68] sm:$0xff] }
   0xe   :  { %v1224_v3 = vld [vmem:[#allocation2 + $0xf8] sm:$0xff]  ;;  %697 = vmatpush.bf16.msra.mxu2 %v1216_v2  ;;  %v1223_v7 = vld [vmem:[#allocation2 + $0xf0] sm:$0xff]  ;;  %v1214_v10 = vld [vmem:[#allocation2 + $0xa8] sm:$0xff] }
   0xf   :  { %716 = vmatpush.bf16.msra.mxu3 %v1224_v3  ;;  %v1222_v11 = vld [vmem:[#allocation2 + $0xe8] sm:$0xff]  ;;  %v1197_v12 = vld [vmem:[#allocation2 + $0x20] sm:$0xff]  ;;  %v1196_v16 = vld [vmem:[#allocation2 + $0x18] sm:$0xff] }
  0x10   :  { %660 = vmatpush.bf16.msra.mxu0 %v1199_v4  ;;  %v1205_v13 = vld [vmem:[#allocation2 + $0x60] sm:$0xff]  ;;  %v1204_v17 = vld [vmem:[#allocation2 + $0x58] sm:$0xff]  ;;  %v1195_v20 = vld [vmem:[#allocation2 + $0x10] sm:$0xff] }
  0x11   :  { %679 = vmatpush.bf16.msra.mxu1 %v1207_v5  ;;  %v1213_v14 = vld [vmem:[#allocation2 + $0xa0] sm:$0xff]  ;;  %v1212_v18 = vld [vmem:[#allocation2 + $0x98] sm:$0xff]  ;;  %v1203_v21 = vld [vmem:[#allocation2 + $0x50] sm:$0xff] }
  0x12   :  { %698 = vmatpush.bf16.msra.mxu2 %v1215_v6  ;;  %v1221_v15 = vld [vmem:[#allocation2 + $0xe0] sm:$0xff]  ;;  %v1220_v19 = vld [vmem:[#allocation2 + $0xd8] sm:$0xff]  ;;  %v1211_v22 = vld [vmem:[#allocation2 + $0x90] sm:$0xff] }
  0x13   :  { %717 = vmatpush.bf16.msra.mxu3 %v1223_v7  ;;  %v1219_v23 = vld [vmem:[#allocation2 + $0xd0] sm:$0xff]  ;;  %v1194_v24 = vld [vmem:[#allocation2 + $0x8] sm:$0xff]  ;;  %v1193_v28 = vld [vmem:[#allocation2] sm:$0xff] }
  0x14   :  { %661 = vmatpush.bf16.msra.mxu0 %v1198_v8  ;;  %v1202_v25 = vld [vmem:[#allocation2 + $0x48] sm:$0xff]  ;;  %v1201_v29 = vld [vmem:[#allocation2 + $0x40] sm:$0xff]  ;;  %v1248_v40 = vld [vmem:[#allocation2 + $0x1b8] sm:$0xff] }
  0x15   :  { %680 = vmatpush.bf16.msra.mxu1 %v1206_v9  ;;  %v1210_v26 = vld [vmem:[#allocation2 + $0x88] sm:$0xff]  ;;  %v1209_v30 = vld [vmem:[#allocation2 + $0x80] sm:$0xff]  ;;  %v1232_v41 = vld [vmem:[#allocation2 + $0x138] sm:$0xff] }
  0x16   :  { %699 = vmatpush.bf16.msra.mxu2 %v1214_v10  ;;  %v1218_v27 = vld [vmem:[#allocation2 + $0xc8] sm:$0xff]  ;;  %v1217_v31 = vld [vmem:[#allocation2 + $0xc0] sm:$0xff]  ;;  %v1240_v46 = vld [vmem:[#allocation2 + $0x178] sm:$0xff] }
  0x17   :  { %718 = vmatpush.bf16.msra.mxu3 %v1222_v11  ;;  %v859_v32 = vld [vmem:[%s1473_s0] sm:$0xf]  ;;  %v1177_v34 = vld [vmem:[%s1473_s0 + $0x4] sm:$0xf]  ;;  %v867_v36 = vld [vmem:[%s1473_s0 + $0x8] sm:$0xf] }
  0x18   :  { %662 = vmatpush.bf16.msra.mxu0 %v1197_v12  ;;  %v1181_v33 = vld [vmem:[%s1473_s0 + $0x1c] sm:$0xf0]  ;;  %v861_v35 = vld [vmem:[%s1473_s0 + $0x20] sm:$0xf0]  ;;  %v1182_v37 = vld [vmem:[%s1473_s0 + $0x24] sm:$0xf0] }
  0x19   :  { %681 = vmatpush.bf16.msra.mxu1 %v1205_v13  ;;  %v1178_v38 = vld [vmem:[%s1473_s0 + $0xc] sm:$0xf]  ;;  %v860_v42 = vor.u32 %v1181_v33, %v859_v32  ;;  %v864_v43 = vor.u32 %v1177_v34, %v861_v35  ;;  %v868_v44 = vor.u32 %v1182_v37, %v867_v36  ;;  %v1256_v47 = vld [vmem:[#allocation2 + $0x1f8] sm:$0xff]  ;;  %v1247_v48 = vld [vmem:[#allocation2 + $0x1b0] sm:$0xff] }
  0x1a   :  { %700 = vmatpush.bf16.msra.mxu2 %v1213_v14  ;;  %v869_v39 = vld [vmem:[%s1473_s0 + $0x28] sm:$0xf0]  ;;  %v1231_v49 = vld [vmem:[#allocation2 + $0x130] sm:$0xff]  ;;  %v1245_v56 = vld [vmem:[#allocation2 + $0x1a0] sm:$0xff] }
  0x1b   :  { %719 = vmatpush.bf16.msra.mxu3 %v1221_v15  ;;  %v872_v45 = vor.u32 %v1178_v38, %v869_v39  ;;  %v1239_v50 = vld [vmem:[#allocation2 + $0x170] sm:$0xff]  ;;  %v1246_v52 = vld [vmem:[#allocation2 + $0x1a8] sm:$0xff]  ;;  %v1229_v57 = vld [vmem:[#allocation2 + $0x120] sm:$0xff] }
  0x1c   :  { %663 = vmatpush.bf16.msra.mxu0 %v1196_v16  ;;  %v1255_v51 = vld [vmem:[#allocation2 + $0x1f0] sm:$0xff]  ;;  %v1230_v53 = vld [vmem:[#allocation2 + $0x128] sm:$0xff]  ;;  %v1237_v58 = vld [vmem:[#allocation2 + $0x160] sm:$0xff] }
  0x1d   :  { %682 = vmatpush.bf16.msra.mxu1 %v1204_v17  ;;  %v1238_v54 = vld [vmem:[#allocation2 + $0x168] sm:$0xff]  ;;  %v1253_v59 = vld [vmem:[#allocation2 + $0x1e0] sm:$0xff]  ;;  %v1244_v4 = vld [vmem:[#allocation2 + $0x198] sm:$0xff] }
  0x1e   :  { %701 = vmatpush.bf16.msra.mxu2 %v1212_v18  ;;  %v1254_v55 = vld [vmem:[#allocation2 + $0x1e8] sm:$0xff]  ;;  %v891_v60 = vld [vmem:[%s1473_s0 + $0x40] sm:$0xf]  ;;  %v1185_v62 = vld [vmem:[%s1473_s0 + $0x44] sm:$0xf] }
  0x1f   :  { %720 = vmatpush.bf16.msra.mxu3 %v1220_v19  ;;  %v1189_v61 = vld [vmem:[%s1473_s0 + $0x5c] sm:$0xf0]  ;;  %v893_v63 = vld [vmem:[%s1473_s0 + $0x60] sm:$0xf0]  ;;  %v899_v0 = vld [vmem:[%s1473_s0 + $0x48] sm:$0xf] }
  0x20   :  { %664 = vmatpush.bf16.msra.mxu0 %v1195_v20  ;;  %v1190_v1 = vld [vmem:[%s1473_s0 + $0x64] sm:$0xf0]  ;;  %v1186_v2 = vld [vmem:[%s1473_s0 + $0x4c] sm:$0xf]  ;;  %v1228_v5 = vld [vmem:[#allocation2 + $0x118] sm:$0xff]  ;;  %v892_v6 = vor.u32 %v1189_v61, %v891_v60  ;;  %v896_v7 = vor.u32 %v1185_v62, %v893_v63 }
  0x21   :  { %683 = vmatpush.bf16.msra.mxu1 %v1203_v21  ;;  %v901_v3 = vld [vmem:[%s1473_s0 + $0x68] sm:$0xf0]  ;;  %v900_v8 = vor.u32 %v1190_v1, %v899_v0  ;;  %v1236_v10 = vld [vmem:[#allocation2 + $0x158] sm:$0xff]  ;;  %v1243_v12 = vld [vmem:[#allocation2 + $0x190] sm:$0xff] }
  0x22   :  { %702 = vmatpush.bf16.msra.mxu2 %v1211_v22  ;;  %v904_v9 = vor.u32 %v1186_v2, %v901_v3  ;;  %v1252_v11 = vld [vmem:[#allocation2 + $0x1d8] sm:$0xff]  ;;  %v1227_v13 = vld [vmem:[#allocation2 + $0x110] sm:$0xff]  ;;  %v1242_v16 = vld [vmem:[#allocation2 + $0x188] sm:$0xff] }
  0x23   :  { %721 = vmatpush.bf16.msra.mxu3 %v1219_v23  ;;  %v1235_v14 = vld [vmem:[#allocation2 + $0x150] sm:$0xff]  ;;  %v1226_v17 = vld [vmem:[#allocation2 + $0x108] sm:$0xff]  ;;  %v1241_v20 = vld [vmem:[#allocation2 + $0x180] sm:$0xff] }
  0x24   :  { %665 = vmatpush.bf16.msra.mxu0 %v1194_v24  ;;  %v1251_v15 = vld [vmem:[#allocation2 + $0x1d0] sm:$0xff]  ;;  %v1234_v18 = vld [vmem:[#allocation2 + $0x148] sm:$0xff]  ;;  %v1225_v21 = vld [vmem:[#allocation2 + $0x100] sm:$0xff] }
  0x25   :  { %684 = vmatpush.bf16.msra.mxu1 %v1202_v25  ;;  %v1250_v19 = vld [vmem:[#allocation2 + $0x1c8] sm:$0xff]  ;;  %v1233_v22 = vld [vmem:[#allocation2 + $0x140] sm:$0xff]  ;;  %v875_v24 = vld [vmem:[%s1473_s0 + $0x10] sm:$0xf] }
  0x26   :  { %703 = vmatpush.bf16.msra.mxu2 %v1210_v26  ;;  %v1249_v23 = vld [vmem:[#allocation2 + $0x1c0] sm:$0xff]  ;;  %v1183_v25 = vld [vmem:[%s1473_s0 + $0x2c] sm:$0xf0]  ;;  %v1179_v26 = vld [vmem:[%s1473_s0 + $0x14] sm:$0xf] }
  0x27   :  { %722 = vmatpush.bf16.msra.mxu3 %v1218_v27  ;;  %v877_v27 = vld [vmem:[%s1473_s0 + $0x30] sm:$0xf0]  ;;  %v876_v32 = vor.u32 %v1183_v25, %v875_v24  ;;  %v907_v36 = vld [vmem:[%s1473_s0 + $0x50] sm:$0xf] }
  0x28   :  { %666 = vmatpush.bf16.msra.mxu0 %v1193_v28  ;;  %v883_v28 = vld [vmem:[%s1473_s0 + $0x18] sm:$0xf]  ;;  %v880_v33 = vor.u32 %v1179_v26, %v877_v27  ;;  %v1191_v37 = vld [vmem:[%s1473_s0 + $0x6c] sm:$0xf0]  ;;  %v1187_v38 = vld [vmem:[%s1473_s0 + $0x54] sm:$0xf] }
  0x29   :  { %685 = vmatpush.bf16.msra.mxu1 %v1201_v29  ;;  %v1184_v29 = vld [vmem:[%s1473_s0 + $0x34] sm:$0xf0]  ;;  %v909_v39 = vld [vmem:[%s1473_s0 + $0x70] sm:$0xf0] }
  0x2a   :  { %704 = vmatpush.bf16.msra.mxu2 %v1209_v30  ;;  %v1180_v30 = vld [vmem:[%s1473_s0 + $0x1c] sm:$0xf]  ;;  %v884_v34 = vor.u32 %v1184_v29, %v883_v28 }
  0x2b   :  { %723 = vmatpush.bf16.msra.mxu3 %v1217_v31  ;;  %667 = vmatmul.bf16.vlgmr.msra.gmra.mxu0 %v860_v42  ;;  %v885_v31 = vld [vmem:[%s1473_s0 + $0x38] sm:$0xf0] }
  0x2c   :  { %735 = vmatpush.bf16.msrb.mxu0 %v1232_v41  ;;  %686 = vmatmul.bf16.vlgmr.msra.gmra.mxu1 %v864_v43  ;;  %v888_v35 = vor.u32 %v1180_v30, %v885_v31  ;;  %v1192_v41 = vld [vmem:[%s1473_s0 + $0x74] sm:$0xf0]  ;;  %v1188_v42 = vld [vmem:[%s1473_s0 + $0x5c] sm:$0xf] }
  0x2d   :  { %705 = vmatmul.bf16.vlgmr.msra.gmra.mxu2 %v868_v44  ;;  %754 = vmatpush.bf16.msrb.mxu1 %v1240_v46  ;;  %v917_v43 = vld [vmem:[%s1473_s0 + $0x78] sm:$0xf0]  ;;  %v908_v44 = vor.u32 %v1191_v37, %v907_v36 }
  0x2e   :  { %773 = vmatpush.bf16.msrb.mxu2 %v1248_v40  ;;  %724 = vmatmul.bf16.vlgmr.msra.gmra.mxu3 %v872_v45  ;;  %v915_v40 = vld [vmem:[%s1473_s0 + $0x58] sm:$0xf]  ;;  %v912_v45 = vor.u32 %v1187_v38, %v909_v39 }
  0x2f   :  { %792 = vmatpush.bf16.msrb.mxu3 %v1256_v47  ;;  %v916_v46 = vor.u32 %v1192_v41, %v915_v40  ;;  %v920_v47 = vor.u32 %v1188_v42, %v917_v43 }
  0x30   :  { %736 = vmatpush.bf16.msrb.mxu0 %v1231_v49 }
  0x31   :  { %755 = vmatpush.bf16.msrb.mxu1 %v1239_v50 }
  0x32   :  { %774 = vmatpush.bf16.msrb.mxu2 %v1247_v48 }
  0x33   :  { %793 = vmatpush.bf16.msrb.mxu3 %v1255_v51 }
  0x34   :  { %737 = vmatpush.bf16.msrb.mxu0 %v1230_v53 }
  0x35   :  { %756 = vmatpush.bf16.msrb.mxu1 %v1238_v54 }
  0x36   :  { %775 = vmatpush.bf16.msrb.mxu2 %v1246_v52 }
  0x37   :  { %794 = vmatpush.bf16.msrb.mxu3 %v1254_v55 }
  0x38   :  { %738 = vmatpush.bf16.msrb.mxu0 %v1229_v57 }
  0x39   :  { %757 = vmatpush.bf16.msrb.mxu1 %v1237_v58  ;;  %v1272_v58 = vld [vmem:[#allocation4] ss:$0 sm:$0xff] }
  0x3a   :  { %776 = vmatpush.bf16.msrb.mxu2 %v1245_v56 }
  0x3b   :  { %795 = vmatpush.bf16.msrb.mxu3 %v1253_v59  ;;  %672 = vmatmul.bf16.gmra.mxu0 %v892_v6 }
  0x3c   :  { %739 = vmatpush.bf16.msrb.mxu0 %v1228_v5  ;;  %691 = vmatmul.bf16.gmra.mxu1 %v896_v7 }
  0x3d   :  { %710 = vmatmul.bf16.gmra.mxu2 %v900_v8  ;;  %758 = vmatpush.bf16.msrb.mxu1 %v1236_v10 }
  0x3e   :  { %777 = vmatpush.bf16.msrb.mxu2 %v1244_v4  ;;  %729 = vmatmul.bf16.gmra.mxu3 %v904_v9 }
  0x3f   :  { %796 = vmatpush.bf16.msrb.mxu3 %v1252_v11 }
  0x40   :  { %740 = vmatpush.bf16.msrb.mxu0 %v1227_v13 }
  0x41   :  { %759 = vmatpush.bf16.msrb.mxu1 %v1235_v14 }
  0x42   :  { %778 = vmatpush.bf16.msrb.mxu2 %v1243_v12 }
  0x43   :  { %797 = vmatpush.bf16.msrb.mxu3 %v1251_v15 }
  0x44   :  { %741 = vmatpush.bf16.msrb.mxu0 %v1226_v17 }
  0x45   :  { %760 = vmatpush.bf16.msrb.mxu1 %v1234_v18 }
  0x46   :  { %779 = vmatpush.bf16.msrb.mxu2 %v1242_v16 }
  0x47   :  { %798 = vmatpush.bf16.msrb.mxu3 %v1250_v19 }
  0x48   :  { %742 = vmatpush.bf16.msrb.mxu0 %v1225_v21 }
  0x49   :  { %761 = vmatpush.bf16.msrb.mxu1 %v1233_v22 }
  0x4a   :  { %780 = vmatpush.bf16.msrb.mxu2 %v1241_v20 }
  0x4b   :  { %799 = vmatpush.bf16.msrb.mxu3 %v1249_v23  ;;  %743 = vmatmul.bf16.vlgmr.msrb.gmra.mxu0 %v876_v32 }
  0x4c   :  { %762 = vmatmul.bf16.vlgmr.msrb.gmra.mxu1 %v880_v33 }
  0x4d   :  { %781 = vmatmul.bf16.vlgmr.msrb.gmra.mxu2 %v884_v34 }
  0x4e   :  { %800 = vmatmul.bf16.vlgmr.msrb.gmra.mxu3 %v888_v35 }
  0x5b   :  { %748 = vmatmul.bf16.gmra.mxu0 %v908_v44 }
  0x5c   :  { %767 = vmatmul.bf16.gmra.mxu1 %v912_v45 }
  0x5d   :  { %786 = vmatmul.bf16.gmra.mxu2 %v916_v46 }
  0x5e   :  { %805 = vmatmul.bf16.gmra.mxu3 %v920_v47 }
  0xa8   :  { %v668_v48 = vpop.f32.mrf.mxu0 }
  0xa9   :  { %v687_v49 = vpop.f32.mrf.mxu1  ;;  %v669_v63 = vadd.f32 %v1272_v58, %v668_v48 }
  0xab   :  { %v688_v0 = vadd.f32 %v687_v49, %v669_v63 }
  0xb0   :  { %v706_v50 = vpop.f32.mrf.mxu2  ;;  %v670_v52 = vpop.f32.mrf.mxu0 }
  0xb1   :  { %v725_v51 = vpop.f32.mrf.mxu3  ;;  %v689_v53 = vpop.f32.mrf.mxu1  ;;  %v671_v1 = vadd.f32 %v1272_v58, %v670_v52  ;;  %v707_v6 = vadd.f32 %v706_v50, %v688_v0 }
  0xb3   :  { %v690_v7 = vadd.f32 %v689_v53, %v671_v1  ;;  %v726_v10 = vadd.f32 %v725_v51, %v707_v6 }
  0xb8   :  { %v708_v54 = vpop.f32.mrf.mxu2  ;;  %v673_v56 = vpop.f32.mrf.mxu0 }
  0xb9   :  { %v727_v55 = vpop.f32.mrf.mxu3  ;;  %v692_v57 = vpop.f32.mrf.mxu1  ;;  %v709_v8 = vadd.f32 %v708_v54, %v690_v7  ;;  %v674_v9 = vadd.f32 %v1272_v58, %v673_v56 }
  0xbb   :  { %v728_v12 = vadd.f32 %v727_v55, %v709_v8  ;;  %v693_v13 = vadd.f32 %v692_v57, %v674_v9 }
  0xc0   :  { %v711_v59 = vpop.f32.mrf.mxu2  ;;  %v675_v61 = vpop.f32.mrf.mxu0 }
  0xc1   :  { %v730_v60 = vpop.f32.mrf.mxu3  ;;  %v694_v62 = vpop.f32.mrf.mxu1  ;;  %v712_v19 = vadd.f32 %v711_v59, %v693_v13  ;;  %v676_v21 = vadd.f32 %v1272_v58, %v675_v61 }
  0xc3   :  { %v731_v25 = vadd.f32 %v730_v60, %v712_v19  ;;  %v695_v29 = vadd.f32 %v694_v62, %v676_v21 }
  0xc8   :  { %v713_v2 = vpop.f32.mrf.mxu2  ;;  %v744_v4 = vpop.f32.mrf.mxu0 }
  0xc9   :  { %v732_v3 = vpop.f32.mrf.mxu3  ;;  %v763_v5 = vpop.f32.mrf.mxu1  ;;  %v745_v14 = vadd.f32 %v744_v4, %v726_v10  ;;  %v714_v34 = vadd.f32 %v713_v2, %v695_v29 }
  0xcb   :  { %v764_v20 = vadd.f32 %v763_v5, %v745_v14  ;;  %v733_v38 = vadd.f32 %v732_v3, %v714_v34 }
  0xd0   :  { %v782_v11 = vpop.f32.mrf.mxu2  ;;  %v746_v16 = vpop.f32.mrf.mxu0 }
  0xd1   :  { %v801_v15 = vpop.f32.mrf.mxu3  ;;  %v765_v17 = vpop.f32.mrf.mxu1  ;;  %v747_v18 = vadd.f32 %v746_v16, %v728_v12  ;;  %v783_v22 = vadd.f32 %v782_v11, %v764_v20 }
  0xd3   :  { %v766_v23 = vadd.f32 %v765_v17, %v747_v18  ;;  %v802_v30 = vadd.f32 %v801_v15, %v783_v22 }
  0xd5   :  { %v829_v48 = vmul.f32 %v802_v30, %v802_v30 }
  0xd8   :  { %v784_v24 = vpop.f32.mrf.mxu2  ;;  %v749_v28 = vpop.f32.mrf.mxu0 }
  0xd9   :  { %v785_v26 = vadd.f32 %v784_v24, %v766_v23  ;;  %v803_v27 = vpop.f32.mrf.mxu3  ;;  %v750_v32 = vadd.f32 %v749_v28, %v731_v25  ;;  %v768_v33 = vpop.f32.mrf.mxu1 }
  0xdb   :  { %v804_v31 = vadd.f32 %v803_v27, %v785_v26  ;;  %v769_v36 = vadd.f32 %v768_v33, %v750_v32 }
  0xdd   :  { %v1260_v35 = vpack.c.bf16 %v804_v31, %v802_v30  ;;  %v830_v45 = vmul.f32 %v804_v31, %v804_v31  ;;  %v819_v49 = vadd.f32 %v804_v31, %v802_v30 }
  0xdf   :  { %1261 = vst [vmem:[%s1476_s3] sm:$0xff] %v1260_v35   ;;  %v833_v53 = vadd.f32 %v830_v45, %v829_v48 }
  0xe0   :  { %v787_v37 = vpop.f32.mrf.mxu2  ;;  %v751_v41 = vpop.f32.mrf.mxu0 }
  0xe1   :  { %v788_v39 = vadd.f32 %v787_v37, %v769_v36  ;;  %v806_v40 = vpop.f32.mrf.mxu3  ;;  %v752_v42 = vadd.f32 %v751_v41, %v733_v38  ;;  %v770_v44 = vpop.f32.mrf.mxu1 }
  0xe3   :  { %v807_v43 = vadd.f32 %v806_v40, %v788_v39  ;;  %v771_v46 = vadd.f32 %v770_v44, %v752_v42 }
  0xe5   :  { %v831_v50 = vmul.f32 %v807_v43, %v807_v43  ;;  %v820_v54 = vadd.f32 %v819_v49, %v807_v43 }
  0xe7   :  { %v834_v56 = vadd.f32 %v833_v53, %v831_v50 }
  0xe8   :  { %v789_v47 = vpop.f32.mrf.mxu2 }
  0xe9   :  { %v790_v51 = vadd.f32 %v789_v47, %v771_v46  ;;  %v808_v52 = vpop.f32.mrf.mxu3 }
  0xeb   :  { %v809_v55 = vadd.f32 %v808_v52, %v790_v51 }
  0xed   :  { %v1265_v57 = vpack.c.bf16 %v809_v55, %v807_v43  ;;  %v821_v58 = vadd.f32 %v820_v54, %v809_v55  ;;  %v832_v59 = vmul.f32 %v809_v55, %v809_v55 }
  0xef   :  { %1267 = vst [vmem:[%s1476_s3 + $0x8] sm:$0xff] %v1265_v57   ;;  %v822_v60 = vrot.slane %v821_v58, 4  ;;  %v835_v61 = vadd.f32 %v834_v56, %v832_v59 }
  0xf1   :  { %v823_v62 = vadd.f32 %v822_v60, %v821_v58  ;;  %v836_v63 = vrot.slane %v835_v61, 4 }
  0xf3   :  { %v824_v0 = vrot.slane %v823_v62, 2  ;;  %v837_v1 = vadd.f32 %v836_v63, %v835_v61 }
  0xf5   :  { %v825_v2 = vadd.f32 %v824_v0, %v823_v62  ;;  %v838_v3 = vrot.slane %v837_v1, 2 }
  0xf7   :  { %v826_v4 = vrot.slane %v825_v2, 1  ;;  %v839_v5 = vadd.f32 %v838_v3, %v837_v1 }
  0xf9   :  { %v827_v6 = vadd.f32 %v826_v4, %v825_v2  ;;  %v840_v7 = vrot.slane %v839_v5, 1 }
  0xfb   :  { %828 = vst [vmem:[%s1477_s4] sm:$0x1] %v827_v6  ;;  %v841_v8 = vadd.f32 %v840_v7, %v839_v5 }
  0xfd   :  { %842 = vst [vmem:[%s1478_s5] sm:$0x1] %v841_v8 }
  0xfe   :  { %855 = vsyncpa [#allocation3], 1 }
  0xff   :  { %856 = vsyncpa [#allocation5], 1 }

// kernel: discriminator_forward.7
= control target key start
LH: loop header
LB: loop body
LE: loop exit
PB: predicated region body
PF: predicated region fallthrough
CT: control target
= control target key end

     0   :  { %10 = vsyncpa [#allocation3], 0  ;;  %s1961_s0 = inlined_call_operand.vmem [shape: f32[8,1024], index: 0, kind: input, shape index: {}]   ;;  %s1962_s1 = inlined_call_operand.hbm [shape: f32[1,1024], index: 1, kind: input, shape index: {}]   ;;  %s1963_s2 = inlined_call_operand.hbm [shape: f32[1,1024], index: 2, kind: input, shape index: {}]   ;;  %s1964_s3 = inlined_call_operand.vmem [shape: bf16[1024,128], index: 3, kind: input, shape index: {}]   ;;  %s1965_s4 = inlined_call_operand.vmem [shape: f32[1,128], index: 4, kind: input, shape index: {}]   ;;  %s1966_s5 = inlined_call_operand.vmem [shape: f32[8,128], index: 5, kind: output, shape index: {}]  }
   0x1   :  { %s19_s20 = sshll.u32 %s1962_s1, 4  ;;  %s20_s20 = int_to_ptr.hbm [resolvable:$true] %s19_s20 }
   0x2   :  { %11 = vsyncpa [#allocation5], 0  ;;  %s1425_s21 = smov [#allocation2]   ;;  %s30_s25 = sshll.u32 %s1963_s2, 4  ;;  %s31_s25 = int_to_ptr.hbm [resolvable:$true] %s30_s25 }
   0x3   :  { %s21_s22 = sshll.u32 %s1425_s21, 4  ;;  %s1426_s26 = smov [#allocation4]   ;;  %s22_s22 = int_to_ptr.vmem [resolvable:$true] %s21_s22 }
   0x4   :  { %24 = dma.hbm_to_vmem [thread:$0]  %s20_s20, 128, %s22_s22, [#allocation3]  }
   0x5   :  { %s32_s27 = sshll.u32 %s1426_s26, 4  ;;  %s33_s27 = int_to_ptr.vmem [resolvable:$true] %s32_s27 }
   0x6   :  { %35 = dma.hbm_to_vmem [thread:$0]  %s31_s25, 128, %s33_s27, [#allocation5]  }
   0x7   :  { %1421 = dma.done.wait [#allocation3], 128  }
   0x8   :  { %1422 = vsyncadd [#allocation3], 4294967168 }
   0x9   :  { %1423 = dma.done.wait [#allocation5], 128  }
   0xa   :  { %1424 = vsyncadd [#allocation5], 4294967168  ;;  %v1293_v0 = vld [vmem:[%s1964_s3 + $0x38] sm:$0xff]  ;;  %v1292_v4 = vld [vmem:[%s1964_s3 + $0x30] sm:$0xff]  ;;  %v56_v10 = vlaneseq }
   0xb   :  { %v1301_v1 = vld [vmem:[%s1964_s3 + $0x78] sm:$0xff]  ;;  %899 = vmatpush.bf16.msra.mxu0 %v1293_v0  ;;  %v1300_v5 = vld [vmem:[%s1964_s3 + $0x70] sm:$0xff]  ;;  %v1291_v8 = vld [vmem:[%s1964_s3 + $0x28] sm:$0xff] }
   0xc   :  { %v1309_v2 = vld [vmem:[%s1964_s3 + $0xb8] sm:$0xff]  ;;  %912 = vmatpush.bf16.msra.mxu1 %v1301_v1  ;;  %v1308_v6 = vld [vmem:[%s1964_s3 + $0xb0] sm:$0xff]  ;;  %v1299_v9 = vld [vmem:[%s1964_s3 + $0x68] sm:$0xff]  ;;  %v1505_v15 = vshrl.u32 %v56_v10, 7 }
   0xd   :  { %v1317_v3 = vld [vmem:[%s1964_s3 + $0xf8] sm:$0xff]  ;;  %925 = vmatpush.bf16.msra.mxu2 %v1309_v2  ;;  %v1316_v7 = vld [vmem:[%s1964_s3 + $0xf0] sm:$0xff]  ;;  %v1307_v11 = vld [vmem:[%s1964_s3 + $0xa8] sm:$0xff] }
   0xe   :  { %938 = vmatpush.bf16.msra.mxu3 %v1317_v3  ;;  %v1315_v12 = vld [vmem:[%s1964_s3 + $0xe8] sm:$0xff]  ;;  %v1290_v13 = vld [vmem:[%s1964_s3 + $0x20] sm:$0xff]  ;;  %v1289_v18 = vld [vmem:[%s1964_s3 + $0x18] sm:$0xff]  ;;  %vm58_vm0 = vcmp.lt.s32.totalorder %v1505_v15, 2 }
   0xf   :  { %900 = vmatpush.bf16.msra.mxu0 %v1292_v4  ;;  %v1298_v14 = vld [vmem:[%s1964_s3 + $0x60] sm:$0xff]  ;;  %v1297_v19 = vld [vmem:[%s1964_s3 + $0x58] sm:$0xff]  ;;  %v1288_v22 = vld [vmem:[%s1964_s3 + $0x10] sm:$0xff] }
  0x10   :  { %913 = vmatpush.bf16.msra.mxu1 %v1300_v5  ;;  %v1306_v16 = vld [vmem:[%s1964_s3 + $0xa0] sm:$0xff]  ;;  %v1305_v20 = vld [vmem:[%s1964_s3 + $0x98] sm:$0xff]  ;;  %v1296_v23 = vld [vmem:[%s1964_s3 + $0x50] sm:$0xff] }
  0x11   :  { %926 = vmatpush.bf16.msra.mxu2 %v1308_v6  ;;  %v1314_v17 = vld [vmem:[%s1964_s3 + $0xe0] sm:$0xff]  ;;  %v1313_v21 = vld [vmem:[%s1964_s3 + $0xd8] sm:$0xff]  ;;  %v1540_v25 = vld [vmem:[%s1961_s0 + $0x8] sm:$0xff] }
  0x12   :  { %939 = vmatpush.bf16.msra.mxu3 %v1316_v7  ;;  %v1535_v24 = vld [vmem:[%s1961_s0] sm:$0xff]  ;;  %v1545_v26 = vld [vmem:[%s1961_s0 + $0x10] sm:$0xff]  ;;  %v60_v30 = vsel %vm58_vm0, %v1540_v25, 0.0  ;;  %v1565_v32 = vld [vmem:[%s1961_s0 + $0x18] sm:$0xff] }
  0x13   :  { %901 = vmatpush.bf16.msra.mxu0 %v1291_v8  ;;  %v1304_v27 = vld [vmem:[%s1964_s3 + $0x90] sm:$0xff]  ;;  %v59_v29 = vsel %vm58_vm0, %v1535_v24, 0.0  ;;  %v61_v31 = vsel %vm58_vm0, %v1545_v26, 0.0  ;;  %v1570_v33 = vld [vmem:[%s1961_s0 + $0x20] sm:$0xff]  ;;  %v1575_v34 = vld [vmem:[%s1961_s0 + $0x28] sm:$0xff]  ;;  %v73_v36 = vrot.slane %v60_v30, 4 }
  0x14   :  { %914 = vmatpush.bf16.msra.mxu1 %v1299_v9  ;;  %v1312_v28 = vld [vmem:[%s1964_s3 + $0xd0] sm:$0xff]  ;;  %v67_v35 = vrot.slane %v59_v29, 4  ;;  %v79_v37 = vrot.slane %v61_v31, 4  ;;  %v62_v38 = vsel %vm58_vm0, %v1565_v32, 0.0  ;;  %v1588_v40 = vld [vmem:[%s1961_s0 + $0x38] sm:$0xff]  ;;  %v63_v42 = vsel %vm58_vm0, %v1570_v33, 0.0 }
  0x15   :  { %927 = vmatpush.bf16.msra.mxu2 %v1307_v11  ;;  %v1583_v39 = vld [vmem:[%s1961_s0 + $0x30] sm:$0xff]  ;;  %v85_v41 = vrot.slane %v62_v38, 4  ;;  %v64_v43 = vsel %vm58_vm0, %v1575_v34, 0.0  ;;  %v74_v46 = vadd.f32 %v73_v36, %v60_v30  ;;  %v91_v48 = vrot.slane %v63_v42, 4  ;;  %v1287_v53 = vld [vmem:[%s1964_s3 + $0x8] sm:$0xff]  ;;  %v1286_v9 = vld [vmem:[%s1964_s3] sm:$0xff] }
  0x16   :  { %940 = vmatpush.bf16.msra.mxu3 %v1315_v12  ;;  %v65_v44 = vsel %vm58_vm0, %v1583_v39, 0.0  ;;  %v68_v45 = vadd.f32 %v67_v35, %v59_v29  ;;  %v80_v47 = vadd.f32 %v79_v37, %v61_v31  ;;  %v97_v50 = vrot.slane %v64_v43, 4  ;;  %v1295_v54 = vld [vmem:[%s1964_s3 + $0x48] sm:$0xff]  ;;  %v1294_v10 = vld [vmem:[%s1964_s3 + $0x40] sm:$0xff]  ;;  %v1341_v31 = vld [vmem:[%s1964_s3 + $0x1b8] sm:$0xff] }
  0x17   :  { %902 = vmatpush.bf16.msra.mxu0 %v1290_v13  ;;  %v86_v49 = vadd.f32 %v85_v41, %v62_v38  ;;  %v103_v51 = vrot.slane %v65_v44, 4  ;;  %v66_v52 = vsel %vm58_vm0, %v1588_v40, 0.0  ;;  %v75_v56 = vrot.slane %v74_v46, 2  ;;  %v1303_v59 = vld [vmem:[%s1964_s3 + $0x88] sm:$0xff]  ;;  %v1349_v35 = vld [vmem:[%s1964_s3 + $0x1f8] sm:$0xff] }
  0x18   :  { %915 = vmatpush.bf16.msra.mxu1 %v1298_v14  ;;  %v69_v55 = vrot.slane %v68_v45, 2  ;;  %v81_v57 = vrot.slane %v80_v47, 2  ;;  %v92_v58 = vadd.f32 %v91_v48, %v63_v42  ;;  %v1311_v60 = vld [vmem:[%s1964_s3 + $0xc8] sm:$0xff]  ;;  %v98_v62 = vadd.f32 %v97_v50, %v64_v43  ;;  %v1332_v50 = vld [vmem:[%s1964_s3 + $0x170] sm:$0xff]  ;;  %v1321_v15 = vld [vmem:[%s1964_s3 + $0x118] sm:$0xff] }
  0x19   :  { %928 = vmatpush.bf16.msra.mxu2 %v1306_v16  ;;  %v87_v61 = vrot.slane %v86_v49, 2  ;;  %v104_v63 = vadd.f32 %v103_v51, %v65_v44  ;;  %v109_v0 = vrot.slane %v66_v52, 4  ;;  %v76_v2 = vadd.f32 %v75_v56, %v74_v46  ;;  %v1302_v16 = vld [vmem:[%s1964_s3 + $0x80] sm:$0xff]  ;;  %v1348_v56 = vld [vmem:[%s1964_s3 + $0x1f0] sm:$0xff] }
  0x1a   :  { %941 = vmatpush.bf16.msra.mxu3 %v1314_v17  ;;  %v70_v1 = vadd.f32 %v69_v55, %v68_v45  ;;  %v82_v3 = vadd.f32 %v81_v57, %v80_v47  ;;  %v93_v4 = vrot.slane %v92_v58, 2  ;;  %v99_v6 = vrot.slane %v98_v62, 2  ;;  %v1310_v17 = vld [vmem:[%s1964_s3 + $0xc0] sm:$0xff]  ;;  %v1340_v55 = vld [vmem:[%s1964_s3 + $0x1b0] sm:$0xff] }
  0x1b   :  { %903 = vmatpush.bf16.msra.mxu0 %v1289_v18  ;;  %v88_v5 = vadd.f32 %v87_v61, %v86_v49  ;;  %v105_v7 = vrot.slane %v104_v63, 2  ;;  %v110_v8 = vadd.f32 %v109_v0, %v66_v52  ;;  %v77_v12 = vrot.slane %v76_v2, 1  ;;  %v1324_v49 = vld [vmem:[%s1964_s3 + $0x130] sm:$0xff] }
  0x1c   :  { %916 = vmatpush.bf16.msra.mxu1 %v1297_v19  ;;  %v71_v11 = vrot.slane %v70_v1, 1  ;;  %v83_v13 = vrot.slane %v82_v3, 1  ;;  %v94_v14 = vadd.f32 %v93_v4, %v92_v58  ;;  %v100_v19 = vadd.f32 %v99_v6, %v98_v62  ;;  %v1347_v6 = vld [vmem:[%s1964_s3 + $0x1e8] sm:$0xff] }
  0x1d   :  { %929 = vmatpush.bf16.msra.mxu2 %v1305_v20  ;;  %v89_v18 = vrot.slane %v88_v5, 1  ;;  %v106_v20 = vadd.f32 %v105_v7, %v104_v63 }
  0x1e   :  { %942 = vmatpush.bf16.msra.mxu3 %v1313_v21  ;;  %v111_v21 = vrot.slane %v110_v8, 2  ;;  %v84_v29 = vadd.f32 %v83_v13, %v82_v3  ;;  %v95_v30 = vrot.slane %v94_v14, 1  ;;  %v101_v37 = vrot.slane %v100_v19, 1 }
  0x1f   :  { %904 = vmatpush.bf16.msra.mxu0 %v1288_v22  ;;  %v1325_v22 = vld [vmem:[%s1964_s3 + $0x138] sm:$0xff]  ;;  %v90_v36 = vadd.f32 %v89_v18, %v88_v5  ;;  %v107_v38 = vrot.slane %v106_v20, 1  ;;  %v1339_v5 = vld [vmem:[%s1964_s3 + $0x1a8] sm:$0xff]  ;;  %v1322_v18 = vld [vmem:[%s1964_s3 + $0x120] sm:$0xff] }
  0x20   :  { %917 = vmatpush.bf16.msra.mxu1 %v1296_v23  ;;  %v1333_v23 = vld [vmem:[%s1964_s3 + $0x178] sm:$0xff]  ;;  %v112_v41 = vadd.f32 %v111_v21, %v110_v8  ;;  %v117_v44 = vmul.f32 0.5, %v84_v29  ;;  %v96_v45 = vadd.f32 %v95_v30, %v94_v14  ;;  %v102_v47 = vadd.f32 %v101_v37, %v100_v19  ;;  %v1330_v19 = vld [vmem:[%s1964_s3 + $0x160] sm:$0xff] }
  0x21   :  { %930 = vmatpush.bf16.msra.mxu2 %v1304_v27  ;;  %v72_v27 = vadd.f32 %v71_v11, %v70_v1  ;;  %v118_v46 = vmul.f32 0.5, %v90_v36  ;;  %v108_v48 = vadd.f32 %v107_v38, %v106_v20  ;;  %v1323_v1 = vld [vmem:[%s1964_s3 + $0x128] sm:$0xff] }
  0x22   :  { %943 = vmatpush.bf16.msra.mxu3 %v1312_v28  ;;  %v78_v28 = vadd.f32 %v77_v12, %v76_v2  ;;  %v120_v57 = vmul.f32 0.5, %v102_v47  ;;  %v113_v58 = vrot.slane %v112_v41, 1  ;;  %v1331_v2 = vld [vmem:[%s1964_s3 + $0x168] sm:$0xff] }
  0x23   :  { %905 = vmatpush.bf16.msra.mxu0 %v1287_v53  ;;  %v115_v42 = vmul.f32 0.5, %v72_v27  ;;  %v1651_v53 = vsub.f32 %v1545_v26, %v117_v44 }
  0x24   :  { %918 = vmatpush.bf16.msra.mxu1 %v1295_v54  ;;  %v116_v43 = vmul.f32 0.5, %v78_v28  ;;  %v119_v54 = vmul.f32 0.5, %v96_v45  ;;  %v1687_v4 = vsub.f32 %v1575_v34, %v120_v57  ;;  %v114_v13 = vadd.f32 %v113_v58, %v112_v41 }
  0x25   :  { %931 = vmatpush.bf16.msra.mxu2 %v1303_v59  ;;  %v1645_v51 = vsub.f32 %v1535_v24, %v115_v42  ;;  %v1660_v24 = vsub.f32 %v1565_v32, %v118_v46 }
  0x26   :  { %944 = vmatpush.bf16.msra.mxu3 %v1311_v60  ;;  %v1648_v52 = vsub.f32 %v1540_v25, %v116_v43  ;;  %v121_v25 = vmul.f32 0.5, %v108_v48  ;;  %v133_v60 = vsel %vm58_vm0, %v1651_v53, 0.0  ;;  %v1672_v61 = vsub.f32 %v1570_v33, %v119_v54 }
  0x27   :  { %906 = vmatpush.bf16.msra.mxu0 %v1286_v9  ;;  %v131_v26 = vsel %vm58_vm0, %v1645_v51, 0.0  ;;  %v141_v63 = vmul.f32 %v133_v60, %v133_v60  ;;  %v134_v0 = vsel %vm58_vm0, %v1660_v24, 0.0  ;;  %v136_v34 = vsel %vm58_vm0, %v1687_v4, 0.0 }
  0x28   :  { %919 = vmatpush.bf16.msra.mxu1 %v1294_v10  ;;  %v132_v59 = vsel %vm58_vm0, %v1648_v52, 0.0  ;;  %v139_v32 = vmul.f32 %v131_v26, %v131_v26  ;;  %v142_v3 = vmul.f32 %v134_v0, %v134_v0  ;;  %v135_v33 = vsel %vm58_vm0, %v1672_v61, 0.0  ;;  %v1722_v0 = vld [vmem:[#allocation2] sm:$0xff] }
  0x29   :  { %932 = vmatpush.bf16.msra.mxu2 %v1302_v16  ;;  %v140_v62 = vmul.f32 %v132_v59, %v132_v59  ;;  %v159_v9 = vrot.slane %v141_v63, 4  ;;  %v143_v10 = vmul.f32 %v135_v33, %v135_v33  ;;  %v1699_v12 = vsub.f32 %v1583_v39, %v121_v25  ;;  %v1338_v39 = vld [vmem:[%s1964_s3 + $0x1a0] sm:$0xff] }
  0x2a   :  { %945 = vmatpush.bf16.msra.mxu3 %v1310_v17  ;;  %v147_v7 = vrot.slane %v139_v32, 4  ;;  %v165_v11 = vrot.slane %v142_v3, 4 }
  0x2b   :  { %951 = vmatpush.bf16.msrb.mxu0 %v1325_v22  ;;  %v153_v8 = vrot.slane %v140_v62, 4  ;;  %v160_v17 = vadd.f32 %v159_v9, %v141_v63  ;;  %v171_v21 = vrot.slane %v143_v10, 4  ;;  %v144_v22 = vmul.f32 %v136_v34, %v136_v34  ;;  %v1329_v9 = vld [vmem:[%s1964_s3 + $0x158] sm:$0xff] }
  0x2c   :  { %964 = vmatpush.bf16.msrb.mxu1 %v1333_v23  ;;  %v148_v14 = vadd.f32 %v147_v7, %v139_v32  ;;  %v166_v20 = vadd.f32 %v165_v11, %v142_v3  ;;  %v1346_v23 = vld [vmem:[%s1964_s3 + $0x1e0] sm:$0xff] }
  0x2d   :  { %977 = vmatpush.bf16.msrb.mxu2 %v1341_v31  ;;  %v154_v16 = vadd.f32 %v153_v8, %v140_v62  ;;  %v161_v29 = vrot.slane %v160_v17, 2  ;;  %v137_v31 = vsel %vm58_vm0, %v1699_v12, 0.0  ;;  %v172_v42 = vadd.f32 %v171_v21, %v143_v10  ;;  %v1337_v10 = vld [vmem:[%s1964_s3 + $0x198] sm:$0xff] }
  0x2e   :  { %990 = vmatpush.bf16.msrb.mxu3 %v1349_v35  ;;  %v149_v27 = vrot.slane %v148_v14, 2  ;;  %v167_v30 = vrot.slane %v166_v20, 2  ;;  %v122_v35 = vmul.f32 0.5, %v114_v13  ;;  %v177_v43 = vrot.slane %v144_v22, 4 }
  0x2f   :  { %952 = vmatpush.bf16.msrb.mxu0 %v1324_v49  ;;  %v155_v28 = vrot.slane %v154_v16, 2  ;;  %v162_v38 = vadd.f32 %v161_v29, %v160_v17  ;;  %v145_v47 = vmul.f32 %v137_v31, %v137_v31  ;;  %v173_v49 = vrot.slane %v172_v42, 2 }
  0x30   :  { %965 = vmatpush.bf16.msrb.mxu1 %v1332_v50  ;;  %v150_v36 = vadd.f32 %v149_v27, %v148_v14  ;;  %v168_v41 = vadd.f32 %v167_v30, %v166_v20  ;;  %v178_v50 = vadd.f32 %v177_v43, %v144_v22  ;;  %v1717_v54 = vsub.f32 %v1588_v40, %v122_v35  ;;  %v1345_v14 = vld [vmem:[%s1964_s3 + $0x1d8] sm:$0xff]  ;;  %v1336_v22 = vld [vmem:[%s1964_s3 + $0x190] sm:$0xff]  ;;  %v1327_v43 = vld [vmem:[%s1964_s3 + $0x148] sm:$0xff] }
  0x31   :  { %978 = vmatpush.bf16.msrb.mxu2 %v1340_v55  ;;  %v156_v37 = vadd.f32 %v155_v28, %v154_v16  ;;  %v163_v46 = vrot.slane %v162_v38, 1  ;;  %v183_v25 = vrot.slane %v145_v47, 4  ;;  %v174_v26 = vadd.f32 %v173_v49, %v172_v42  ;;  %v1319_v42 = vld [vmem:[%s1964_s3 + $0x108] sm:$0xff] }
  0x32   :  { %991 = vmatpush.bf16.msrb.mxu3 %v1348_v56  ;;  %v151_v44 = vrot.slane %v150_v36, 1  ;;  %v169_v48 = vrot.slane %v168_v41, 1  ;;  %v179_v59 = vrot.slane %v178_v50, 2  ;;  %v138_v63 = vsel %vm58_vm0, %v1717_v54, 0.0 }
  0x33   :  { %953 = vmatpush.bf16.msrb.mxu0 %v1323_v1  ;;  %v157_v45 = vrot.slane %v156_v37, 1  ;;  %v164_v57 = vadd.f32 %v163_v46, %v162_v38  ;;  %v1724_v1 = vld [vmem:[#allocation4] sm:$0xff]  ;;  %v184_v7 = vadd.f32 %v183_v25, %v145_v47  ;;  %v146_v13 = vmul.f32 %v138_v63, %v138_v63  ;;  %v1326_v63 = vld [vmem:[%s1964_s3 + $0x140] sm:$0xff] }
  0x34   :  { %966 = vmatpush.bf16.msrb.mxu1 %v1331_v2  ;;  %v152_v55 = vadd.f32 %v151_v44, %v150_v36  ;;  %v170_v58 = vadd.f32 %v169_v48, %v168_v41  ;;  %v175_v2 = vrot.slane %v174_v26, 1  ;;  %v180_v3 = vadd.f32 %v179_v59, %v178_v50  ;;  %v1335_v46 = vld [vmem:[%s1964_s3 + $0x188] sm:$0xff] }
  0x35   :  { %979 = vmatpush.bf16.msrb.mxu2 %v1339_v5  ;;  %v158_v56 = vadd.f32 %v157_v45, %v156_v37  ;;  %v197_v62 = vmul.f32 0.5, %v164_v57  ;;  %v301_v16 = vperm.slane %v1722_v0, 0  ;;  %v302_v17 = vperm.slane %v1722_v0, 1  ;;  %v1343_v47 = vld [vmem:[%s1964_s3 + $0x1c8] sm:$0xff] }
  0x36   :  { %992 = vmatpush.bf16.msrb.mxu3 %v1347_v6  ;;  %v195_v60 = vmul.f32 0.5, %v152_v55  ;;  %v198_v40 = vmul.f32 0.5, %v170_v58  ;;  %v176_v11 = vadd.f32 %v175_v2, %v174_v26  ;;  %v181_v34 = vrot.slane %v180_v3, 1 }
  0x37   :  { %954 = vmatpush.bf16.msrb.mxu0 %v1322_v18  ;;  %v196_v32 = vmul.f32 0.5, %v158_v56  ;;  %v1730_v6 = vadd.f32 1e-05, %v197_v62  ;;  %v1320_v18 = vld [vmem:[%s1964_s3 + $0x110] sm:$0xff]  ;;  %v327_v21 = vperm.slane %v1724_v1, 0  ;;  %v185_v27 = vrot.slane %v184_v7, 2 }
  0x38   :  { %967 = vmatpush.bf16.msrb.mxu1 %v1330_v19  ;;  %v1726_v33 = vadd.f32 1e-05, %v195_v60  ;;  %v1732_v8 = vadd.f32 1e-05, %v198_v40  ;;  %v1328_v19 = vld [vmem:[%s1964_s3 + $0x150] sm:$0xff]  ;;  %v199_v20 = vmul.f32 0.5, %v176_v11 }
  0x39   :  { %980 = vmatpush.bf16.msrb.mxu2 %v1338_v39  ;;  %v1728_v5 = vadd.f32 1e-05, %v196_v32  ;;  %v1344_v39 = vld [vmem:[%s1964_s3 + $0x1d0] sm:$0xff]  ;;  %v328_v28 = vperm.slane %v1724_v1, 1  ;;  %v189_v30 = vrot.slane %v146_v13, 4  ;;  %v303_v31 = vperm.slane %v1722_v0, 2 }
  0x3a   :  { %993 = vmatpush.bf16.msrb.mxu3 %v1346_v23  ;;  %1353 = vrsqrt.f32 %v1726_v33  ;;  %v182_v23 = vadd.f32 %v181_v34, %v180_v3  ;;  %v1766_v29 = vadd.f32 1e-05, %v199_v20  ;;  %v304_v35 = vperm.slane %v1722_v0, 3  ;;  %v1318_v62 = vld [vmem:[%s1964_s3 + $0x100] sm:$0xff] }
  0x3b   :  { %1355 = vrsqrt.f32 %v1728_v5  ;;  %955 = vmatpush.bf16.msrb.mxu0 %v1321_v15  ;;  %v186_v37 = vadd.f32 %v185_v27, %v184_v7  ;;  %v329_v38 = vperm.slane %v1724_v1, 2  ;;  %v330_v41 = vperm.slane %v1724_v1, 3  ;;  %v1334_v7 = vld [vmem:[%s1964_s3 + $0x180] sm:$0xff] }
  0x3c   :  { %968 = vmatpush.bf16.msrb.mxu1 %v1329_v9  ;;  %1357 = vrsqrt.f32 %v1730_v6  ;;  %v200_v36 = vmul.f32 0.5, %v182_v23  ;;  %v190_v44 = vadd.f32 %v189_v30, %v146_v13  ;;  %vm217_vm1 = vweird.f32 %v1726_v33  ;;  %v1342_v15 = vld [vmem:[%s1964_s3 + $0x1c0] sm:$0xff] }
  0x3d   :  { %981 = vmatpush.bf16.msrb.mxu2 %v1337_v10  ;;  %1359 = vrsqrt.f32 %v1732_v8  ;;  %vm227_vm2 = vweird.f32 %v1728_v5  ;;  %v187_v49 = vrot.slane %v186_v37, 1  ;;  %vm237_vm3 = vweird.f32 %v1730_v6 }
  0x3e   :  { %994 = vmatpush.bf16.msrb.mxu3 %v1345_v14  ;;  %1361 = vrsqrt.f32 %v1766_v29  ;;  %v1789_v48 = vadd.f32 1e-05, %v200_v36  ;;  %vm247_vm4 = vweird.f32 %v1732_v8  ;;  %v191_v56 = vrot.slane %v190_v44, 2 }
  0x3f   :  { %956 = vmatpush.bf16.msrb.mxu0 %v1320_v18  ;;  %v305_v58 = vperm.slane %v1722_v0, 4  ;;  %v331_v26 = vperm.slane %v1724_v1, 4  ;;  %vm257_vm5 = vweird.f32 %v1766_v29  ;;  %v188_v40 = vadd.f32 %v187_v49, %v186_v37 }
  0x40   :  { %969 = vmatpush.bf16.msrb.mxu1 %v1328_v19  ;;  %v1779_v45 = vpop.eup %1353  ;;  %1363 = vrsqrt.f32 %v1789_v48  ;;  %v192_v13 = vadd.f32 %v191_v56, %v190_v44  ;;  %vm267_vm9 = vweird.f32 %v1789_v48 }
  0x41   :  { %982 = vmatpush.bf16.msrb.mxu2 %v1336_v22  ;;  %v1791_v50 = vpop.eup %1355  ;;  %v212_v55 = vmul.f32 %v1779_v45, %v1726_v33  ;;  %vm218_vm6 = vweird.f32 %v1779_v45  ;;  %v201_v34 = vmul.f32 0.5, %v188_v40 }
  0x42   :  { %995 = vmatpush.bf16.msrb.mxu3 %v1344_v39  ;;  %v1797_v57 = vpop.eup %1357  ;;  %v222_v25 = vmul.f32 %v1791_v50, %v1728_v5  ;;  %vm228_vm7 = vweird.f32 %v1791_v50  ;;  %vm1844_vm11 = vmor %vm217_vm1, %vm218_vm6 }
  0x43   :  { %v1804_v59 = vpop.eup %1359  ;;  %v213_v60 = vmul.f32 %v1779_v45, %v212_v55  ;;  %v232_v32 = vmul.f32 %v1797_v57, %v1730_v6  ;;  %957 = vmatpush.bf16.msrb.mxu0 %v1319_v42  ;;  %vm238_vm8 = vweird.f32 %v1797_v57  ;;  %v1836_v39 = vadd.f32 1e-05, %v201_v34  ;;  %vm1855_vm13 = vmor %vm227_vm2, %vm228_vm7 }
  0x44   :  { %970 = vmatpush.bf16.msrb.mxu1 %v1327_v43  ;;  %v223_v2 = vmul.f32 %v1791_v50, %v222_v25  ;;  %v242_v3 = vmul.f32 %v1804_v59, %v1732_v8  ;;  %v1827_v9 = vpop.eup %1361  ;;  %vm248_vm10 = vweird.f32 %v1804_v59  ;;  %vm1866_vm14 = vmor %vm237_vm3, %vm238_vm8  ;;  %v307_v6 = vperm.slane %v1722_v0, 6 }
  0x45   :  { %983 = vmatpush.bf16.msrb.mxu2 %v1335_v46  ;;  %v214_v10 = vmul.f32 0.5, %v213_v60  ;;  %v233_v11 = vmul.f32 %v1797_v57, %v232_v32  ;;  %v252_v19 = vmul.f32 %v1827_v9, %v1766_v29  ;;  %vm258_vm12 = vweird.f32 %v1827_v9  ;;  %vm1879_vm15 = vmor %vm247_vm4, %vm248_vm10 }
  0x46   :  { %996 = vmatpush.bf16.msrb.mxu3 %v1343_v47  ;;  %v224_v14 = vmul.f32 0.5, %v223_v2  ;;  %v243_v18 = vmul.f32 %v1804_v59, %v242_v3  ;;  %v1838_v23 = vpop.eup %1363  ;;  %v193_v46 = vrot.slane %v192_v13, 1  ;;  %1365 = vrsqrt.f32 %v1836_v39  ;;  %vm1898_vm1 = vmor %vm257_vm5, %vm258_vm12 }
  0x47   :  { %v215_v20 = vsub.f32 1.5, %v214_v10  ;;  %v234_v22 = vmul.f32 0.5, %v233_v11  ;;  %958 = vmatpush.bf16.msrb.mxu0 %v1318_v62  ;;  %v253_v37 = vmul.f32 %v1827_v9, %v252_v19  ;;  %v262_v44 = vmul.f32 %v1838_v23, %v1789_v48 }
  0x48   :  { %971 = vmatpush.bf16.msrb.mxu1 %v1326_v63  ;;  %v225_v30 = vsub.f32 1.5, %v224_v14  ;;  %v244_v36 = vmul.f32 0.5, %v243_v18  ;;  %vm268_vm0 = vweird.f32 %v1838_v23  ;;  %v194_v3 = vadd.f32 %v193_v46, %v192_v13 }
  0x49   :  { %984 = vmatpush.bf16.msrb.mxu2 %v1334_v7  ;;  %v216_v42 = vmul.f32 %v1779_v45, %v215_v20  ;;  %v235_v43 = vsub.f32 1.5, %v234_v22  ;;  %v254_v55 = vmul.f32 0.5, %v253_v37  ;;  %v263_v60 = vmul.f32 %v1838_v23, %v262_v44  ;;  %vm1930_vm2 = vmor %vm267_vm9, %vm268_vm0 }
  0x4a   :  { %997 = vmatpush.bf16.msrb.mxu3 %v1342_v15  ;;  %v226_v47 = vmul.f32 %v1791_v50, %v225_v30  ;;  %v245_v5 = vsub.f32 1.5, %v244_v36  ;;  %v306_v11 = vperm.slane %v1722_v0, 5  ;;  %v202_v13 = vmul.f32 0.5, %v194_v3 }
  0x4b   :  { %v220_v56 = vsel %vm1844_vm11, %v1779_v45, %v216_v42  ;;  %v236_v25 = vmul.f32 %v1797_v57, %v235_v43  ;;  %v255_v63 = vsub.f32 1.5, %v254_v55  ;;  %vm277_vm7 = vweird.f32 %v1836_v39 }
  0x4c   :  { %v291_v32 = vmul.f32 %v220_v56, %v1645_v51  ;;  %v230_v45 = vsel %vm1855_vm13, %v1791_v50, %v226_v47  ;;  %v246_v62 = vmul.f32 %v1804_v59, %v245_v5  ;;  %v264_v51 = vmul.f32 0.5, %v263_v60  ;;  %v1366_v34 = vpop.eup %1365 }
  0x4d   :  { %v292_v40 = vmul.f32 %v230_v45, %v1648_v52  ;;  %v240_v8 = vsel %vm1866_vm14, %v1797_v57, %v236_v25  ;;  %v256_v57 = vmul.f32 %v1827_v9, %v255_v63  ;;  %vm278_vm8 = vweird.f32 %v1366_v34 }
  0x4e   :  { %v317_v50 = vmul.f32 %v301_v16, %v291_v32  ;;  %v293_v7 = vmul.f32 %v240_v8, %v1651_v53  ;;  %v250_v52 = vsel %vm1879_vm15, %v1804_v59, %v246_v62  ;;  %v265_v10 = vsub.f32 1.5, %v264_v51  ;;  %vm279_vm9 = vmor %vm277_vm7, %vm278_vm8 }
  0x4f   :  { %v318_v29 = vmul.f32 %v302_v17, %v292_v40  ;;  %v294_v15 = vmul.f32 %v250_v52, %v1660_v24  ;;  %v260_v59 = vsel %vm1898_vm1, %v1827_v9, %v256_v57  ;;  %v272_v9 = vmul.f32 %v1366_v34, %v1836_v39 }
  0x50   :  { %v343_v16 = vadd.f32 %v327_v21, %v317_v50  ;;  %v319_v53 = vmul.f32 %v303_v31, %v293_v7  ;;  %v295_v14 = vmul.f32 %v260_v59, %v1672_v61  ;;  %v266_v18 = vmul.f32 %v1838_v23, %v265_v10 }
  0x51   :  { %v344_v17 = vadd.f32 %v328_v28, %v318_v29  ;;  %v320_v24 = vmul.f32 %v304_v35, %v294_v15  ;;  %v273_v43 = vmul.f32 %v1366_v34, %v272_v9  ;;  %v210_v49 = vadd.f32 1e-05, %v202_v13 }
  0x52   :  { %vm351_vm3 = vcmp.gt.f32.partialorder %v343_v16, 0.0  ;;  %v359_v31 = vmul.f32 0.2, %v343_v16  ;;  %v345_v28 = vadd.f32 %v329_v38, %v319_v53  ;;  %v321_v19 = vmul.f32 %v305_v58, %v295_v14 }
  0x53   :  { %vm352_vm4 = vcmp.gt.f32.partialorder %v344_v17, 0.0  ;;  %v360_v35 = vmul.f32 0.2, %v344_v17  ;;  %v346_v61 = vadd.f32 %v330_v41, %v320_v24  ;;  %v270_v22 = vsel %vm1930_vm2, %v1838_v23, %v266_v18 }
  0x54   :  { %v367_v48 = vsel %vm351_vm3, %v343_v16, %v359_v31  ;;  %vm353_vm5 = vcmp.gt.f32.partialorder %v345_v28, 0.0  ;;  %v361_v20 = vmul.f32 0.2, %v345_v28  ;;  %v296_v42 = vmul.f32 %v270_v22, %v1687_v4 }
  0x55   :  { %v375_v27 = vpack.c.bf16 %v367_v48, %v367_v48  ;;  %v368_v30 = vsel %vm352_vm4, %v344_v17, %v360_v35  ;;  %vm354_vm6 = vcmp.gt.f32.partialorder %v346_v61, 0.0  ;;  %v362_v38 = vmul.f32 0.2, %v346_v61 }
  0x56   :  { %v376_v36 = vpack.c.bf16 %v368_v30, %v368_v30  ;;  %v369_v37 = vsel %vm353_vm5, %v345_v28, %v361_v20  ;;  %v332_v41 = vperm.slane %v1724_v1, 5  ;;  %v347_v46 = vadd.f32 %v331_v26, %v321_v19 }
  0x57   :  { %907 = vmatmul.bf16.vlgmr.msra.gmra.mxu0 %v375_v27  ;;  %v377_v33 = vpack.c.bf16 %v369_v37, %v369_v37  ;;  %v370_v58 = vsel %vm354_vm6, %v346_v61, %v362_v38  ;;  %v322_v23 = vmul.f32 %v306_v11, %v296_v42  ;;  %v274_v47 = vmul.f32 0.5, %v273_v43 }
  0x58   :  { %920 = vmatmul.bf16.vlgmr.msra.gmra.mxu1 %v376_v36  ;;  %v378_v44 = vpack.c.bf16 %v370_v58, %v370_v58  ;;  %1367 = vrsqrt.f32 %v210_v49  ;;  %v363_v55 = vmul.f32 0.2, %v347_v46  ;;  %vm355_vm10 = vcmp.gt.f32.partialorder %v347_v46, 0.0 }
  0x59   :  { %933 = vmatmul.bf16.vlgmr.msra.gmra.mxu2 %v377_v33  ;;  %v348_v4 = vadd.f32 %v332_v41, %v322_v23  ;;  %v275_v5 = vsub.f32 1.5, %v274_v47  ;;  %v333_v39 = vperm.slane %v1724_v1, 6  ;;  %vm287_vm12 = vweird.f32 %v210_v49 }
  0x5a   :  { %946 = vmatmul.bf16.vlgmr.msra.gmra.mxu3 %v378_v44  ;;  %v371_v60 = vsel %vm355_vm10, %v347_v46, %v363_v55  ;;  %v308_v15 = vperm.slane %v1722_v0, 7  ;;  %v1352_v0 = vld [vmem:[%s1965_s4] ss:$0 sm:$0xff] }
  0x5b   :  { %v364_v56 = vmul.f32 0.2, %v348_v4  ;;  %v276_v25 = vmul.f32 %v1366_v34, %v275_v5  ;;  %vm356_vm11 = vcmp.gt.f32.partialorder %v348_v4, 0.0  ;;  %v379_v8 = vpack.c.bf16 %v371_v60, %v371_v60 }
  0x5d   :  { %v280_v26 = vsel %vm279_vm9, %v1366_v34, %v276_v25  ;;  %v372_v62 = vsel %vm356_vm11, %v348_v4, %v364_v56  ;;  %v334_v34 = vperm.slane %v1724_v1, 7 }
  0x5e   :  { %v297_v32 = vmul.f32 %v280_v26, %v1699_v12  ;;  %v1368_v45 = vpop.eup %1367  ;;  %v380_v2 = vpack.c.bf16 %v372_v62, %v372_v62 }
  0x5f   :  { %v282_v40 = vmul.f32 %v1368_v45, %v210_v49  ;;  %vm288_vm14 = vweird.f32 %v1368_v45 }
  0x60   :  { %v323_v63 = vmul.f32 %v307_v6, %v297_v32  ;;  %vm289_vm15 = vmor %vm287_vm12, %vm288_vm14 }
  0x61   :  { %v283_v3 = vmul.f32 %v1368_v45, %v282_v40 }
  0x62   :  { %v349_v51 = vadd.f32 %v333_v39, %v323_v63 }
  0x63   :  { %v284_v7 = vmul.f32 0.5, %v283_v3 }
  0x64   :  { %vm357_vm13 = vcmp.gt.f32.partialorder %v349_v51, 0.0  ;;  %v365_v50 = vmul.f32 0.2, %v349_v51 }
  0x65   :  { %v285_v57 = vsub.f32 1.5, %v284_v7 }
  0x66   :  { %v373_v52 = vsel %vm357_vm13, %v349_v51, %v365_v50 }
  0x67   :  { %959 = vmatmul.bf16.vlgmr.msrb.gmra.mxu0 %v379_v8  ;;  %v381_v12 = vpack.c.bf16 %v373_v52, %v373_v52  ;;  %v286_v29 = vmul.f32 %v1368_v45, %v285_v57 }
  0x68   :  { %972 = vmatmul.bf16.vlgmr.msrb.gmra.mxu1 %v380_v2 }
  0x69   :  { %985 = vmatmul.bf16.vlgmr.msrb.gmra.mxu2 %v381_v12  ;;  %v290_v10 = vsel %vm289_vm15, %v1368_v45, %v286_v29 }
  0x6a   :  { %v298_v11 = vmul.f32 %v290_v10, %v1717_v54 }
  0x6c   :  { %v324_v16 = vmul.f32 %v308_v15, %v298_v11 }
  0x6e   :  { %v350_v53 = vadd.f32 %v334_v34, %v324_v16 }
  0x70   :  { %vm358_vm0 = vcmp.gt.f32.partialorder %v350_v53, 0.0  ;;  %v366_v59 = vmul.f32 0.2, %v350_v53 }
  0x72   :  { %v374_v13 = vsel %vm358_vm0, %v350_v53, %v366_v59 }
  0x73   :  { %v382_v17 = vpack.c.bf16 %v374_v13, %v374_v13 }
  0x75   :  { %998 = vmatmul.bf16.vlgmr.msrb.gmra.mxu3 %v382_v17 }
  0xd4   :  { %v908_v24 = vpop.f32.mrf.mxu0 }
  0xd5   :  { %v921_v14 = vpop.f32.mrf.mxu1  ;;  %v909_v54 = vadd.f32 %v1352_v0, %v908_v24 }
  0xd7   :  { %v922_v19 = vadd.f32 %v921_v14, %v909_v54 }
  0xdc   :  { %v934_v18 = vpop.f32.mrf.mxu2  ;;  %v910_v21 = vpop.f32.mrf.mxu0 }
  0xdd   :  { %v947_v31 = vpop.f32.mrf.mxu3  ;;  %v923_v28 = vpop.f32.mrf.mxu1  ;;  %v935_v48 = vadd.f32 %v934_v18, %v922_v19 }
  0xdf   :  { %v948_v30 = vadd.f32 %v947_v31, %v935_v48 }
  0xe4   :  { %v936_v9 = vpop.f32.mrf.mxu2  ;;  %v960_v1 = vpop.f32.mrf.mxu0 }
  0xe5   :  { %v949_v35 = vpop.f32.mrf.mxu3  ;;  %v973_v61 = vpop.f32.mrf.mxu1  ;;  %v961_v38 = vadd.f32 %v960_v1, %v948_v30 }
  0xe7   :  { %v974_v36 = vadd.f32 %v973_v61, %v961_v38 }
  0xec   :  { %v962_v20 = vpop.f32.mrf.mxu0  ;;  %v986_v27 = vpop.f32.mrf.mxu2 }
  0xed   :  { %v975_v22 = vpop.f32.mrf.mxu1  ;;  %v987_v42 = vadd.f32 %v986_v27, %v974_v36 }
  0xf4   :  { %v988_v37 = vpop.f32.mrf.mxu2 }
  0xf8   :  { %v999_v41 = vpop.f32.mrf.mxu3 }
  0xf9   :  { %v1000_v33 = vadd.f32 %v999_v41, %v987_v42 }
  0xfb   :  { %v1285_v58 = vmul.f32 -1.442695, %v1000_v33 }
  0xfd   :  { %1369 = vpow2.f32 %v1285_v58 }
 0x100   :  { %v1001_v43 = vpop.f32.mrf.mxu3 }
 0x103   :  { %v1370_v44 = vpop.eup %1369 }
 0x104   :  { %v1006_v46 = vadd.f32 1.0, %v1370_v44 }
 0x106   :  { %1371 = vrcp.f32 %v1006_v46  ;;  %v1018_v4 = vand.u32 2147483648, %v1006_v46  ;;  %v1016_v55 = vand.u32 2147483647, %v1006_v46  ;;  %vm1012_vm2 = vweird.f32 %v1006_v46 }
 0x108   :  { %v1019_v25 = vor.u32 1.1754944e-38, %v1018_v4  ;;  %vm1017_vm4 = vcmp.eq.f32.partialorder %v1016_v55, 8.507059e+37 }
 0x10c   :  { %v1372_v23 = vpop.eup %1371 }
 0x10d   :  { %v1008_v47 = vmul.f32 %v1372_v23, %v1006_v46  ;;  %vm1013_vm1 = vweird.f32 %v1372_v23 }
 0x10e   :  { %vm1014_vm3 = vmor %vm1012_vm2, %vm1013_vm1 }
 0x10f   :  { %v1009_v49 = vsub.f32 1.0, %v1008_v47 }
 0x111   :  { %v1010_v5 = vmul.f32 %v1372_v23, %v1009_v49 }
 0x113   :  { %v1011_v56 = vadd.f32 %v1372_v23, %v1010_v5 }
 0x115   :  { %v1015_v6 = vsel %vm1014_vm3, %v1372_v23, %v1011_v56 }
 0x116   :  { %v1020_v26 = vsel %vm1017_vm4, %v1019_v25, %v1015_v6 }
 0x117   :  { %1022 = vst [vmem:[%s1966_s5] sm:$0xff] %v1020_v26 }
 0x118   :  { %1027 = vsyncpa [#allocation3], 1 }
 0x119   :  { %1028 = vsyncpa [#allocation5], 1 }

// kernel: discriminator_forward.6
= control target key start
LH: loop header
LB: loop body
LE: loop exit
PB: predicated region body
PF: predicated region fallthrough
CT: control target
= control target key end

     0   :  { %10 = vsyncpa [#allocation4], 0  ;;  %s8921_s0 = inlined_call_operand.vmem [shape: bf16[8,2048], index: 0, kind: input, shape index: {}]   ;;  %s8922_s1 = inlined_call_operand.vmem [shape: f32[1,2048], index: 1, kind: input, shape index: {}]   ;;  %s8923_s2 = inlined_call_operand.vmem [shape: f32[1,2048], index: 2, kind: input, shape index: {}]   ;;  %s8924_s3 = inlined_call_operand.hbm [shape: bf16[2048,1024], index: 3, kind: input, shape index: {}]   ;;  %s8925_s4 = inlined_call_operand.hbm [shape: f32[1,1024], index: 4, kind: input, shape index: {}]   ;;  %s8926_s5 = inlined_call_operand.vmem [shape: f32[8,1024], index: 5, kind: output, shape index: {}]  }
   0x1   :  { %12 = vsyncpa [#allocation4 + $0x1], 0 }
   0x2   :  { %13 = vsyncpa [#allocation6], 0 }
   0x3   :  { %15 = vsyncpa [#allocation6 + $0x1], 0  ;;  %s7443_s18 = smov 0   ;;  %s7445_s19 = smov 0  }
   0x4   :  { %s7447_s20 = smov 0   ;;  %s7449_s21 = smov 0  }
   0x5   :  { %s7451_s22 = smov 0   ;;  %s7453_s23 = smov 0  }
   0x6 LB: > { %s4649_s24 = sadd.s32 4294967295, %s7408_s23   ;;  %s33_s25 = sadd.s32 1, %s7404_s22  ;;  %s7408_s23 = sphi %s7453_s23, %s21_s23   ;;  %s7404_s22 = sphi %s7451_s22, %s8935_s22   ;;  %s7400_s21 = sphi %s7449_s21, %s8934_s21   ;;  %s7396_s20 = sphi %s7447_s20, %s8933_s20   ;;  %s7392_s19 = sphi %s7445_s19, %s8932_s19   ;;  %s7388_s18 = sphi %s7443_s18, %s8931_s18  }
   0x7   : > { %p35_p0 = scmp.ge.s32.totalorder %s33_s25, 2  ;;  %s120_s26 = sadd.s32 1, %s7396_s20 }
   0x8   : > { %p127_p1 = scmp.ne.s32.totalorder %s7396_s20, %s7392_s19  ;;  %p128_p2 = scmp.eq.s32.totalorder %s7408_s23, 0 }
   0x9   : > { %s8937_s25 = smov (%p35_p0, %s33_s25), 0  ;;  %p133_p4 = scmp.ne.s32.totalorder %s7392_s19, %s7388_s18 }
   0xa   : > { %p7479_p3 = por %p128_p2, %p127_p1  ;;  %s116_s28 = ssub.s32 %s7404_s22, %s8937_s25 }
   0xb   : > { %p134_p5 = scmp.eq.s32.totalorder %s4649_s24, 0  ;;  %p118_p6 = scmp.eq.s32.totalorder %s116_s28, 0 }
   0xc   : > { %p7240_p8 = scmp.lt.s32.totalorder %s7408_s23, 2  ;;  %s7495_s6 = sand.u32 1, %s7396_s20  }
   0xd   : > { %p7486_p7 = por %p134_p5, %p133_p4  ;;  %s6716_s7 = sshll.u32 %s7404_s22, 4 }
   0xe   : > { %s7492_s30 = scalar_select %p118_p6, %s7396_s20, %s120_s26  }
   0xf   : > { %s4656_s8 = sshll.u32 %s7495_s6, 12  ;;  %s246_s11 = scalar_lea.hbm %s8924_s3, %s6716_s7 }
  0x10   : > { %s247_s12 = sshll.u32 %s246_s11, 4  ;;  %s238_s13 = scalar_lea.vmem [#allocation3], %s4656_s8  ;;  %s248_s12 = int_to_ptr.hbm [resolvable:$true] %s247_s12 }
  0x11   : > { %s249_s14 = sshll.u32 %s238_s13, 4  ;;  %p7504_p9 = pnand %p7240_p8, %p7479_p3  ;;  %s250_s14 = int_to_ptr.vmem [resolvable:$true] %s249_s14 }
  0x12   : > { %p4661_p10 = scmp.ge.s32.totalorder %s7408_s23, 1  ;;  %s235_s16 = scalar_lea.sflag [#allocation4], %s7495_s6 }
  0x13   : > { %s7410_s17 = smov 512   ;;  %s7411_s18 = smov 256  }
  0x14   : > { %s7412_s24 = smov 16   ;;  %p276_p11 = scmp.lt.s32.totalorder %s7408_s23, 3 }
  0x15   : > { %7236 = dma.hbm_to_vmem [thread:$0]  (!%p7504_p9), %s248_s12, 65536, %s250_s14, %s235_s16, %s7410_s17, %s7411_s18, %s7412_s24  }
  0x16   : > { %s4659_s26 = sshll.u32 %s7495_s6, 2  ;;  %s4660_s28 = sshll.u32 %s7404_s22, 2 }
  0x17   : > { %p277_p12 = pnand %p4661_p10, %p276_p11  ;;  %s267_s8 = scalar_lea.hbm %s8925_s4, %s4660_s28 }
  0x18   : > { %s263_s9 = scalar_lea.vmem [#allocation5], %s4659_s26  ;;  %s269_s11 = sshll.u32 %s267_s8, 4  ;;  %s270_s11 = int_to_ptr.hbm [resolvable:$true] %s269_s11 }
  0x19   : > { %s271_s10 = sshll.u32 %s263_s9, 4  ;;  %s260_s13 = scalar_lea.sflag [#allocation6], %s7495_s6  ;;  %s272_s10 = int_to_ptr.vmem [resolvable:$true] %s271_s10 }
  0x1a   : > { %7239 = dma.hbm_to_vmem [thread:$0]  (!%p7504_p9), %s270_s11, 64, %s272_s10, %s260_s13  }
  0x1b   : > { %280 = sbr.rel (%p277_p12) target bundleno = 697 (0x2b9), region = 40  ;;  %s282_s12 = sand.u32 (!%p277_p12), 1, %s7392_s19  }
  0x1c   : > { %s4662_s14 = sshll.u32 (!%p277_p12), %s282_s12, 12  ;;  %s283_s16 = scalar_lea.sflag (!%p277_p12), [#allocation4], %s282_s12 }
  0x1d   : > { %s7522_s17 = scalar_lea.vmem (!%p277_p12), [#allocation3], %s4662_s14 }
  0x20   : > { %7379 = dma.done.wait (%p7486_p7), %s283_s16, 65536  }
  0x21   : > { %7381 = vsyncadd (%p7486_p7), %s283_s16, 4294901760  ;;  %s4663_s18 = sshll.u32 %s282_s12, 2  ;;  %s293_s24 = scalar_lea.sflag [#allocation6], %s282_s12 }
  0x22   : > { %s7528_s26 = scalar_lea.vmem [#allocation5], %s4663_s18 }
  0x23   : > { %7383 = dma.done.wait (%p7486_p7), %s293_s24, 64  }
  0x24   : > { %7385 = vsyncadd (%p7486_p7), %s293_s24, 4294967232  ;;  %v4780_v0 = vld [vmem:[%s7522_s17 + $0xe0] sm:$0xf]  ;;  %v6747_v1 = vld [vmem:[%s7522_s17 + $0xec] sm:$0xf0]  ;;  %s4664_s10 = sshll.u32 %s7400_s21, 2 }
  0x25   : > { %v4908_v2 = vld [vmem:[%s7522_s17 + $0x1e0] sm:$0xf]  ;;  %v4781_v3 = vor.u32 %v6747_v1, %v4780_v0  ;;  %v6779_v4 = vld [vmem:[%s7522_s17 + $0x1ec] sm:$0xf0]  ;;  %p8313_p13 = scmp.lt.s32.totalorder %s4664_s10, 7 }
  0x26   : > { %v5036_v5 = vld [vmem:[%s7522_s17 + $0x2e0] sm:$0xf]  ;;  %v6811_v6 = vld [vmem:[%s7522_s17 + $0x2ec] sm:$0xf0]  ;;  %v4909_v7 = vor.u32 %v6779_v4, %v4908_v2 }
  0x27   : > { %v5037_v8 = vor.u32 %v6811_v6, %v5036_v5  ;;  %v5164_v9 = vld [vmem:[%s7522_s17 + $0x3e0] sm:$0xf]  ;;  %v6843_v10 = vld [vmem:[%s7522_s17 + $0x3ec] sm:$0xf0]  ;;  %3643 = vmatpush.bf16.msra.mxu0 %v4781_v3  ;;  %s8939_s10 = smov (!%p8313_p13, %s4664_s10), 7 }
  0x28   : > { %v4764_v11 = vld [vmem:[%s7522_s17 + $0xc0] sm:$0xf]  ;;  %v5165_v12 = vor.u32 %v6843_v10, %v5164_v9  ;;  %v6743_v13 = vld [vmem:[%s7522_s17 + $0xcc] sm:$0xf0]  ;;  %3656 = vmatpush.bf16.msra.mxu1 %v4909_v7  ;;  %s4665_s21 = sshll.u32 %s8939_s10, 3 }
  0x29   : > { %v4892_v14 = vld [vmem:[%s7522_s17 + $0x1c0] sm:$0xf]  ;;  %v6775_v15 = vld [vmem:[%s7522_s17 + $0x1cc] sm:$0xf0]  ;;  %3669 = vmatpush.bf16.msra.mxu2 %v5037_v8  ;;  %v4765_v16 = vor.u32 %v6743_v13, %v4764_v11  ;;  %s8347_s14 = scalar_lea.vmem %s8926_s5, %s4665_s21 }
  0x2a   : > { %v4893_v17 = vor.u32 %v6775_v15, %v4892_v14  ;;  %v5020_v18 = vld [vmem:[%s7522_s17 + $0x2c0] sm:$0xf]  ;;  %v6807_v19 = vld [vmem:[%s7522_s17 + $0x2cc] sm:$0xf0]  ;;  %3682 = vmatpush.bf16.msra.mxu3 %v5165_v12 }
  0x2b   : > { %v5148_v20 = vld [vmem:[%s7522_s17 + $0x3c0] sm:$0xf]  ;;  %v5021_v21 = vor.u32 %v6807_v19, %v5020_v18  ;;  %v6839_v22 = vld [vmem:[%s7522_s17 + $0x3cc] sm:$0xf0]  ;;  %3644 = vmatpush.bf16.msra.mxu0 %v4765_v16 }
  0x2c   : > { %v4748_v23 = vld [vmem:[%s7522_s17 + $0xa0] sm:$0xf]  ;;  %v6739_v24 = vld [vmem:[%s7522_s17 + $0xac] sm:$0xf0]  ;;  %v5149_v25 = vor.u32 %v6839_v22, %v5148_v20  ;;  %3657 = vmatpush.bf16.msra.mxu1 %v4893_v17 }
  0x2d   : > { %v4876_v26 = vld [vmem:[%s7522_s17 + $0x1a0] sm:$0xf]  ;;  %v6771_v27 = vld [vmem:[%s7522_s17 + $0x1ac] sm:$0xf0]  ;;  %v4749_v29 = vor.u32 %v6739_v24, %v4748_v23  ;;  %3670 = vmatpush.bf16.msra.mxu2 %v5021_v21 }
  0x2e   : > { %v5004_v28 = vld [vmem:[%s7522_s17 + $0x2a0] sm:$0xf]  ;;  %v6803_v30 = vld [vmem:[%s7522_s17 + $0x2ac] sm:$0xf0]  ;;  %v4877_v33 = vor.u32 %v6771_v27, %v4876_v26  ;;  %3683 = vmatpush.bf16.msra.mxu3 %v5149_v25 }
  0x2f   : > { %v5132_v31 = vld [vmem:[%s7522_s17 + $0x3a0] sm:$0xf]  ;;  %v6835_v32 = vld [vmem:[%s7522_s17 + $0x3ac] sm:$0xf0]  ;;  %v5005_v34 = vor.u32 %v6803_v30, %v5004_v28  ;;  %3645 = vmatpush.bf16.msra.mxu0 %v4749_v29 }
  0x30   : > { %v4732_v35 = vld [vmem:[%s7522_s17 + $0x80] sm:$0xf]  ;;  %v6735_v36 = vld [vmem:[%s7522_s17 + $0x8c] sm:$0xf0]  ;;  %v5133_v38 = vor.u32 %v6835_v32, %v5132_v31  ;;  %3658 = vmatpush.bf16.msra.mxu1 %v4877_v33 }
  0x31   : > { %v4860_v37 = vld [vmem:[%s7522_s17 + $0x180] sm:$0xf]  ;;  %v6767_v39 = vld [vmem:[%s7522_s17 + $0x18c] sm:$0xf0]  ;;  %v4733_v44 = vor.u32 %v6735_v36, %v4732_v35  ;;  %3671 = vmatpush.bf16.msra.mxu2 %v5005_v34 }
  0x32   : > { %v4988_v40 = vld [vmem:[%s7522_s17 + $0x280] sm:$0xf]  ;;  %v6799_v41 = vld [vmem:[%s7522_s17 + $0x28c] sm:$0xf0]  ;;  %v4861_v45 = vor.u32 %v6767_v39, %v4860_v37  ;;  %3684 = vmatpush.bf16.msra.mxu3 %v5133_v38 }
  0x33   : > { %v5116_v42 = vld [vmem:[%s7522_s17 + $0x380] sm:$0xf]  ;;  %v6831_v43 = vld [vmem:[%s7522_s17 + $0x38c] sm:$0xf0]  ;;  %v4989_v46 = vor.u32 %v6799_v41, %v4988_v40  ;;  %3646 = vmatpush.bf16.msra.mxu0 %v4733_v44 }
  0x34   : > { %v4716_v47 = vld [vmem:[%s7522_s17 + $0x60] sm:$0xf]  ;;  %v6731_v48 = vld [vmem:[%s7522_s17 + $0x6c] sm:$0xf0]  ;;  %v5117_v50 = vor.u32 %v6831_v43, %v5116_v42  ;;  %3659 = vmatpush.bf16.msra.mxu1 %v4861_v45 }
  0x35   : > { %v4844_v49 = vld [vmem:[%s7522_s17 + $0x160] sm:$0xf]  ;;  %v6763_v51 = vld [vmem:[%s7522_s17 + $0x16c] sm:$0xf0]  ;;  %v4717_v56 = vor.u32 %v6731_v48, %v4716_v47  ;;  %3672 = vmatpush.bf16.msra.mxu2 %v4989_v46 }
  0x36   : > { %v4972_v52 = vld [vmem:[%s7522_s17 + $0x260] sm:$0xf]  ;;  %v6795_v53 = vld [vmem:[%s7522_s17 + $0x26c] sm:$0xf0]  ;;  %v4845_v57 = vor.u32 %v6763_v51, %v4844_v49  ;;  %3685 = vmatpush.bf16.msra.mxu3 %v5117_v50 }
  0x37   : > { %v5100_v54 = vld [vmem:[%s7522_s17 + $0x360] sm:$0xf]  ;;  %v6827_v55 = vld [vmem:[%s7522_s17 + $0x36c] sm:$0xf0]  ;;  %v4973_v58 = vor.u32 %v6795_v53, %v4972_v52  ;;  %3647 = vmatpush.bf16.msra.mxu0 %v4717_v56 }
  0x38   : > { %v4700_v59 = vld [vmem:[%s7522_s17 + $0x40] sm:$0xf]  ;;  %v6727_v60 = vld [vmem:[%s7522_s17 + $0x4c] sm:$0xf0]  ;;  %v5101_v62 = vor.u32 %v6827_v55, %v5100_v54  ;;  %3660 = vmatpush.bf16.msra.mxu1 %v4845_v57 }
  0x39   : > { %v4828_v61 = vld [vmem:[%s7522_s17 + $0x140] sm:$0xf]  ;;  %v6759_v63 = vld [vmem:[%s7522_s17 + $0x14c] sm:$0xf0]  ;;  %v4701_v4 = vor.u32 %v6727_v60, %v4700_v59  ;;  %3673 = vmatpush.bf16.msra.mxu2 %v4973_v58 }
  0x3a   : > { %v4956_v0 = vld [vmem:[%s7522_s17 + $0x240] sm:$0xf]  ;;  %v6791_v1 = vld [vmem:[%s7522_s17 + $0x24c] sm:$0xf0]  ;;  %v4829_v5 = vor.u32 %v6759_v63, %v4828_v61  ;;  %3686 = vmatpush.bf16.msra.mxu3 %v5101_v62  ;;  %v376_v62 = vld [vmem:[%s8921_s0 + $0x8] sm:$0xff] }
  0x3b   : > { %v5084_v2 = vld [vmem:[%s7522_s17 + $0x340] sm:$0xf]  ;;  %v6823_v3 = vld [vmem:[%s7522_s17 + $0x34c] sm:$0xf0]  ;;  %v4957_v6 = vor.u32 %v6791_v1, %v4956_v0  ;;  %3648 = vmatpush.bf16.msra.mxu0 %v4701_v4  ;;  %v385_v1 = vunpack.c.l.bf16 %v376_v62 }
  0x3c   : > { %v4684_v7 = vld [vmem:[%s7522_s17 + $0x20] sm:$0xf]  ;;  %v6723_v8 = vld [vmem:[%s7522_s17 + $0x2c] sm:$0xf0]  ;;  %v5085_v10 = vor.u32 %v6823_v3, %v5084_v2  ;;  %3661 = vmatpush.bf16.msra.mxu1 %v4829_v5 }
  0x3d   : > { %v4812_v9 = vld [vmem:[%s7522_s17 + $0x120] sm:$0xf]  ;;  %v6755_v11 = vld [vmem:[%s7522_s17 + $0x12c] sm:$0xf0]  ;;  %v4685_v16 = vor.u32 %v6723_v8, %v4684_v7  ;;  %3674 = vmatpush.bf16.msra.mxu2 %v4957_v6 }
  0x3e   : > { %v4940_v12 = vld [vmem:[%s7522_s17 + $0x220] sm:$0xf]  ;;  %v6787_v13 = vld [vmem:[%s7522_s17 + $0x22c] sm:$0xf0]  ;;  %v4813_v19 = vor.u32 %v6755_v11, %v4812_v9  ;;  %3687 = vmatpush.bf16.msra.mxu3 %v5085_v10 }
  0x3f   : > { %v5068_v14 = vld [vmem:[%s7522_s17 + $0x320] sm:$0xf]  ;;  %v6819_v15 = vld [vmem:[%s7522_s17 + $0x32c] sm:$0xf0]  ;;  %v4941_v20 = vor.u32 %v6787_v13, %v4940_v12  ;;  %3649 = vmatpush.bf16.msra.mxu0 %v4685_v16  ;;  %v386_v12 = vunpack.c.h.bf16 %v376_v62 }
  0x40   : > { %v4668_v17 = vld [vmem:[%s7522_s17] sm:$0xf]  ;;  %v6719_v18 = vld [vmem:[%s7522_s17 + $0xc] sm:$0xf0]  ;;  %v5069_v24 = vor.u32 %v6819_v15, %v5068_v14  ;;  %3662 = vmatpush.bf16.msra.mxu1 %v4813_v19 }
  0x41   : > { %v4796_v21 = vld [vmem:[%s7522_s17 + $0x100] sm:$0xf]  ;;  %v6751_v22 = vld [vmem:[%s7522_s17 + $0x10c] sm:$0xf0]  ;;  %v4669_v31 = vor.u32 %v6719_v18, %v4668_v17  ;;  %3675 = vmatpush.bf16.msra.mxu2 %v4941_v20 }
  0x42   : > { %v4924_v23 = vld [vmem:[%s7522_s17 + $0x200] sm:$0xf]  ;;  %v6783_v25 = vld [vmem:[%s7522_s17 + $0x20c] sm:$0xf0]  ;;  %v4797_v35 = vor.u32 %v6751_v22, %v4796_v21  ;;  %3688 = vmatpush.bf16.msra.mxu3 %v5069_v24 }
  0x43   : > { %v5052_v26 = vld [vmem:[%s7522_s17 + $0x300] sm:$0xf]  ;;  %v6815_v27 = vld [vmem:[%s7522_s17 + $0x30c] sm:$0xf0]  ;;  %v4925_v36 = vor.u32 %v6783_v25, %v4924_v23  ;;  %3650 = vmatpush.bf16.msra.mxu0 %v4669_v31 }
  0x44   : > { %v5292_v28 = vld [vmem:[%s7522_s17 + $0x4e0] sm:$0xf]  ;;  %v6875_v29 = vld [vmem:[%s7522_s17 + $0x4ec] sm:$0xf0]  ;;  %v5053_v39 = vor.u32 %v6815_v27, %v5052_v26  ;;  %3663 = vmatpush.bf16.msra.mxu1 %v4797_v35 }
  0x45   : > { %v5420_v30 = vld [vmem:[%s7522_s17 + $0x5e0] sm:$0xf]  ;;  %v6907_v32 = vld [vmem:[%s7522_s17 + $0x5ec] sm:$0xf0]  ;;  %v5293_v40 = vor.u32 %v6875_v29, %v5292_v28  ;;  %3676 = vmatpush.bf16.msra.mxu2 %v4925_v36 }
  0x46   : > { %v5548_v33 = vld [vmem:[%s7522_s17 + $0x6e0] sm:$0xf]  ;;  %v6939_v34 = vld [vmem:[%s7522_s17 + $0x6ec] sm:$0xf0]  ;;  %v5421_v42 = vor.u32 %v6907_v32, %v5420_v30  ;;  %3689 = vmatpush.bf16.msra.mxu3 %v5053_v39 }
  0x47   : > { %v5676_v37 = vld [vmem:[%s7522_s17 + $0x7e0] sm:$0xf]  ;;  %v6971_v38 = vld [vmem:[%s7522_s17 + $0x7ec] sm:$0xf0]  ;;  %v5549_v43 = vor.u32 %v6939_v34, %v5548_v33  ;;  %3695 = vmatpush.bf16.msrb.mxu0 %v5293_v40 }
  0x48   : > { %v5276_v41 = vld [vmem:[%s7522_s17 + $0x4c0] sm:$0xf]  ;;  %v6871_v44 = vld [vmem:[%s7522_s17 + $0x4cc] sm:$0xf0]  ;;  %v5677_v47 = vor.u32 %v6971_v38, %v5676_v37  ;;  %3708 = vmatpush.bf16.msrb.mxu1 %v5421_v42 }
  0x49   : > { %v5404_v45 = vld [vmem:[%s7522_s17 + $0x5c0] sm:$0xf]  ;;  %v6903_v46 = vld [vmem:[%s7522_s17 + $0x5cc] sm:$0xf0]  ;;  %v5277_v54 = vor.u32 %v6871_v44, %v5276_v41  ;;  %3721 = vmatpush.bf16.msrb.mxu2 %v5549_v43 }
  0x4a   : > { %v5532_v48 = vld [vmem:[%s7522_s17 + $0x6c0] sm:$0xf]  ;;  %v6935_v49 = vld [vmem:[%s7522_s17 + $0x6cc] sm:$0xf0]  ;;  %v5405_v58 = vor.u32 %v6903_v46, %v5404_v45  ;;  %3734 = vmatpush.bf16.msrb.mxu3 %v5677_v47 }
  0x4b   : > { %v5660_v50 = vld [vmem:[%s7522_s17 + $0x7c0] sm:$0xf]  ;;  %v6967_v51 = vld [vmem:[%s7522_s17 + $0x7cc] sm:$0xf0]  ;;  %v5533_v59 = vor.u32 %v6935_v49, %v5532_v48  ;;  %3696 = vmatpush.bf16.msrb.mxu0 %v5277_v54 }
  0x4c   : > { %v5260_v52 = vld [vmem:[%s7522_s17 + $0x4a0] sm:$0xf]  ;;  %v6867_v53 = vld [vmem:[%s7522_s17 + $0x4ac] sm:$0xf0]  ;;  %v5661_v63 = vor.u32 %v6967_v51, %v5660_v50  ;;  %3709 = vmatpush.bf16.msrb.mxu1 %v5405_v58 }
  0x4d   : > { %v5388_v55 = vld [vmem:[%s7522_s17 + $0x5a0] sm:$0xf]  ;;  %v6899_v56 = vld [vmem:[%s7522_s17 + $0x5ac] sm:$0xf0]  ;;  %v5261_v8 = vor.u32 %v6867_v53, %v5260_v52  ;;  %3722 = vmatpush.bf16.msrb.mxu2 %v5533_v59 }
  0x4e   : > { %v5516_v57 = vld [vmem:[%s7522_s17 + $0x6a0] sm:$0xf]  ;;  %v6931_v60 = vld [vmem:[%s7522_s17 + $0x6ac] sm:$0xf0]  ;;  %v5389_v9 = vor.u32 %v6899_v56, %v5388_v55  ;;  %3735 = vmatpush.bf16.msrb.mxu3 %v5661_v63 }
  0x4f   : > { %v5644_v61 = vld [vmem:[%s7522_s17 + $0x7a0] sm:$0xf]  ;;  %v6963_v0 = vld [vmem:[%s7522_s17 + $0x7ac] sm:$0xf0]  ;;  %v5517_v13 = vor.u32 %v6931_v60, %v5516_v57  ;;  %3697 = vmatpush.bf16.msrb.mxu0 %v5261_v8 }
  0x50   : > { %v7628_v2 = vld [vmem:[%s8922_s1] sm:$0xff]  ;;  %v6863_v5 = vld [vmem:[%s7522_s17 + $0x48c] sm:$0xf0]  ;;  %v5645_v14 = vor.u32 %v6963_v0, %v5644_v61  ;;  %3710 = vmatpush.bf16.msrb.mxu1 %v5389_v9 }
  0x51   : > { %v7633_v3 = vld [vmem:[%s8923_s2] sm:$0xff]  ;;  %v405_v6 = vperm.slane %v7628_v2, 2  ;;  %v6895_v11 = vld [vmem:[%s7522_s17 + $0x58c] sm:$0xf0]  ;;  %v403_v19 = vperm.slane %v7628_v2, 0  ;;  %v406_v25 = vperm.slane %v7628_v2, 3  ;;  %3723 = vmatpush.bf16.msrb.mxu2 %v5517_v13 }
  0x52   : > { %v5244_v4 = vld [vmem:[%s7522_s17 + $0x480] sm:$0xf]  ;;  %v457_v7 = vperm.slane %v7633_v3, 2  ;;  %v6927_v16 = vld [vmem:[%s7522_s17 + $0x68c] sm:$0xf0]  ;;  %v455_v24 = vperm.slane %v7633_v3, 0  ;;  %3736 = vmatpush.bf16.msrb.mxu3 %v5645_v14 }
  0x53   : > { %v5372_v10 = vld [vmem:[%s7522_s17 + $0x580] sm:$0xf]  ;;  %v437_v17 = vmul.f32 %v405_v6, %v385_v1  ;;  %v5245_v20 = vor.u32 %v6863_v5, %v5244_v4  ;;  %v6959_v22 = vld [vmem:[%s7522_s17 + $0x78c] sm:$0xf0]  ;;  %v458_v29 = vperm.slane %v7633_v3, 3  ;;  %v404_v31 = vperm.slane %v7628_v2, 1 }
  0x54   : > { %v5500_v15 = vld [vmem:[%s7522_s17 + $0x680] sm:$0xf]  ;;  %v6859_v27 = vld [vmem:[%s7522_s17 + $0x46c] sm:$0xf0]  ;;  %v5373_v32 = vor.u32 %v6895_v11, %v5372_v10  ;;  %v438_v36 = vmul.f32 %v406_v25, %v386_v12  ;;  %v456_v37 = vperm.slane %v7633_v3, 1  ;;  %v378_v12 = vld [vmem:[%s8921_s0 + $0x18] sm:$0xff] }
  0x55   : > { %v375_v18 = vld [vmem:[%s8921_s0] sm:$0xff]  ;;  %v489_v28 = vadd.f32 %v457_v7, %v437_v17  ;;  %v6891_v34 = vld [vmem:[%s7522_s17 + $0x56c] sm:$0xf0]  ;;  %v5501_v38 = vor.u32 %v6927_v16, %v5500_v15  ;;  %3698 = vmatpush.bf16.msrb.mxu0 %v5245_v20 }
  0x56   : > { %v5628_v21 = vld [vmem:[%s7522_s17 + $0x780] sm:$0xf]  ;;  %v383_v23 = vunpack.c.l.bf16 %v375_v18  ;;  %v384_v30 = vunpack.c.h.bf16 %v375_v18  ;;  %v6923_v43 = vld [vmem:[%s7522_s17 + $0x66c] sm:$0xf0]  ;;  %v490_v46 = vadd.f32 %v458_v29, %v438_v36  ;;  %3711 = vmatpush.bf16.msrb.mxu1 %v5373_v32 }
  0x57   : > { %v5228_v26 = vld [vmem:[%s7522_s17 + $0x460] sm:$0xf]  ;;  %vm505_vm0 = vcmp.gt.f32.partialorder %v489_v28, 0.0  ;;  %v521_v39 = vmul.f32 0.2, %v489_v28  ;;  %v5629_v41 = vor.u32 %v6959_v22, %v5628_v21  ;;  %3724 = vmatpush.bf16.msrb.mxu2 %v5501_v38  ;;  %v7706_v18 = vld [vmem:[%s8921_s0 + $0x10] sm:$0xff] }
  0x58   : > { %v5356_v33 = vld [vmem:[%s7522_s17 + $0x560] sm:$0xf]  ;;  %v435_v35 = vmul.f32 %v403_v19, %v383_v23  ;;  %v436_v40 = vmul.f32 %v404_v31, %v384_v30  ;;  %v5229_v47 = vor.u32 %v6859_v27, %v5228_v26  ;;  %v6955_v49 = vld [vmem:[%s7522_s17 + $0x76c] sm:$0xf0]  ;;  %vm506_vm2 = vcmp.gt.f32.partialorder %v490_v46, 0.0 }
  0x59   : > { %v5484_v42 = vld [vmem:[%s7522_s17 + $0x660] sm:$0xf]  ;;  %v5357_v48 = vor.u32 %v6891_v34, %v5356_v33  ;;  %v537_v50 = vsel %vm505_vm0, %v489_v28, %v521_v39  ;;  %v6855_v52 = vld [vmem:[%s7522_s17 + $0x44c] sm:$0xf0]  ;;  %v522_v62 = vmul.f32 0.2, %v490_v46  ;;  %3737 = vmatpush.bf16.msrb.mxu3 %v5629_v41  ;;  %v389_v28 = vunpack.c.l.bf16 %v378_v12 }
  0x5a   : > { %v5612_v44 = vld [vmem:[%s7522_s17 + $0x760] sm:$0xf]  ;;  %v487_v45 = vadd.f32 %v455_v24, %v435_v35  ;;  %v488_v53 = vadd.f32 %v456_v37, %v436_v40  ;;  %v7664_v54 = vpack.c.bf16 %v537_v50, %v537_v50  ;;  %v7670_v56 = vld [vmem:[%s7522_s17 + $0x54c] sm:$0xf0]  ;;  %v5485_v60 = vor.u32 %v6923_v43, %v5484_v42  ;;  %3699 = vmatpush.bf16.msrb.mxu0 %v5229_v47 }
  0x5b   : > { %v5212_v51 = vld [vmem:[%s7522_s17 + $0x440] sm:$0xf]  ;;  %v6919_v58 = vld [vmem:[%s7522_s17 + $0x64c] sm:$0xf0]  ;;  %v5613_v0 = vor.u32 %v6955_v49, %v5612_v44  ;;  %v538_v8 = vsel %vm506_vm2, %v490_v46, %v522_v62  ;;  %3712 = vmatpush.bf16.msrb.mxu1 %v5357_v48  ;;  %v387_v34 = vunpack.c.l.bf16 %v7706_v18  ;;  %v390_v35 = vunpack.c.h.bf16 %v378_v12 }
  0x5c   : > { %v7667_v55 = vld [vmem:[%s7522_s17 + $0x540] sm:$0xf]  ;;  %vm503_vm1 = vcmp.gt.f32.partialorder %v487_v45, 0.0  ;;  %v519_v59 = vmul.f32 0.2, %v487_v45  ;;  %vm504_vm3 = vcmp.gt.f32.partialorder %v488_v53, 0.0  ;;  %3677 = vmatmul.bf16.vlgmr.msra.gmra.mxu2 %v7664_v54  ;;  %v5213_v13 = vor.u32 %v6855_v52, %v5212_v51 }
  0x5d   : > { %v7673_v57 = vld [vmem:[%s7522_s17 + $0x640] sm:$0xf]  ;;  %v520_v63 = vmul.f32 0.2, %v488_v53  ;;  %v6951_v1 = vld [vmem:[%s7522_s17 + $0x74c] sm:$0xf0]  ;;  %v7697_v14 = vpack.c.bf16 %v538_v8, %v538_v8  ;;  %3725 = vmatpush.bf16.msrb.mxu2 %v5485_v60  ;;  %v5341_v19 = vor.u32 %v7670_v56, %v7667_v55  ;;  %3738 = vmatpush.bf16.msrb.mxu3 %v5613_v0  ;;  %v388_v52 = vunpack.c.h.bf16 %v7706_v18 }
  0x5e   : > { %v5596_v61 = vld [vmem:[%s7522_s17 + $0x740] sm:$0xf]  ;;  %v535_v4 = vsel %vm503_vm1, %v487_v45, %v519_v59  ;;  %v7683_v6 = vld [vmem:[%s7522_s17 + $0x42c] sm:$0xf0]  ;;  %v5469_v20 = vor.u32 %v6919_v58, %v7673_v57  ;;  %3700 = vmatpush.bf16.msrb.mxu0 %v5213_v13  ;;  %v409_v40 = vperm.slane %v7628_v2, 6  ;;  %v461_v41 = vperm.slane %v7633_v3, 6 }
  0x5f   : > { %v7680_v5 = vld [vmem:[%s7522_s17 + $0x420] sm:$0xf]  ;;  %v7685_v7 = vpack.c.bf16 %v535_v4, %v535_v4  ;;  %v536_v9 = vsel %vm504_vm3, %v488_v53, %v520_v63  ;;  %v7692_v11 = vld [vmem:[%s7522_s17 + $0x52c] sm:$0xf0]  ;;  %v5597_v24 = vor.u32 %v6951_v1, %v5596_v61  ;;  %3690 = vmatmul.bf16.vlgmr.msra.gmra.mxu3 %v7697_v14  ;;  %3713 = vmatpush.bf16.msrb.mxu1 %v5341_v19  ;;  %v407_v43 = vperm.slane %v7628_v2, 4 }
  0x60   : > { %v7689_v10 = vld [vmem:[%s7522_s17 + $0x520] sm:$0xf]  ;;  %v7699_v15 = vpack.c.bf16 %v536_v9, %v536_v9  ;;  %v6915_v17 = vld [vmem:[%s7522_s17 + $0x62c] sm:$0xf0]  ;;  %v5197_v29 = vor.u32 %v7683_v6, %v7680_v5  ;;  %v459_v44 = vperm.slane %v7633_v3, 4  ;;  %v410_v45 = vperm.slane %v7628_v2, 7 }
  0x61   : > { %v5452_v16 = vld [vmem:[%s7522_s17 + $0x620] sm:$0xf]  ;;  %v6947_v22 = vld [vmem:[%s7522_s17 + $0x72c] sm:$0xf0]  ;;  %3651 = vmatmul.bf16.vlgmr.msra.gmra.mxu0 %v7685_v7  ;;  %v5325_v30 = vor.u32 %v7692_v11, %v7689_v10  ;;  %3726 = vmatpush.bf16.msrb.mxu2 %v5469_v20  ;;  %v462_v46 = vperm.slane %v7633_v3, 7  ;;  %v441_v51 = vmul.f32 %v409_v40, %v389_v28  ;;  %v439_v58 = vmul.f32 %v407_v43, %v387_v34 }
  0x62   : > { %v5580_v21 = vld [vmem:[%s7522_s17 + $0x720] sm:$0xf]  ;;  %v7718_v25 = vld [vmem:[%s7522_s17 + $0x40c] sm:$0xf0]  ;;  %3664 = vmatmul.bf16.vlgmr.msra.gmra.mxu1 %v7699_v15  ;;  %v5453_v36 = vor.u32 %v6915_v17, %v5452_v16  ;;  %3739 = vmatpush.bf16.msrb.mxu3 %v5597_v24  ;;  %v442_v59 = vmul.f32 %v410_v45, %v390_v35  ;;  %v408_v63 = vperm.slane %v7628_v2, 5  ;;  %v460_v0 = vperm.slane %v7633_v3, 5 }
  0x63   : > { %v7714_v23 = vld [vmem:[%s7522_s17 + $0x400] sm:$0xf]  ;;  %v7724_v27 = vld [vmem:[%s7522_s17 + $0x50c] sm:$0xf0]  ;;  %v5581_v37 = vor.u32 %v6947_v22, %v5580_v21  ;;  %3701 = vmatpush.bf16.msrb.mxu0 %v5197_v29  ;;  %v493_v62 = vadd.f32 %v461_v41, %v441_v51  ;;  %3714 = vmatpush.bf16.msrb.mxu1 %v5325_v30  ;;  %v491_v8 = vadd.f32 %v459_v44, %v439_v58 }
  0x64   : > { %v7721_v26 = vld [vmem:[%s7522_s17 + $0x500] sm:$0xf]  ;;  %v7736_v32 = vld [vmem:[%s7522_s17 + $0x60c] sm:$0xf0]  ;;  %v5181_v47 = vor.u32 %v7718_v25, %v7714_v23  ;;  %v494_v9 = vadd.f32 %v462_v46, %v442_v59  ;;  %v440_v2 = vmul.f32 %v408_v63, %v388_v52 }
  0x65   : > { %v7733_v31 = vld [vmem:[%s7522_s17 + $0x600] sm:$0xf]  ;;  %v6943_v38 = vld [vmem:[%s7522_s17 + $0x70c] sm:$0xf0]  ;;  %v5309_v48 = vor.u32 %v7724_v27, %v7721_v26  ;;  %3727 = vmatpush.bf16.msrb.mxu2 %v5453_v36  ;;  %vm509_vm4 = vcmp.gt.f32.partialorder %v493_v62, 0.0  ;;  %vm507_vm5 = vcmp.gt.f32.partialorder %v491_v8, 0.0 }
  0x66   : > { %v7739_v33 = vld [vmem:[%s7522_s17 + $0x700] sm:$0xf]  ;;  %v7003_v42 = vld [vmem:[%s7522_s17 + $0x8ec] sm:$0xf0]  ;;  %v5437_v53 = vor.u32 %v7736_v32, %v7733_v31  ;;  %3740 = vmatpush.bf16.msrb.mxu3 %v5581_v37  ;;  %v525_v12 = vmul.f32 0.2, %v493_v62  ;;  %v492_v21 = vadd.f32 %v460_v0, %v440_v2 }
  0x67   : > { %v5804_v39 = vld [vmem:[%s7522_s17 + $0x8e0] sm:$0xf]  ;;  %v7035_v50 = vld [vmem:[%s7522_s17 + $0x9ec] sm:$0xf0]  ;;  %v5565_v55 = vor.u32 %v6943_v38, %v7739_v33  ;;  %v523_v3 = vmul.f32 0.2, %v491_v8  ;;  %3702 = vmatpush.bf16.msrb.mxu0 %v5181_v47  ;;  %3715 = vmatpush.bf16.msrb.mxu1 %v5309_v48 }
  0x68   : > { %v5932_v49 = vld [vmem:[%s7522_s17 + $0x9e0] sm:$0xf]  ;;  %v7067_v57 = vld [vmem:[%s7522_s17 + $0xaec] sm:$0xf0]  ;;  %v5805_v60 = vor.u32 %v7003_v42, %v5804_v39  ;;  %vm510_vm6 = vcmp.gt.f32.partialorder %v494_v9, 0.0  ;;  %v541_v20 = vsel %vm509_vm4, %v493_v62, %v525_v12  ;;  %vm508_vm7 = vcmp.gt.f32.partialorder %v492_v21, 0.0 }
  0x69   : > { %v6060_v56 = vld [vmem:[%s7522_s17 + $0xae0] sm:$0xf]  ;;  %v5933_v1 = vor.u32 %v7035_v50, %v5932_v49  ;;  %v7099_v4 = vld [vmem:[%s7522_s17 + $0xbec] sm:$0xf0]  ;;  %v526_v13 = vmul.f32 0.2, %v494_v9  ;;  %3728 = vmatpush.bf16.msrb.mxu2 %v5437_v53  ;;  %v7775_v24 = vpack.c.bf16 %v541_v20, %v541_v20  ;;  %v539_v25 = vsel %vm507_vm5, %v491_v8, %v523_v3 }
  0x6a   : > { %v6188_v61 = vld [vmem:[%s7522_s17 + $0xbe0] sm:$0xf]  ;;  %v6999_v6 = vld [vmem:[%s7522_s17 + $0x8cc] sm:$0xf0]  ;;  %v6061_v10 = vor.u32 %v7067_v57, %v6060_v56  ;;  %3741 = vmatpush.bf16.msrb.mxu3 %v5565_v55  ;;  %v524_v28 = vmul.f32 0.2, %v492_v21  ;;  %v7783_v35 = vpack.c.bf16 %v539_v25, %v539_v25 }
  0x6b   : > { %v5788_v5 = vld [vmem:[%s7522_s17 + $0x8c0] sm:$0xf]  ;;  %v6189_v16 = vor.u32 %v7099_v4, %v6188_v61  ;;  %v7031_v17 = vld [vmem:[%s7522_s17 + $0x9cc] sm:$0xf0]  ;;  %3747 = vmatpush.bf16.msra.mxu0 %v5805_v60  ;;  %v542_v27 = vsel %vm510_vm6, %v494_v9, %v526_v13  ;;  %3760 = vmatpush.bf16.msra.mxu1 %v5933_v1 }
  0x6c   : > { %v5916_v11 = vld [vmem:[%s7522_s17 + $0x9c0] sm:$0xf]  ;;  %v7063_v19 = vld [vmem:[%s7522_s17 + $0xacc] sm:$0xf0]  ;;  %v5789_v26 = vor.u32 %v6999_v6, %v5788_v5  ;;  %3729 = vmatmul.bf16.vlgmr.msrb.gmra.mxu2 %v7775_v24  ;;  %v540_v39 = vsel %vm508_vm7, %v492_v21, %v524_v28  ;;  %v7789_v40 = vpack.c.bf16 %v542_v27, %v542_v27  ;;  %v7818_v5 = vld [vmem:[%s8922_s1 + $0x8] sm:$0xff] }
  0x6d   : > { %v6044_v18 = vld [vmem:[%s7522_s17 + $0xac0] sm:$0xf]  ;;  %v7095_v23 = vld [vmem:[%s7522_s17 + $0xbcc] sm:$0xf0]  ;;  %3773 = vmatpush.bf16.msra.mxu2 %v6061_v10  ;;  %v5917_v29 = vor.u32 %v7031_v17, %v5916_v11  ;;  %v7793_v43 = vpack.c.bf16 %v540_v39, %v540_v39  ;;  %v411_v17 = vperm.slane %v7818_v5, 0  ;;  %v413_v20 = vperm.slane %v7818_v5, 2 }
  0x6e   : > { %v6172_v22 = vld [vmem:[%s7522_s17 + $0xbc0] sm:$0xf]  ;;  %v6045_v30 = vor.u32 %v7063_v19, %v6044_v18  ;;  %v6995_v32 = vld [vmem:[%s7522_s17 + $0x8ac] sm:$0xf0]  ;;  %3786 = vmatpush.bf16.msra.mxu3 %v6189_v16  ;;  %v7828_v18 = vld [vmem:[%s8923_s2 + $0x8] sm:$0xff] }
  0x6f   : > { %v5772_v31 = vld [vmem:[%s7522_s17 + $0x8a0] sm:$0xf]  ;;  %v6173_v34 = vor.u32 %v7095_v23, %v6172_v22  ;;  %v7027_v36 = vld [vmem:[%s7522_s17 + $0x9ac] sm:$0xf0]  ;;  %3748 = vmatpush.bf16.msra.mxu0 %v5789_v26  ;;  %3761 = vmatpush.bf16.msra.mxu1 %v5917_v29  ;;  %v380_v19 = vld [vmem:[%s8921_s0 + $0x28] sm:$0xff]  ;;  %v463_v25 = vperm.slane %v7828_v18, 0 }
  0x70   : > { %v5900_v33 = vld [vmem:[%s7522_s17 + $0x9a0] sm:$0xf]  ;;  %v7059_v38 = vld [vmem:[%s7522_s17 + $0xaac] sm:$0xf0]  ;;  %v5773_v44 = vor.u32 %v6995_v32, %v5772_v31  ;;  %3742 = vmatmul.bf16.vlgmr.msrb.gmra.mxu3 %v7789_v40  ;;  %v393_v26 = vunpack.c.l.bf16 %v380_v19  ;;  %v465_v27 = vperm.slane %v7828_v18, 2  ;;  %v412_v31 = vperm.slane %v7818_v5, 1 }
  0x71   : > { %v6028_v37 = vld [vmem:[%s7522_s17 + $0xaa0] sm:$0xf]  ;;  %v7091_v42 = vld [vmem:[%s7522_s17 + $0xbac] sm:$0xf0]  ;;  %3774 = vmatpush.bf16.msra.mxu2 %v6045_v30  ;;  %v5901_v46 = vor.u32 %v7027_v36, %v5900_v33  ;;  %3703 = vmatmul.bf16.vlgmr.msrb.gmra.mxu0 %v7783_v35  ;;  %v464_v32 = vperm.slane %v7828_v18, 1  ;;  %v394_v33 = vunpack.c.h.bf16 %v380_v19  ;;  %v466_v39 = vperm.slane %v7828_v18, 3 }
  0x72   : > { %v6156_v41 = vld [vmem:[%s7522_s17 + $0xba0] sm:$0xf]  ;;  %v6029_v47 = vor.u32 %v7059_v38, %v6028_v37  ;;  %v6991_v48 = vld [vmem:[%s7522_s17 + $0x88c] sm:$0xf0]  ;;  %3787 = vmatpush.bf16.msra.mxu3 %v6173_v34  ;;  %3716 = vmatmul.bf16.vlgmr.msrb.gmra.mxu1 %v7793_v43  ;;  %v445_v37 = vmul.f32 %v413_v20, %v393_v26  ;;  %v414_v38 = vperm.slane %v7818_v5, 3 }
  0x73   : > { %v5756_v45 = vld [vmem:[%s7522_s17 + $0x880] sm:$0xf]  ;;  %v7023_v50 = vld [vmem:[%s7522_s17 + $0x98c] sm:$0xf0]  ;;  %v6157_v51 = vor.u32 %v7091_v42, %v6156_v41  ;;  %3749 = vmatpush.bf16.msra.mxu0 %v5773_v44  ;;  %3762 = vmatpush.bf16.msra.mxu1 %v5901_v46 }
  0x74   : > { %v5884_v49 = vld [vmem:[%s7522_s17 + $0x980] sm:$0xf]  ;;  %v7055_v53 = vld [vmem:[%s7522_s17 + $0xa8c] sm:$0xf0]  ;;  %v5757_v59 = vor.u32 %v6991_v48, %v5756_v45 }
  0x75   : > { %v6012_v52 = vld [vmem:[%s7522_s17 + $0xa80] sm:$0xf]  ;;  %v7087_v56 = vld [vmem:[%s7522_s17 + $0xb8c] sm:$0xf0]  ;;  %3775 = vmatpush.bf16.msra.mxu2 %v6029_v47  ;;  %v5885_v63 = vor.u32 %v7023_v50, %v5884_v49 }
  0x76   : > { %v6140_v55 = vld [vmem:[%s7522_s17 + $0xb80] sm:$0xf]  ;;  %v6987_v60 = vld [vmem:[%s7522_s17 + $0x86c] sm:$0xf0]  ;;  %v6013_v0 = vor.u32 %v7055_v53, %v6012_v52  ;;  %3788 = vmatpush.bf16.msra.mxu3 %v6157_v51  ;;  %v446_v51 = vmul.f32 %v414_v38, %v394_v33 }
  0x77   : > { %v5740_v57 = vld [vmem:[%s7522_s17 + $0x860] sm:$0xf]  ;;  %v7019_v62 = vld [vmem:[%s7522_s17 + $0x96c] sm:$0xf0]  ;;  %v6141_v6 = vor.u32 %v7087_v56, %v6140_v55  ;;  %3750 = vmatpush.bf16.msra.mxu0 %v5757_v59  ;;  %3763 = vmatpush.bf16.msra.mxu1 %v5885_v63 }
  0x78   : > { %v379_v58 = vld [vmem:[%s8921_s0 + $0x20] sm:$0xff]  ;;  %v7051_v4 = vld [vmem:[%s7522_s17 + $0xa6c] sm:$0xf0]  ;;  %v5741_v11 = vor.u32 %v6987_v60, %v5740_v57  ;;  %v497_v57 = vadd.f32 %v465_v27, %v445_v37 }
  0x79   : > { %v5868_v61 = vld [vmem:[%s7522_s17 + $0x960] sm:$0xf]  ;;  %v7083_v9 = vld [vmem:[%s7522_s17 + $0xb6c] sm:$0xf0]  ;;  %v391_v10 = vunpack.c.l.bf16 %v379_v58  ;;  %v392_v2 = vunpack.c.h.bf16 %v379_v58  ;;  %3776 = vmatpush.bf16.msra.mxu2 %v6013_v0 }
  0x7a   : > { %v5996_v1 = vld [vmem:[%s7522_s17 + $0xa60] sm:$0xf]  ;;  %v5869_v3 = vor.u32 %v7019_v62, %v5868_v61  ;;  %v6983_v16 = vld [vmem:[%s7522_s17 + $0x84c] sm:$0xf0]  ;;  %3789 = vmatpush.bf16.msra.mxu3 %v6141_v6  ;;  %v498_v62 = vadd.f32 %v466_v39, %v446_v51  ;;  %vm513_vm9 = vcmp.gt.f32.partialorder %v497_v57, 0.0 }
  0x7b   : > { %v6124_v8 = vld [vmem:[%s7522_s17 + $0xb60] sm:$0xf]  ;;  %v5997_v13 = vor.u32 %v7051_v4, %v5996_v1  ;;  %v7015_v23 = vld [vmem:[%s7522_s17 + $0x94c] sm:$0xf0]  ;;  %v443_v30 = vmul.f32 %v411_v17, %v391_v10  ;;  %3751 = vmatpush.bf16.msra.mxu0 %v5741_v11  ;;  %v444_v45 = vmul.f32 %v412_v31, %v392_v2  ;;  %v529_v17 = vmul.f32 0.2, %v497_v57 }
  0x7c   : > { %v5724_v12 = vld [vmem:[%s7522_s17 + $0x840] sm:$0xf]  ;;  %v6125_v21 = vor.u32 %v7083_v9, %v6124_v8  ;;  %v7047_v29 = vld [vmem:[%s7522_s17 + $0xa4c] sm:$0xf0]  ;;  %3764 = vmatpush.bf16.msra.mxu1 %v5869_v3  ;;  %vm514_vm11 = vcmp.gt.f32.partialorder %v498_v62, 0.0 }
  0x7d   : > { %v5852_v22 = vld [vmem:[%s7522_s17 + $0x940] sm:$0xf]  ;;  %v7079_v36 = vld [vmem:[%s7522_s17 + $0xb4c] sm:$0xf0]  ;;  %v5725_v41 = vor.u32 %v6983_v16, %v5724_v12  ;;  %3777 = vmatpush.bf16.msra.mxu2 %v5997_v13  ;;  %v495_v50 = vadd.f32 %v463_v25, %v443_v30  ;;  %v496_v58 = vadd.f32 %v464_v32, %v444_v45  ;;  %v545_v33 = vsel %vm513_vm9, %v497_v57, %v529_v17 }
  0x7e   : > { %v5980_v28 = vld [vmem:[%s7522_s17 + $0xa40] sm:$0xf]  ;;  %v5853_v42 = vor.u32 %v7015_v23, %v5852_v22  ;;  %v6979_v47 = vld [vmem:[%s7522_s17 + $0x82c] sm:$0xf0]  ;;  %3790 = vmatpush.bf16.msra.mxu3 %v6125_v21  ;;  %v530_v21 = vmul.f32 0.2, %v498_v62 }
  0x7f   : > { %v6108_v34 = vld [vmem:[%s7522_s17 + $0xb40] sm:$0xf]  ;;  %v5981_v46 = vor.u32 %v7047_v29, %v5980_v28  ;;  %v7011_v49 = vld [vmem:[%s7522_s17 + $0x92c] sm:$0xf0]  ;;  %3752 = vmatpush.bf16.msra.mxu0 %v5725_v41  ;;  %v527_v3 = vmul.f32 0.2, %v495_v50 }
  0x80   : > { %v5708_v44 = vld [vmem:[%s7522_s17 + $0x820] sm:$0xf]  ;;  %v6109_v52 = vor.u32 %v7079_v36, %v6108_v34  ;;  %v7043_v55 = vld [vmem:[%s7522_s17 + $0xa2c] sm:$0xf0]  ;;  %3765 = vmatpush.bf16.msra.mxu1 %v5853_v42  ;;  %vm511_vm8 = vcmp.gt.f32.partialorder %v495_v50, 0.0  ;;  %vm512_vm10 = vcmp.gt.f32.partialorder %v496_v58, 0.0  ;;  %v546_v38 = vsel %vm514_vm11, %v498_v62, %v530_v21 }
  0x81   : > { %v5836_v48 = vld [vmem:[%s7522_s17 + $0x920] sm:$0xf]  ;;  %v7075_v59 = vld [vmem:[%s7522_s17 + $0xb2c] sm:$0xf0]  ;;  %v5709_v63 = vor.u32 %v6979_v47, %v5708_v44  ;;  %3778 = vmatpush.bf16.msra.mxu2 %v5981_v46  ;;  %v528_v19 = vmul.f32 0.2, %v496_v58  ;;  %v543_v30 = vsel %vm511_vm8, %v495_v50, %v527_v3 }
  0x82   : > { %v5964_v53 = vld [vmem:[%s7522_s17 + $0xa20] sm:$0xf]  ;;  %v6975_v61 = vld [vmem:[%s7522_s17 + $0x80c] sm:$0xf0]  ;;  %v5837_v8 = vor.u32 %v7011_v49, %v5836_v48  ;;  %3791 = vmatpush.bf16.msra.mxu3 %v6109_v52  ;;  %v7876_v45 = vpack.c.bf16 %v543_v30, %v543_v30  ;;  %v7881_v49 = vpack.c.bf16 %v545_v33, %v545_v33  ;;  %v415_v33 = vperm.slane %v7818_v5, 4 }
  0x83   : > { %v6092_v56 = vld [vmem:[%s7522_s17 + $0xb20] sm:$0xf]  ;;  %v7007_v1 = vld [vmem:[%s7522_s17 + $0x90c] sm:$0xf0]  ;;  %v5965_v9 = vor.u32 %v7043_v55, %v5964_v53  ;;  %3753 = vmatpush.bf16.msra.mxu0 %v5709_v63  ;;  %v544_v34 = vsel %vm512_vm10, %v496_v58, %v528_v19  ;;  %v7887_v53 = vpack.c.bf16 %v546_v38, %v546_v38 }
  0x84   : > { %v5692_v60 = vld [vmem:[%s7522_s17 + $0x800] sm:$0xf]  ;;  %v7039_v6 = vld [vmem:[%s7522_s17 + $0xa0c] sm:$0xf0]  ;;  %v6093_v13 = vor.u32 %v7075_v59, %v6092_v56  ;;  %3766 = vmatpush.bf16.msra.mxu1 %v5837_v8  ;;  %v7883_v50 = vpack.c.bf16 %v544_v34, %v544_v34 }
  0x85   : > { %v5820_v0 = vld [vmem:[%s7522_s17 + $0x900] sm:$0xf]  ;;  %v7071_v11 = vld [vmem:[%s7522_s17 + $0xb0c] sm:$0xf0]  ;;  %v5693_v22 = vor.u32 %v6975_v61, %v5692_v60  ;;  %3779 = vmatpush.bf16.msra.mxu2 %v5965_v9  ;;  %v382_v9 = vld [vmem:[%s8921_s0 + $0x38] sm:$0xff] }
  0x86   : > { %v5948_v4 = vld [vmem:[%s7522_s17 + $0xa00] sm:$0xf]  ;;  %v7131_v2 = vld [vmem:[%s7522_s17 + $0xcec] sm:$0xf0]  ;;  %v5821_v26 = vor.u32 %v7007_v1, %v5820_v0  ;;  %3792 = vmatpush.bf16.msra.mxu3 %v6093_v13  ;;  %v397_v34 = vunpack.c.l.bf16 %v382_v9 }
  0x87   : > { %v6076_v10 = vld [vmem:[%s7522_s17 + $0xb00] sm:$0xf]  ;;  %v7163_v20 = vld [vmem:[%s7522_s17 + $0xdec] sm:$0xf0]  ;;  %v5949_v27 = vor.u32 %v7039_v6, %v5948_v4  ;;  %3754 = vmatpush.bf16.msra.mxu0 %v5693_v22 }
  0x88   : > { %v6316_v12 = vld [vmem:[%s7522_s17 + $0xce0] sm:$0xf]  ;;  %v7195_v25 = vld [vmem:[%s7522_s17 + $0xeec] sm:$0xf0]  ;;  %v6077_v31 = vor.u32 %v7071_v11, %v6076_v10  ;;  %3767 = vmatpush.bf16.msra.mxu1 %v5821_v26 }
  0x89   : > { %v6444_v16 = vld [vmem:[%s7522_s17 + $0xde0] sm:$0xf]  ;;  %v7227_v29 = vld [vmem:[%s7522_s17 + $0xfec] sm:$0xf0]  ;;  %v6317_v32 = vor.u32 %v7131_v2, %v6316_v12  ;;  %3780 = vmatpush.bf16.msra.mxu2 %v5949_v27 }
  0x8a   : > { %v6572_v23 = vld [vmem:[%s7522_s17 + $0xee0] sm:$0xf]  ;;  %v6445_v36 = vor.u32 %v7163_v20, %v6444_v16  ;;  %v7127_v41 = vld [vmem:[%s7522_s17 + $0xccc] sm:$0xf0]  ;;  %3793 = vmatpush.bf16.msra.mxu3 %v6077_v31  ;;  %3755 = vmatmul.bf16.vlgmr.msra.gmra.mxu0 %v7876_v45 }
  0x8b   : > { %v6700_v28 = vld [vmem:[%s7522_s17 + $0xfe0] sm:$0xf]  ;;  %v6573_v37 = vor.u32 %v7195_v25, %v6572_v23  ;;  %v7159_v46 = vld [vmem:[%s7522_s17 + $0xdcc] sm:$0xf0]  ;;  %3799 = vmatpush.bf16.msrb.mxu0 %v6317_v32  ;;  %3768 = vmatmul.bf16.vlgmr.msra.gmra.mxu1 %v7883_v50 }
  0x8c   : > { %v6300_v39 = vld [vmem:[%s7522_s17 + $0xcc0] sm:$0xf]  ;;  %v6701_v44 = vor.u32 %v7227_v29, %v6700_v28  ;;  %v7191_v48 = vld [vmem:[%s7522_s17 + $0xecc] sm:$0xf0]  ;;  %3812 = vmatpush.bf16.msrb.mxu1 %v6445_v36  ;;  %3781 = vmatmul.bf16.vlgmr.msra.gmra.mxu2 %v7881_v49 }
  0x8d   : > { %v6428_v42 = vld [vmem:[%s7522_s17 + $0xdc0] sm:$0xf]  ;;  %v7223_v52 = vld [vmem:[%s7522_s17 + $0xfcc] sm:$0xf0]  ;;  %v6301_v55 = vor.u32 %v7127_v41, %v6300_v39  ;;  %3825 = vmatpush.bf16.msrb.mxu2 %v6573_v37  ;;  %3794 = vmatmul.bf16.vlgmr.msra.gmra.mxu3 %v7887_v53  ;;  %v417_v39 = vperm.slane %v7818_v5, 6 }
  0x8e   : > { %v6556_v47 = vld [vmem:[%s7522_s17 + $0xec0] sm:$0xf]  ;;  %v6429_v56 = vor.u32 %v7159_v46, %v6428_v42  ;;  %v7123_v59 = vld [vmem:[%s7522_s17 + $0xcac] sm:$0xf0]  ;;  %3838 = vmatpush.bf16.msrb.mxu3 %v6701_v44  ;;  %v416_v42 = vperm.slane %v7818_v5, 5  ;;  %v398_v44 = vunpack.c.h.bf16 %v382_v9  ;;  %v418_v46 = vperm.slane %v7818_v5, 7 }
  0x8f   : > { %v6684_v51 = vld [vmem:[%s7522_s17 + $0xfc0] sm:$0xf]  ;;  %v6557_v57 = vor.u32 %v7191_v48, %v6556_v47  ;;  %v7155_v62 = vld [vmem:[%s7522_s17 + $0xdac] sm:$0xf0]  ;;  %3800 = vmatpush.bf16.msrb.mxu0 %v6301_v55  ;;  %v470_v9 = vperm.slane %v7828_v18, 7 }
  0x90   : > { %v6284_v58 = vld [vmem:[%s7522_s17 + $0xca0] sm:$0xf]  ;;  %v6685_v61 = vor.u32 %v7223_v52, %v6684_v51  ;;  %v7187_v0 = vld [vmem:[%s7522_s17 + $0xeac] sm:$0xf0]  ;;  %3813 = vmatpush.bf16.msrb.mxu1 %v6429_v56 }
  0x91   : > { %v6412_v60 = vld [vmem:[%s7522_s17 + $0xda0] sm:$0xf]  ;;  %v7219_v4 = vld [vmem:[%s7522_s17 + $0xfac] sm:$0xf0]  ;;  %v6285_v6 = vor.u32 %v7123_v59, %v6284_v58  ;;  %3826 = vmatpush.bf16.msrb.mxu2 %v6557_v57 }
  0x92   : > { %v6540_v63 = vld [vmem:[%s7522_s17 + $0xea0] sm:$0xf]  ;;  %v381_v8 = vld [vmem:[%s8921_s0 + $0x30] sm:$0xff]  ;;  %v6413_v10 = vor.u32 %v7155_v62, %v6412_v60  ;;  %3839 = vmatpush.bf16.msrb.mxu3 %v6685_v61  ;;  %v467_v60 = vperm.slane %v7828_v18, 4  ;;  %v449_v62 = vmul.f32 %v417_v39, %v397_v34  ;;  %v6745_v39 = vld [vmem:[%s7522_s17 + $0xe4] sm:$0xf] }
  0x93   : > { %v6668_v1 = vld [vmem:[%s7522_s17 + $0xfa0] sm:$0xf]  ;;  %v6541_v11 = vor.u32 %v7187_v0, %v6540_v63  ;;  %v7119_v2 = vld [vmem:[%s7522_s17 + $0xc8c] sm:$0xf0]  ;;  %3801 = vmatpush.bf16.msrb.mxu0 %v6285_v6  ;;  %v395_v28 = vunpack.c.l.bf16 %v381_v8  ;;  %v396_v41 = vunpack.c.h.bf16 %v381_v8  ;;  %v469_v63 = vperm.slane %v7828_v18, 6 }
  0x94   : > { %v6268_v12 = vld [vmem:[%s7522_s17 + $0xc80] sm:$0xf]  ;;  %v6669_v13 = vor.u32 %v7219_v4, %v6668_v1  ;;  %v7151_v16 = vld [vmem:[%s7522_s17 + $0xd8c] sm:$0xf0]  ;;  %3814 = vmatpush.bf16.msrb.mxu1 %v6413_v10  ;;  %v468_v1 = vperm.slane %v7828_v18, 5  ;;  %v450_v8 = vmul.f32 %v418_v46, %v398_v44 }
  0x95   : > { %v6396_v3 = vld [vmem:[%s7522_s17 + $0xd80] sm:$0xf]  ;;  %v7183_v19 = vld [vmem:[%s7522_s17 + $0xe8c] sm:$0xf0]  ;;  %v6269_v23 = vor.u32 %v7119_v2, %v6268_v12  ;;  %3827 = vmatpush.bf16.msrb.mxu2 %v6541_v11  ;;  %v447_v59 = vmul.f32 %v415_v33, %v395_v28  ;;  %v448_v0 = vmul.f32 %v416_v42, %v396_v41  ;;  %v4782_v41 = vld [vmem:[%s7522_s17 + $0xf0] sm:$0xf0] }
  0x96   : > { %v6524_v17 = vld [vmem:[%s7522_s17 + $0xe80] sm:$0xf]  ;;  %v7215_v21 = vld [vmem:[%s7522_s17 + $0xf8c] sm:$0xf0]  ;;  %v6397_v29 = vor.u32 %v7151_v16, %v6396_v3  ;;  %3840 = vmatpush.bf16.msrb.mxu3 %v6669_v13  ;;  %v502_v28 = vadd.f32 %v470_v9, %v450_v8  ;;  %v6777_v46 = vld [vmem:[%s7522_s17 + $0x1e4] sm:$0xf] }
  0x97   : > { %v6652_v20 = vld [vmem:[%s7522_s17 + $0xf80] sm:$0xf]  ;;  %v7115_v25 = vld [vmem:[%s7522_s17 + $0xc6c] sm:$0xf0]  ;;  %v6525_v30 = vor.u32 %v7183_v19, %v6524_v17  ;;  %3802 = vmatpush.bf16.msrb.mxu0 %v6269_v23  ;;  %v499_v17 = vadd.f32 %v467_v60, %v447_v59  ;;  %v500_v23 = vadd.f32 %v468_v1, %v448_v0  ;;  %v6841_v60 = vld [vmem:[%s7522_s17 + $0x3e4] sm:$0xf] }
  0x98   : > { %v6252_v22 = vld [vmem:[%s7522_s17 + $0xc60] sm:$0xf]  ;;  %v7147_v27 = vld [vmem:[%s7522_s17 + $0xd6c] sm:$0xf0]  ;;  %v6653_v36 = vor.u32 %v7215_v21, %v6652_v20  ;;  %3815 = vmatpush.bf16.msrb.mxu1 %v6397_v29  ;;  %vm518_vm15 = vcmp.gt.f32.partialorder %v502_v28, 0.0 }
  0x99   : > { %v6380_v26 = vld [vmem:[%s7522_s17 + $0xd60] sm:$0xf]  ;;  %v7179_v32 = vld [vmem:[%s7522_s17 + $0xe6c] sm:$0xf0]  ;;  %v6253_v47 = vor.u32 %v7115_v25, %v6252_v22  ;;  %3828 = vmatpush.bf16.msrb.mxu2 %v6525_v30  ;;  %v501_v22 = vadd.f32 %v469_v63, %v449_v62  ;;  %v531_v42 = vmul.f32 0.2, %v499_v17  ;;  %v4785_v63 = vor.u32 %v6745_v39, %v4782_v41 }
  0x9a   : > { %v6508_v31 = vld [vmem:[%s7522_s17 + $0xe60] sm:$0xf]  ;;  %v7211_v38 = vld [vmem:[%s7522_s17 + $0xf6c] sm:$0xf0]  ;;  %v6381_v48 = vor.u32 %v7147_v27, %v6380_v26  ;;  %3841 = vmatpush.bf16.msrb.mxu3 %v6653_v36  ;;  %vm515_vm12 = vcmp.gt.f32.partialorder %v499_v17, 0.0  ;;  %vm516_vm14 = vcmp.gt.f32.partialorder %v500_v23, 0.0 }
  0x9b   : > { %v6636_v37 = vld [vmem:[%s7522_s17 + $0xf60] sm:$0xf]  ;;  %v7111_v52 = vld [vmem:[%s7522_s17 + $0xc4c] sm:$0xf0]  ;;  %v6509_v55 = vor.u32 %v7179_v32, %v6508_v31  ;;  %3803 = vmatpush.bf16.msrb.mxu0 %v6253_v47  ;;  %v533_v47 = vmul.f32 0.2, %v501_v22 }
  0x9c   : > { %v6236_v51 = vld [vmem:[%s7522_s17 + $0xc40] sm:$0xf]  ;;  %v6637_v56 = vor.u32 %v7211_v38, %v6636_v37  ;;  %v7143_v58 = vld [vmem:[%s7522_s17 + $0xd4c] sm:$0xf0]  ;;  %3816 = vmatpush.bf16.msrb.mxu1 %v6381_v48  ;;  %v532_v48 = vmul.f32 0.2, %v500_v23 }
  0x9d   : > { %v6364_v57 = vld [vmem:[%s7522_s17 + $0xd40] sm:$0xf]  ;;  %v7175_v61 = vld [vmem:[%s7522_s17 + $0xe4c] sm:$0xf0]  ;;  %v6237_v10 = vor.u32 %v7111_v52, %v6236_v51  ;;  %3829 = vmatpush.bf16.msrb.mxu2 %v6509_v55  ;;  %v4910_v51 = vld [vmem:[%s7522_s17 + $0x1f0] sm:$0xf0] }
  0x9e   : > { %v6492_v5 = vld [vmem:[%s7522_s17 + $0xe40] sm:$0xf]  ;;  %v7207_v6 = vld [vmem:[%s7522_s17 + $0xf4c] sm:$0xf0]  ;;  %v6365_v12 = vor.u32 %v7143_v58, %v6364_v57  ;;  %3842 = vmatpush.bf16.msrb.mxu3 %v6637_v56  ;;  %vm517_vm13 = vcmp.gt.f32.partialorder %v501_v22, 0.0  ;;  %v548_v1 = vsel %vm516_vm14, %v500_v23, %v532_v48 }
  0x9f   : > { %v6620_v4 = vld [vmem:[%s7522_s17 + $0xf40] sm:$0xf]  ;;  %v6493_v2 = vor.u32 %v7175_v61, %v6492_v5  ;;  %v7107_v3 = vld [vmem:[%s7522_s17 + $0xc2c] sm:$0xf0]  ;;  %3804 = vmatpush.bf16.msrb.mxu0 %v6237_v10  ;;  %v534_v52 = vmul.f32 0.2, %v502_v28  ;;  %v547_v61 = vsel %vm515_vm12, %v499_v17, %v531_v42  ;;  %v549_v0 = vsel %vm517_vm13, %v501_v22, %v533_v47 }
  0xa0   : > { %v6220_v11 = vld [vmem:[%s7522_s17 + $0xc20] sm:$0xf]  ;;  %v7139_v16 = vld [vmem:[%s7522_s17 + $0xd2c] sm:$0xf0]  ;;  %v6621_v18 = vor.u32 %v7207_v6, %v6620_v4  ;;  %3817 = vmatpush.bf16.msrb.mxu1 %v6365_v12  ;;  %v6809_v56 = vld [vmem:[%s7522_s17 + $0x2e4] sm:$0xf]  ;;  %v4913_v4 = vor.u32 %v6777_v46, %v4910_v51  ;;  %v7974_v17 = vpack.c.bf16 %v549_v0, %v549_v0 }
  0xa1   : > { %v6348_v13 = vld [vmem:[%s7522_s17 + $0xd20] sm:$0xf]  ;;  %v7171_v20 = vld [vmem:[%s7522_s17 + $0xe2c] sm:$0xf0]  ;;  %v6221_v29 = vor.u32 %v7107_v3, %v6220_v11  ;;  %3830 = vmatpush.bf16.msrb.mxu2 %v6493_v2  ;;  %v5038_v57 = vld [vmem:[%s7522_s17 + $0x2f0] sm:$0xf0]  ;;  %v550_v8 = vsel %vm518_vm15, %v502_v28, %v534_v52  ;;  %v7969_v2 = vpack.c.bf16 %v547_v61, %v547_v61 }
  0xa2   : > { %v6476_v19 = vld [vmem:[%s7522_s17 + $0xe20] sm:$0xf]  ;;  %v7203_v25 = vld [vmem:[%s7522_s17 + $0xf2c] sm:$0xf0]  ;;  %v6349_v34 = vor.u32 %v7139_v16, %v6348_v13  ;;  %3843 = vmatpush.bf16.msrb.mxu3 %v6621_v18  ;;  %v5166_v5 = vld [vmem:[%s7522_s17 + $0x3f0] sm:$0xf0]  ;;  %v5041_v6 = vor.u32 %v6809_v56, %v5038_v57  ;;  %v7976_v18 = vpack.c.bf16 %v548_v1, %v548_v1 }
  0xa3   : > { %v6604_v21 = vld [vmem:[%s7522_s17 + $0xf20] sm:$0xf]  ;;  %v7103_v27 = vld [vmem:[%s7522_s17 + $0xc0c] sm:$0xf0]  ;;  %v6477_v36 = vor.u32 %v7171_v20, %v6476_v19  ;;  %3805 = vmatpush.bf16.msrb.mxu0 %v6221_v29  ;;  %v6741_v9 = vld [vmem:[%s7522_s17 + $0xc4] sm:$0xf]  ;;  %v5169_v12 = vor.u32 %v6841_v60, %v5166_v5 }
  0xa4   : > { %v6204_v26 = vld [vmem:[%s7522_s17 + $0xc00] sm:$0xf]  ;;  %v7135_v31 = vld [vmem:[%s7522_s17 + $0xd0c] sm:$0xf0]  ;;  %v6605_v44 = vor.u32 %v7203_v25, %v6604_v21  ;;  %3818 = vmatpush.bf16.msrb.mxu1 %v6349_v34  ;;  %v4766_v10 = vld [vmem:[%s7522_s17 + $0xd0] sm:$0xf0]  ;;  %v7980_v21 = vpack.c.bf16 %v550_v8, %v550_v8 }
  0xa5   : > { %v6332_v30 = vld [vmem:[%s7522_s17 + $0xd00] sm:$0xf]  ;;  %v7167_v33 = vld [vmem:[%s7522_s17 + $0xe0c] sm:$0xf0]  ;;  %v6205_v55 = vor.u32 %v7103_v27, %v6204_v26  ;;  %3831 = vmatpush.bf16.msrb.mxu2 %v6477_v36  ;;  %v6773_v11 = vld [vmem:[%s7522_s17 + $0x1c4] sm:$0xf]  ;;  %v4769_v22 = vor.u32 %v6741_v9, %v4766_v10 }
  0xa6   : > { %v6460_v32 = vld [vmem:[%s7522_s17 + $0xe00] sm:$0xf]  ;;  %v7199_v38 = vld [vmem:[%s7522_s17 + $0xf0c] sm:$0xf0]  ;;  %v6333_v58 = vor.u32 %v7135_v31, %v6332_v30  ;;  %3844 = vmatpush.bf16.msrb.mxu3 %v6605_v44  ;;  %v4894_v3 = vld [vmem:[%s7522_s17 + $0x1d0] sm:$0xf0] }
  0xa7   : > { %v6588_v37 = vld [vmem:[%s7522_s17 + $0xf00] sm:$0xf]  ;;  %v6461_v59 = vor.u32 %v7167_v33, %v6460_v32  ;;  %3806 = vmatpush.bf16.msrb.mxu0 %v6205_v55  ;;  %v6805_v13 = vld [vmem:[%s7522_s17 + $0x2c4] sm:$0xf]  ;;  %v5022_v16 = vld [vmem:[%s7522_s17 + $0x2d0] sm:$0xf0]  ;;  %v4897_v23 = vor.u32 %v6773_v11, %v4894_v3 }
  0xa8   : > { %v6589_v62 = vor.u32 %v7199_v38, %v6588_v37  ;;  %3819 = vmatpush.bf16.msrb.mxu1 %v6333_v58  ;;  %v6837_v19 = vld [vmem:[%s7522_s17 + $0x3c4] sm:$0xf]  ;;  %v5150_v20 = vld [vmem:[%s7522_s17 + $0x3d0] sm:$0xf0]  ;;  %v5025_v25 = vor.u32 %v6805_v13, %v5022_v16 }
  0xa9   : > { %3832 = vmatpush.bf16.msrb.mxu2 %v6461_v59  ;;  %v6737_v26 = vld [vmem:[%s7522_s17 + $0xa4] sm:$0xf]  ;;  %v4750_v27 = vld [vmem:[%s7522_s17 + $0xb0] sm:$0xf0]  ;;  %v5153_v29 = vor.u32 %v6837_v19, %v5150_v20 }
  0xaa   : > { %3845 = vmatpush.bf16.msrb.mxu3 %v6589_v62  ;;  %v6769_v28 = vld [vmem:[%s7522_s17 + $0x1a4] sm:$0xf]  ;;  %3807 = vmatmul.bf16.vlgmr.msrb.gmra.mxu0 %v7969_v2  ;;  %v4878_v30 = vld [vmem:[%s7522_s17 + $0x1b0] sm:$0xf0]  ;;  %v4753_v36 = vor.u32 %v6737_v26, %v4750_v27 }
  0xab   : > { %3851 = vmatpush.bf16.msra.mxu0 %v4785_v63  ;;  %v6801_v31 = vld [vmem:[%s7522_s17 + $0x2a4] sm:$0xf]  ;;  %v5006_v32 = vld [vmem:[%s7522_s17 + $0x2b0] sm:$0xf0]  ;;  %3820 = vmatmul.bf16.vlgmr.msrb.gmra.mxu1 %v7976_v18  ;;  %v4881_v37 = vor.u32 %v6769_v28, %v4878_v30 }
  0xac   : > { %3864 = vmatpush.bf16.msra.mxu1 %v4913_v4  ;;  %3833 = vmatmul.bf16.vlgmr.msrb.gmra.mxu2 %v7974_v17  ;;  %v6833_v33 = vld [vmem:[%s7522_s17 + $0x3a4] sm:$0xf]  ;;  %v5134_v34 = vld [vmem:[%s7522_s17 + $0x3b0] sm:$0xf0]  ;;  %v5009_v38 = vor.u32 %v6801_v31, %v5006_v32 }
  0xad   : > { %3877 = vmatpush.bf16.msra.mxu2 %v5041_v6  ;;  %3846 = vmatmul.bf16.vlgmr.msrb.gmra.mxu3 %v7980_v21  ;;  %v6733_v39 = vld [vmem:[%s7522_s17 + $0x84] sm:$0xf]  ;;  %v4734_v41 = vld [vmem:[%s7522_s17 + $0x90] sm:$0xf0]  ;;  %v5137_v44 = vor.u32 %v6833_v33, %v5134_v34 }
  0xae   : > { %3890 = vmatpush.bf16.msra.mxu3 %v5169_v12  ;;  %v6765_v42 = vld [vmem:[%s7522_s17 + $0x184] sm:$0xf]  ;;  %v4862_v46 = vld [vmem:[%s7522_s17 + $0x190] sm:$0xf0]  ;;  %v4737_v55 = vor.u32 %v6733_v39, %v4734_v41 }
  0xaf   : > { %3852 = vmatpush.bf16.msra.mxu0 %v4769_v22  ;;  %v6797_v47 = vld [vmem:[%s7522_s17 + $0x284] sm:$0xf]  ;;  %v4990_v48 = vld [vmem:[%s7522_s17 + $0x290] sm:$0xf0]  ;;  %v4865_v56 = vor.u32 %v6765_v42, %v4862_v46 }
  0xb0   : > { %3865 = vmatpush.bf16.msra.mxu1 %v4897_v23  ;;  %v6829_v51 = vld [vmem:[%s7522_s17 + $0x384] sm:$0xf]  ;;  %v5118_v52 = vld [vmem:[%s7522_s17 + $0x390] sm:$0xf0]  ;;  %v4993_v57 = vor.u32 %v6797_v47, %v4990_v48 }
  0xb1   : > { %3878 = vmatpush.bf16.msra.mxu2 %v5025_v25  ;;  %v6729_v58 = vld [vmem:[%s7522_s17 + $0x64] sm:$0xf]  ;;  %v4718_v59 = vld [vmem:[%s7522_s17 + $0x70] sm:$0xf0]  ;;  %v5121_v5 = vor.u32 %v6829_v51, %v5118_v52 }
  0xb2   : > { %3891 = vmatpush.bf16.msra.mxu3 %v5153_v29  ;;  %v6761_v60 = vld [vmem:[%s7522_s17 + $0x164] sm:$0xf]  ;;  %v4846_v61 = vld [vmem:[%s7522_s17 + $0x170] sm:$0xf0]  ;;  %v4721_v4 = vor.u32 %v6729_v58, %v4718_v59 }
  0xb3   : > { %3853 = vmatpush.bf16.msra.mxu0 %v4753_v36  ;;  %v6793_v62 = vld [vmem:[%s7522_s17 + $0x264] sm:$0xf]  ;;  %v4974_v63 = vld [vmem:[%s7522_s17 + $0x270] sm:$0xf0]  ;;  %v4849_v6 = vor.u32 %v6761_v60, %v4846_v61 }
  0xb4   : > { %3866 = vmatpush.bf16.msra.mxu1 %v4881_v37  ;;  %v6825_v0 = vld [vmem:[%s7522_s17 + $0x364] sm:$0xf]  ;;  %v5102_v1 = vld [vmem:[%s7522_s17 + $0x370] sm:$0xf0]  ;;  %v4977_v8 = vor.u32 %v6793_v62, %v4974_v63 }
  0xb5   : > { %3879 = vmatpush.bf16.msra.mxu2 %v5009_v38  ;;  %v6725_v9 = vld [vmem:[%s7522_s17 + $0x44] sm:$0xf]  ;;  %v4702_v10 = vld [vmem:[%s7522_s17 + $0x50] sm:$0xf0]  ;;  %v5105_v12 = vor.u32 %v6825_v0, %v5102_v1 }
  0xb6   : > { %3892 = vmatpush.bf16.msra.mxu3 %v5137_v44  ;;  %v6757_v11 = vld [vmem:[%s7522_s17 + $0x144] sm:$0xf]  ;;  %v4830_v3 = vld [vmem:[%s7522_s17 + $0x150] sm:$0xf0]  ;;  %v4705_v22 = vor.u32 %v6725_v9, %v4702_v10 }
  0xb7   : > { %3854 = vmatpush.bf16.msra.mxu0 %v4737_v55  ;;  %v6789_v13 = vld [vmem:[%s7522_s17 + $0x244] sm:$0xf]  ;;  %v4958_v16 = vld [vmem:[%s7522_s17 + $0x250] sm:$0xf0]  ;;  %v4833_v23 = vor.u32 %v6757_v11, %v4830_v3 }
  0xb8   : > { %3867 = vmatpush.bf16.msra.mxu1 %v4865_v56  ;;  %v6821_v19 = vld [vmem:[%s7522_s17 + $0x344] sm:$0xf]  ;;  %v5086_v20 = vld [vmem:[%s7522_s17 + $0x350] sm:$0xf0]  ;;  %v4961_v25 = vor.u32 %v6789_v13, %v4958_v16 }
  0xb9   : > { %3880 = vmatpush.bf16.msra.mxu2 %v4993_v57  ;;  %v6721_v26 = vld [vmem:[%s7522_s17 + $0x24] sm:$0xf]  ;;  %v4686_v27 = vld [vmem:[%s7522_s17 + $0x30] sm:$0xf0]  ;;  %v5089_v29 = vor.u32 %v6821_v19, %v5086_v20 }
  0xba   : > { %3893 = vmatpush.bf16.msra.mxu3 %v5121_v5  ;;  %v6753_v28 = vld [vmem:[%s7522_s17 + $0x124] sm:$0xf]  ;;  %v4814_v30 = vld [vmem:[%s7522_s17 + $0x130] sm:$0xf0]  ;;  %v4689_v36 = vor.u32 %v6721_v26, %v4686_v27 }
  0xbb   : > { %3855 = vmatpush.bf16.msra.mxu0 %v4721_v4  ;;  %v6785_v31 = vld [vmem:[%s7522_s17 + $0x224] sm:$0xf]  ;;  %v4942_v32 = vld [vmem:[%s7522_s17 + $0x230] sm:$0xf0]  ;;  %v4817_v39 = vor.u32 %v6753_v28, %v4814_v30 }
  0xbc   : > { %3868 = vmatpush.bf16.msra.mxu1 %v4849_v6  ;;  %v6817_v33 = vld [vmem:[%s7522_s17 + $0x324] sm:$0xf]  ;;  %v5070_v34 = vld [vmem:[%s7522_s17 + $0x330] sm:$0xf0]  ;;  %v4945_v41 = vor.u32 %v6785_v31, %v4942_v32 }
  0xbd   : > { %3881 = vmatpush.bf16.msra.mxu2 %v4977_v8  ;;  %v6717_v37 = vld [vmem:[%s7522_s17 + $0x4] sm:$0xf]  ;;  %v4670_v38 = vld [vmem:[%s7522_s17 + $0x10] sm:$0xf0]  ;;  %v5073_v47 = vor.u32 %v6817_v33, %v5070_v34 }
  0xbe   : > { %3894 = vmatpush.bf16.msra.mxu3 %v5105_v12  ;;  %v6749_v42 = vld [vmem:[%s7522_s17 + $0x104] sm:$0xf]  ;;  %v4798_v44 = vld [vmem:[%s7522_s17 + $0x110] sm:$0xf0]  ;;  %v4673_v58 = vor.u32 %v6717_v37, %v4670_v38 }
  0xbf   : > { %3856 = vmatpush.bf16.msra.mxu0 %v4705_v22  ;;  %v6781_v46 = vld [vmem:[%s7522_s17 + $0x204] sm:$0xf]  ;;  %v4926_v48 = vld [vmem:[%s7522_s17 + $0x210] sm:$0xf0]  ;;  %v4801_v61 = vor.u32 %v6749_v42, %v4798_v44 }
  0xc0   : > { %3869 = vmatpush.bf16.msra.mxu1 %v4833_v23  ;;  %v6813_v51 = vld [vmem:[%s7522_s17 + $0x304] sm:$0xf]  ;;  %v5054_v52 = vld [vmem:[%s7522_s17 + $0x310] sm:$0xf0]  ;;  %v4929_v62 = vor.u32 %v6781_v46, %v4926_v48 }
  0xc1   : > { %3882 = vmatpush.bf16.msra.mxu2 %v4961_v25  ;;  %v6873_v55 = vld [vmem:[%s7522_s17 + $0x4e4] sm:$0xf]  ;;  %v5294_v56 = vld [vmem:[%s7522_s17 + $0x4f0] sm:$0xf0]  ;;  %v5057_v1 = vor.u32 %v6813_v51, %v5054_v52 }
  0xc2   : > { %3895 = vmatpush.bf16.msra.mxu3 %v5089_v29  ;;  %v6905_v57 = vld [vmem:[%s7522_s17 + $0x5e4] sm:$0xf]  ;;  %v5422_v59 = vld [vmem:[%s7522_s17 + $0x5f0] sm:$0xf0]  ;;  %v5297_v4 = vor.u32 %v6873_v55, %v5294_v56 }
  0xc3   : > { %3857 = vmatpush.bf16.msra.mxu0 %v4689_v36  ;;  %v6937_v60 = vld [vmem:[%s7522_s17 + $0x6e4] sm:$0xf]  ;;  %v5550_v5 = vld [vmem:[%s7522_s17 + $0x6f0] sm:$0xf0]  ;;  %v5425_v6 = vor.u32 %v6905_v57, %v5422_v59 }
  0xc4   : > { %3870 = vmatpush.bf16.msra.mxu1 %v4817_v39  ;;  %v6969_v63 = vld [vmem:[%s7522_s17 + $0x7e4] sm:$0xf]  ;;  %v5678_v0 = vld [vmem:[%s7522_s17 + $0x7f0] sm:$0xf0]  ;;  %v5553_v8 = vor.u32 %v6937_v60, %v5550_v5 }
  0xc5   : > { %3883 = vmatpush.bf16.msra.mxu2 %v4945_v41  ;;  %v6869_v9 = vld [vmem:[%s7522_s17 + $0x4c4] sm:$0xf]  ;;  %v5278_v10 = vld [vmem:[%s7522_s17 + $0x4d0] sm:$0xf0]  ;;  %v5681_v12 = vor.u32 %v6969_v63, %v5678_v0 }
  0xc6   : > { %3896 = vmatpush.bf16.msra.mxu3 %v5073_v47  ;;  %v6901_v11 = vld [vmem:[%s7522_s17 + $0x5c4] sm:$0xf]  ;;  %v5406_v3 = vld [vmem:[%s7522_s17 + $0x5d0] sm:$0xf0]  ;;  %v5281_v22 = vor.u32 %v6869_v9, %v5278_v10 }
  0xc7   : > { %3858 = vmatpush.bf16.msra.mxu0 %v4673_v58  ;;  %v6933_v13 = vld [vmem:[%s7522_s17 + $0x6c4] sm:$0xf]  ;;  %v5534_v16 = vld [vmem:[%s7522_s17 + $0x6d0] sm:$0xf0]  ;;  %v5409_v23 = vor.u32 %v6901_v11, %v5406_v3 }
  0xc8   : > { %3871 = vmatpush.bf16.msra.mxu1 %v4801_v61  ;;  %v6965_v19 = vld [vmem:[%s7522_s17 + $0x7c4] sm:$0xf]  ;;  %v5662_v20 = vld [vmem:[%s7522_s17 + $0x7d0] sm:$0xf0]  ;;  %v5537_v25 = vor.u32 %v6933_v13, %v5534_v16 }
  0xc9   : > { %3884 = vmatpush.bf16.msra.mxu2 %v4929_v62  ;;  %v6865_v26 = vld [vmem:[%s7522_s17 + $0x4a4] sm:$0xf]  ;;  %v5262_v27 = vld [vmem:[%s7522_s17 + $0x4b0] sm:$0xf0]  ;;  %v5665_v29 = vor.u32 %v6965_v19, %v5662_v20 }
  0xca   : > { %3897 = vmatpush.bf16.msra.mxu3 %v5057_v1  ;;  %v6897_v28 = vld [vmem:[%s7522_s17 + $0x5a4] sm:$0xf]  ;;  %v5390_v30 = vld [vmem:[%s7522_s17 + $0x5b0] sm:$0xf0]  ;;  %3859 = vmatmul.bf16.vlgmr.msra.gmra.mxu0 %v7685_v7  ;;  %v5265_v36 = vor.u32 %v6865_v26, %v5262_v27 }
  0xcb   : > { %3903 = vmatpush.bf16.msrb.mxu0 %v5297_v4  ;;  %v6929_v31 = vld [vmem:[%s7522_s17 + $0x6a4] sm:$0xf]  ;;  %v5518_v32 = vld [vmem:[%s7522_s17 + $0x6b0] sm:$0xf0]  ;;  %3872 = vmatmul.bf16.vlgmr.msra.gmra.mxu1 %v7699_v15  ;;  %v5393_v37 = vor.u32 %v6897_v28, %v5390_v30 }
  0xcc   : > { %3916 = vmatpush.bf16.msrb.mxu1 %v5425_v6  ;;  %3885 = vmatmul.bf16.vlgmr.msra.gmra.mxu2 %v7664_v54  ;;  %v6961_v33 = vld [vmem:[%s7522_s17 + $0x7a4] sm:$0xf]  ;;  %v5646_v34 = vld [vmem:[%s7522_s17 + $0x7b0] sm:$0xf0]  ;;  %v5521_v38 = vor.u32 %v6929_v31, %v5518_v32 }
  0xcd   : > { %3929 = vmatpush.bf16.msrb.mxu2 %v5553_v8  ;;  %3898 = vmatmul.bf16.vlgmr.msra.gmra.mxu3 %v7697_v14  ;;  %v6861_v39 = vld [vmem:[%s7522_s17 + $0x484] sm:$0xf]  ;;  %v5246_v41 = vld [vmem:[%s7522_s17 + $0x490] sm:$0xf0]  ;;  %v5649_v44 = vor.u32 %v6961_v33, %v5646_v34 }
  0xce   : > { %3942 = vmatpush.bf16.msrb.mxu3 %v5681_v12  ;;  %v6893_v42 = vld [vmem:[%s7522_s17 + $0x584] sm:$0xf]  ;;  %v5374_v46 = vld [vmem:[%s7522_s17 + $0x590] sm:$0xf0]  ;;  %v5249_v55 = vor.u32 %v6861_v39, %v5246_v41 }
  0xcf   : > { %3904 = vmatpush.bf16.msrb.mxu0 %v5281_v22  ;;  %v6925_v47 = vld [vmem:[%s7522_s17 + $0x684] sm:$0xf]  ;;  %v5502_v48 = vld [vmem:[%s7522_s17 + $0x690] sm:$0xf0]  ;;  %v5377_v56 = vor.u32 %v6893_v42, %v5374_v46 }
  0xd0   : > { %3917 = vmatpush.bf16.msrb.mxu1 %v5409_v23  ;;  %v6957_v51 = vld [vmem:[%s7522_s17 + $0x784] sm:$0xf]  ;;  %v5630_v52 = vld [vmem:[%s7522_s17 + $0x790] sm:$0xf0]  ;;  %v5505_v57 = vor.u32 %v6925_v47, %v5502_v48 }
  0xd1   : > { %3930 = vmatpush.bf16.msrb.mxu2 %v5537_v25  ;;  %v6857_v58 = vld [vmem:[%s7522_s17 + $0x464] sm:$0xf]  ;;  %v5230_v59 = vld [vmem:[%s7522_s17 + $0x470] sm:$0xf0]  ;;  %v5633_v5 = vor.u32 %v6957_v51, %v5630_v52 }
  0xd2   : > { %3943 = vmatpush.bf16.msrb.mxu3 %v5665_v29  ;;  %v6889_v60 = vld [vmem:[%s7522_s17 + $0x564] sm:$0xf]  ;;  %v5358_v61 = vld [vmem:[%s7522_s17 + $0x570] sm:$0xf0]  ;;  %v5233_v4 = vor.u32 %v6857_v58, %v5230_v59 }
  0xd3   : > { %3905 = vmatpush.bf16.msrb.mxu0 %v5265_v36  ;;  %v6921_v62 = vld [vmem:[%s7522_s17 + $0x664] sm:$0xf]  ;;  %v5486_v63 = vld [vmem:[%s7522_s17 + $0x670] sm:$0xf0]  ;;  %v5361_v6 = vor.u32 %v6889_v60, %v5358_v61 }
  0xd4   : > { %3918 = vmatpush.bf16.msrb.mxu1 %v5393_v37  ;;  %v6953_v0 = vld [vmem:[%s7522_s17 + $0x764] sm:$0xf]  ;;  %v5614_v1 = vld [vmem:[%s7522_s17 + $0x770] sm:$0xf0]  ;;  %v5489_v8 = vor.u32 %v6921_v62, %v5486_v63 }
  0xd5   : > { %3931 = vmatpush.bf16.msrb.mxu2 %v5521_v38  ;;  %v6853_v9 = vld [vmem:[%s7522_s17 + $0x444] sm:$0xf]  ;;  %v5214_v10 = vld [vmem:[%s7522_s17 + $0x450] sm:$0xf0]  ;;  %v5617_v12 = vor.u32 %v6953_v0, %v5614_v1 }
  0xd6   : > { %3944 = vmatpush.bf16.msrb.mxu3 %v5649_v44  ;;  %v6885_v11 = vld [vmem:[%s7522_s17 + $0x544] sm:$0xf]  ;;  %v5342_v3 = vld [vmem:[%s7522_s17 + $0x550] sm:$0xf0]  ;;  %v5217_v22 = vor.u32 %v6853_v9, %v5214_v10 }
  0xd7   : > { %3906 = vmatpush.bf16.msrb.mxu0 %v5249_v55  ;;  %v6917_v13 = vld [vmem:[%s7522_s17 + $0x644] sm:$0xf]  ;;  %v5470_v16 = vld [vmem:[%s7522_s17 + $0x650] sm:$0xf0]  ;;  %v5345_v23 = vor.u32 %v6885_v11, %v5342_v3 }
  0xd8   : > { %3919 = vmatpush.bf16.msrb.mxu1 %v5377_v56  ;;  %v6949_v19 = vld [vmem:[%s7522_s17 + $0x744] sm:$0xf]  ;;  %v5598_v20 = vld [vmem:[%s7522_s17 + $0x750] sm:$0xf0]  ;;  %v5473_v25 = vor.u32 %v6917_v13, %v5470_v16 }
  0xd9   : > { %3932 = vmatpush.bf16.msrb.mxu2 %v5505_v57  ;;  %v6849_v26 = vld [vmem:[%s7522_s17 + $0x424] sm:$0xf]  ;;  %v5198_v27 = vld [vmem:[%s7522_s17 + $0x430] sm:$0xf0]  ;;  %v5601_v29 = vor.u32 %v6949_v19, %v5598_v20 }
  0xda   : > { %3945 = vmatpush.bf16.msrb.mxu3 %v5633_v5  ;;  %v6881_v28 = vld [vmem:[%s7522_s17 + $0x524] sm:$0xf]  ;;  %v5326_v30 = vld [vmem:[%s7522_s17 + $0x530] sm:$0xf0]  ;;  %v5201_v36 = vor.u32 %v6849_v26, %v5198_v27 }
  0xdb   : > { %3907 = vmatpush.bf16.msrb.mxu0 %v5233_v4  ;;  %v6913_v31 = vld [vmem:[%s7522_s17 + $0x624] sm:$0xf]  ;;  %v5454_v32 = vld [vmem:[%s7522_s17 + $0x630] sm:$0xf0]  ;;  %v5329_v39 = vor.u32 %v6881_v28, %v5326_v30 }
  0xdc   : > { %3920 = vmatpush.bf16.msrb.mxu1 %v5361_v6  ;;  %v6945_v33 = vld [vmem:[%s7522_s17 + $0x724] sm:$0xf]  ;;  %v5582_v34 = vld [vmem:[%s7522_s17 + $0x730] sm:$0xf0]  ;;  %v5457_v41 = vor.u32 %v6913_v31, %v5454_v32 }
  0xdd   : > { %3933 = vmatpush.bf16.msrb.mxu2 %v5489_v8  ;;  %v6845_v37 = vld [vmem:[%s7522_s17 + $0x404] sm:$0xf]  ;;  %v5182_v38 = vld [vmem:[%s7522_s17 + $0x410] sm:$0xf0]  ;;  %v5585_v47 = vor.u32 %v6945_v33, %v5582_v34 }
  0xde   : > { %3946 = vmatpush.bf16.msrb.mxu3 %v5617_v12  ;;  %v6877_v42 = vld [vmem:[%s7522_s17 + $0x504] sm:$0xf]  ;;  %v5310_v44 = vld [vmem:[%s7522_s17 + $0x510] sm:$0xf0]  ;;  %v8105_v58 = vpop.f32.mrf.mxu0  ;;  %v5185_v59 = vor.u32 %v6845_v37, %v5182_v38 }
  0xdf   : > { %3908 = vmatpush.bf16.msrb.mxu0 %v5217_v22  ;;  %v6909_v46 = vld [vmem:[%s7522_s17 + $0x604] sm:$0xf]  ;;  %v5438_v48 = vld [vmem:[%s7522_s17 + $0x610] sm:$0xf0]  ;;  %v8110_v62 = vpop.f32.mrf.mxu1  ;;  %v5313_v63 = vor.u32 %v6877_v42, %v5310_v44  ;;  %v8114_v6 = vpop.f32.mrf.mxu2 }
  0xe0   : > { %3921 = vmatpush.bf16.msrb.mxu1 %v5345_v23  ;;  %v6941_v51 = vld [vmem:[%s7522_s17 + $0x704] sm:$0xf]  ;;  %v5566_v52 = vld [vmem:[%s7522_s17 + $0x710] sm:$0xf0]  ;;  %v5441_v0 = vor.u32 %v6909_v46, %v5438_v48 }
  0xe1   : > { %3934 = vmatpush.bf16.msrb.mxu2 %v5473_v25  ;;  %v7001_v55 = vld [vmem:[%s7522_s17 + $0x8e4] sm:$0xf]  ;;  %v5806_v56 = vld [vmem:[%s7522_s17 + $0x8f0] sm:$0xf0]  ;;  %v5569_v8 = vor.u32 %v6941_v51, %v5566_v52 }
  0xe2   : > { %3947 = vmatpush.bf16.msrb.mxu3 %v5601_v29  ;;  %v7033_v57 = vld [vmem:[%s7522_s17 + $0x9e4] sm:$0xf]  ;;  %v5934_v60 = vld [vmem:[%s7522_s17 + $0x9f0] sm:$0xf0]  ;;  %v5809_v9 = vor.u32 %v7001_v55, %v5806_v56  ;;  %v8124_v27 = vpop.f32.mrf.mxu3 }
  0xe3   : > { %3909 = vmatpush.bf16.msrb.mxu0 %v5201_v36  ;;  %v7065_v5 = vld [vmem:[%s7522_s17 + $0xae4] sm:$0xf]  ;;  %v6062_v61 = vld [vmem:[%s7522_s17 + $0xaf0] sm:$0xf0]  ;;  %v5937_v10 = vor.u32 %v7033_v57, %v5934_v60 }
  0xe4   : > { %3922 = vmatpush.bf16.msrb.mxu1 %v5329_v39  ;;  %v7097_v1 = vld [vmem:[%s7522_s17 + $0xbe4] sm:$0xf]  ;;  %v6190_v4 = vld [vmem:[%s7522_s17 + $0xbf0] sm:$0xf0]  ;;  %v6065_v11 = vor.u32 %v7065_v5, %v6062_v61 }
  0xe5   : > { %3935 = vmatpush.bf16.msrb.mxu2 %v5457_v41  ;;  %v6997_v12 = vld [vmem:[%s7522_s17 + $0x8c4] sm:$0xf]  ;;  %v5790_v3 = vld [vmem:[%s7522_s17 + $0x8d0] sm:$0xf0]  ;;  %v6193_v16 = vor.u32 %v7097_v1, %v6190_v4 }
  0xe6   : > { %3948 = vmatpush.bf16.msrb.mxu3 %v5585_v47  ;;  %v7029_v13 = vld [vmem:[%s7522_s17 + $0x9c4] sm:$0xf]  ;;  %v5918_v19 = vld [vmem:[%s7522_s17 + $0x9d0] sm:$0xf0]  ;;  %v5793_v26 = vor.u32 %v6997_v12, %v5790_v3  ;;  %v3654_v33 = vpop.f32.mrf.mxu0 }
  0xe7   : > { %3910 = vmatpush.bf16.msrb.mxu0 %v5185_v59  ;;  %v7061_v20 = vld [vmem:[%s7522_s17 + $0xac4] sm:$0xf]  ;;  %v6046_v22 = vld [vmem:[%s7522_s17 + $0xad0] sm:$0xf0]  ;;  %v5921_v28 = vor.u32 %v7029_v13, %v5918_v19  ;;  %v3667_v39 = vpop.f32.mrf.mxu1  ;;  %v3680_v44 = vpop.f32.mrf.mxu2 }
  0xe8   : > { %3923 = vmatpush.bf16.msrb.mxu1 %v5313_v63  ;;  %v7093_v23 = vld [vmem:[%s7522_s17 + $0xbc4] sm:$0xf]  ;;  %v6174_v25 = vld [vmem:[%s7522_s17 + $0xbd0] sm:$0xf0]  ;;  %v6049_v29 = vor.u32 %v7061_v20, %v6046_v22 }
  0xe9   : > { %3936 = vmatpush.bf16.msrb.mxu2 %v5441_v0  ;;  %v6993_v30 = vld [vmem:[%s7522_s17 + $0x8a4] sm:$0xf]  ;;  %v5774_v31 = vld [vmem:[%s7522_s17 + $0x8b0] sm:$0xf0]  ;;  %v6177_v34 = vor.u32 %v7093_v23, %v6174_v25 }
  0xea   : > { %3949 = vmatpush.bf16.msrb.mxu3 %v5569_v8  ;;  %v7025_v32 = vld [vmem:[%s7522_s17 + $0x9a4] sm:$0xf]  ;;  %v5902_v36 = vld [vmem:[%s7522_s17 + $0x9b0] sm:$0xf0]  ;;  %3911 = vmatmul.bf16.vlgmr.msrb.gmra.mxu0 %v7783_v35  ;;  %v5777_v46 = vor.u32 %v6993_v30, %v5774_v31  ;;  %v3693_v0 = vpop.f32.mrf.mxu3 }
  0xeb   : > { %3955 = vmatpush.bf16.msra.mxu0 %v5809_v9  ;;  %v7057_v37 = vld [vmem:[%s7522_s17 + $0xaa4] sm:$0xf]  ;;  %v6030_v38 = vld [vmem:[%s7522_s17 + $0xab0] sm:$0xf0]  ;;  %3924 = vmatmul.bf16.vlgmr.msrb.gmra.mxu1 %v7793_v43  ;;  %v5905_v47 = vor.u32 %v7025_v32, %v5902_v36 }
  0xec   : > { %3968 = vmatpush.bf16.msra.mxu1 %v5937_v10  ;;  %3937 = vmatmul.bf16.vlgmr.msrb.gmra.mxu2 %v7775_v24  ;;  %v7089_v41 = vld [vmem:[%s7522_s17 + $0xba4] sm:$0xf]  ;;  %v6158_v42 = vld [vmem:[%s7522_s17 + $0xbb0] sm:$0xf0]  ;;  %v6033_v48 = vor.u32 %v7057_v37, %v6030_v38 }
  0xed   : > { %3981 = vmatpush.bf16.msra.mxu2 %v6065_v11  ;;  %3950 = vmatmul.bf16.vlgmr.msrb.gmra.mxu3 %v7789_v40  ;;  %v6989_v51 = vld [vmem:[%s7522_s17 + $0x884] sm:$0xf]  ;;  %v5758_v52 = vld [vmem:[%s7522_s17 + $0x890] sm:$0xf0]  ;;  %v6161_v56 = vor.u32 %v7089_v41, %v6158_v42 }
  0xee   : > { %3994 = vmatpush.bf16.msra.mxu3 %v6193_v16  ;;  %v7021_v55 = vld [vmem:[%s7522_s17 + $0x984] sm:$0xf]  ;;  %v5886_v57 = vld [vmem:[%s7522_s17 + $0x990] sm:$0xf0]  ;;  %v5761_v63 = vor.u32 %v6989_v51, %v5758_v52  ;;  %v8154_v20 = vpop.f32.mrf.mxu0 }
  0xef   : > { %3956 = vmatpush.bf16.msra.mxu0 %v5793_v26  ;;  %v7053_v59 = vld [vmem:[%s7522_s17 + $0xa84] sm:$0xf]  ;;  %v6014_v60 = vld [vmem:[%s7522_s17 + $0xa90] sm:$0xf0]  ;;  %v5889_v1 = vor.u32 %v7021_v55, %v5886_v57  ;;  %v8156_v23 = vpop.f32.mrf.mxu1  ;;  %v8161_v31 = vpop.f32.mrf.mxu2 }
  0xf0   : > { %3969 = vmatpush.bf16.msra.mxu1 %v5921_v28  ;;  %v7085_v5 = vld [vmem:[%s7522_s17 + $0xb84] sm:$0xf]  ;;  %v6142_v61 = vld [vmem:[%s7522_s17 + $0xb90] sm:$0xf0]  ;;  %v6017_v4 = vor.u32 %v7053_v59, %v6014_v60 }
  0xf1   : > { %3982 = vmatpush.bf16.msra.mxu2 %v6049_v29  ;;  %v6985_v8 = vld [vmem:[%s7522_s17 + $0x864] sm:$0xf]  ;;  %v5742_v9 = vld [vmem:[%s7522_s17 + $0x870] sm:$0xf0]  ;;  %v6145_v11 = vor.u32 %v7085_v5, %v6142_v61 }
  0xf2   : > { %3995 = vmatpush.bf16.msra.mxu3 %v6177_v34  ;;  %v7017_v10 = vld [vmem:[%s7522_s17 + $0x964] sm:$0xf]  ;;  %v5870_v12 = vld [vmem:[%s7522_s17 + $0x970] sm:$0xf0]  ;;  %v5745_v22 = vor.u32 %v6985_v8, %v5742_v9 }
  0xf3   : > { %3957 = vmatpush.bf16.msra.mxu0 %v5777_v46  ;;  %v7049_v3 = vld [vmem:[%s7522_s17 + $0xa64] sm:$0xf]  ;;  %v5998_v13 = vld [vmem:[%s7522_s17 + $0xa70] sm:$0xf0]  ;;  %v5873_v25 = vor.u32 %v7017_v10, %v5870_v12  ;;  %v8171_v51 = vpop.f32.mrf.mxu3 }
  0xf4   : > { %3970 = vmatpush.bf16.msra.mxu1 %v5905_v47  ;;  %v7081_v16 = vld [vmem:[%s7522_s17 + $0xb64] sm:$0xf]  ;;  %v6126_v19 = vld [vmem:[%s7522_s17 + $0xb70] sm:$0xf0]  ;;  %v6001_v26 = vor.u32 %v7049_v3, %v5998_v13 }
  0xf5   : > { %3983 = vmatpush.bf16.msra.mxu2 %v6033_v48  ;;  %v6981_v28 = vld [vmem:[%s7522_s17 + $0x844] sm:$0xf]  ;;  %v5726_v29 = vld [vmem:[%s7522_s17 + $0x850] sm:$0xf0]  ;;  %v6129_v32 = vor.u32 %v7081_v16, %v6126_v19 }
  0xf6   : > { %3996 = vmatpush.bf16.msra.mxu3 %v6161_v56  ;;  %v7013_v30 = vld [vmem:[%s7522_s17 + $0x944] sm:$0xf]  ;;  %v5854_v33 = vld [vmem:[%s7522_s17 + $0x950] sm:$0xf0]  ;;  %v5729_v39 = vor.u32 %v6981_v28, %v5726_v29  ;;  %v3706_v60 = vpop.f32.mrf.mxu0 }
  0xf7   : > { %3958 = vmatpush.bf16.msra.mxu0 %v5761_v63  ;;  %v7045_v34 = vld [vmem:[%s7522_s17 + $0xa44] sm:$0xf]  ;;  %v5982_v36 = vld [vmem:[%s7522_s17 + $0xa50] sm:$0xf0]  ;;  %v5857_v41 = vor.u32 %v7013_v30, %v5854_v33  ;;  %v3719_v0 = vpop.f32.mrf.mxu1 }
  0xf8   : > { %3971 = vmatpush.bf16.msra.mxu1 %v5889_v1  ;;  %v7077_v37 = vld [vmem:[%s7522_s17 + $0xb44] sm:$0xf]  ;;  %v6110_v38 = vld [vmem:[%s7522_s17 + $0xb50] sm:$0xf0]  ;;  %v5985_v42 = vor.u32 %v7045_v34, %v5982_v36 }
  0xf9   : > { %3984 = vmatpush.bf16.msra.mxu2 %v6017_v4  ;;  %v6977_v44 = vld [vmem:[%s7522_s17 + $0x824] sm:$0xf]  ;;  %v5710_v46 = vld [vmem:[%s7522_s17 + $0x830] sm:$0xf0]  ;;  %v6113_v48 = vor.u32 %v7077_v37, %v6110_v38 }
  0xfa   : > { %3997 = vmatpush.bf16.msra.mxu3 %v6145_v11  ;;  %v7009_v47 = vld [vmem:[%s7522_s17 + $0x924] sm:$0xf]  ;;  %v5838_v52 = vld [vmem:[%s7522_s17 + $0x930] sm:$0xf0]  ;;  %v5713_v5 = vor.u32 %v6977_v44, %v5710_v46  ;;  %v3732_v11 = vpop.f32.mrf.mxu2 }
  0xfb   : > { %3959 = vmatpush.bf16.msra.mxu0 %v5745_v22  ;;  %v7041_v55 = vld [vmem:[%s7522_s17 + $0xa24] sm:$0xf]  ;;  %v5966_v56 = vld [vmem:[%s7522_s17 + $0xa30] sm:$0xf0]  ;;  %v5841_v1 = vor.u32 %v7009_v47, %v5838_v52 }
  0xfc   : > { %3972 = vmatpush.bf16.msra.mxu1 %v5873_v25  ;;  %v7073_v57 = vld [vmem:[%s7522_s17 + $0xb24] sm:$0xf]  ;;  %v6094_v59 = vld [vmem:[%s7522_s17 + $0xb30] sm:$0xf0]  ;;  %v5969_v4 = vor.u32 %v7041_v55, %v5966_v56 }
  0xfd   : > { %3985 = vmatpush.bf16.msra.mxu2 %v6001_v26  ;;  %v6973_v61 = vld [vmem:[%s7522_s17 + $0x804] sm:$0xf]  ;;  %v5694_v63 = vld [vmem:[%s7522_s17 + $0x810] sm:$0xf0]  ;;  %v6097_v12 = vor.u32 %v7073_v57, %v6094_v59 }
  0xfe   : > { %3998 = vmatpush.bf16.msra.mxu3 %v6129_v32  ;;  %v7005_v8 = vld [vmem:[%s7522_s17 + $0x904] sm:$0xf]  ;;  %v5822_v9 = vld [vmem:[%s7522_s17 + $0x910] sm:$0xf0]  ;;  %v5697_v26 = vor.u32 %v6973_v61, %v5694_v63 }
  0xff   : > { %3960 = vmatpush.bf16.msra.mxu0 %v5729_v39  ;;  %v7037_v10 = vld [vmem:[%s7522_s17 + $0xa04] sm:$0xf]  ;;  %v5950_v3 = vld [vmem:[%s7522_s17 + $0xa10] sm:$0xf0]  ;;  %v5825_v32 = vor.u32 %v7005_v8, %v5822_v9  ;;  %v3745_v39 = vpop.f32.mrf.mxu3 }
 0x100   : > { %3973 = vmatpush.bf16.msra.mxu1 %v5857_v41  ;;  %v7069_v13 = vld [vmem:[%s7522_s17 + $0xb04] sm:$0xf]  ;;  %v6078_v16 = vld [vmem:[%s7522_s17 + $0xb10] sm:$0xf0]  ;;  %v5953_v33 = vor.u32 %v7037_v10, %v5950_v3 }
 0x101   : > { %3986 = vmatpush.bf16.msra.mxu2 %v5985_v42  ;;  %v7129_v19 = vld [vmem:[%s7522_s17 + $0xce4] sm:$0xf]  ;;  %v6318_v22 = vld [vmem:[%s7522_s17 + $0xcf0] sm:$0xf0]  ;;  %v6081_v37 = vor.u32 %v7069_v13, %v6078_v16 }
 0x102   : > { %3999 = vmatpush.bf16.msra.mxu3 %v6113_v48  ;;  %v7161_v25 = vld [vmem:[%s7522_s17 + $0xde4] sm:$0xf]  ;;  %v6446_v28 = vld [vmem:[%s7522_s17 + $0xdf0] sm:$0xf0]  ;;  %v6321_v38 = vor.u32 %v7129_v19, %v6318_v22 }
 0x103   : > { %3961 = vmatpush.bf16.msra.mxu0 %v5713_v5  ;;  %v7193_v29 = vld [vmem:[%s7522_s17 + $0xee4] sm:$0xf]  ;;  %v6574_v30 = vld [vmem:[%s7522_s17 + $0xef0] sm:$0xf0]  ;;  %v6449_v41 = vor.u32 %v7161_v25, %v6446_v28  ;;  %v3666_v5 = vadd.f32 %v8110_v62, %v8105_v58 }
 0x104   : > { %3974 = vmatpush.bf16.msra.mxu1 %v5841_v1  ;;  %v7225_v34 = vld [vmem:[%s7522_s17 + $0xfe4] sm:$0xf]  ;;  %v6702_v36 = vld [vmem:[%s7522_s17 + $0xff0] sm:$0xf0]  ;;  %v6577_v42 = vor.u32 %v7193_v29, %v6574_v30 }
 0x105   : > { %3987 = vmatpush.bf16.msra.mxu2 %v5969_v4  ;;  %v7125_v44 = vld [vmem:[%s7522_s17 + $0xcc4] sm:$0xf]  ;;  %v6302_v46 = vld [vmem:[%s7522_s17 + $0xcd0] sm:$0xf0]  ;;  %v6705_v48 = vor.u32 %v7225_v34, %v6702_v36  ;;  %v3679_v3 = vadd.f32 %v8114_v6, %v3666_v5 }
 0x106   : > { %4000 = vmatpush.bf16.msra.mxu3 %v6097_v12  ;;  %v7157_v47 = vld [vmem:[%s7522_s17 + $0xdc4] sm:$0xf]  ;;  %v6430_v52 = vld [vmem:[%s7522_s17 + $0xdd0] sm:$0xf0]  ;;  %v6305_v60 = vor.u32 %v7125_v44, %v6302_v46 }
 0x107   : > { %3962 = vmatpush.bf16.msra.mxu0 %v5697_v26  ;;  %v7189_v55 = vld [vmem:[%s7522_s17 + $0xec4] sm:$0xf]  ;;  %v6558_v56 = vld [vmem:[%s7522_s17 + $0xed0] sm:$0xf0]  ;;  %v6433_v61 = vor.u32 %v7157_v47, %v6430_v52 }
 0x108   : > { %3975 = vmatpush.bf16.msra.mxu1 %v5825_v32  ;;  %v7221_v57 = vld [vmem:[%s7522_s17 + $0xfc4] sm:$0xf]  ;;  %v6686_v59 = vld [vmem:[%s7522_s17 + $0xfd0] sm:$0xf0]  ;;  %v6561_v63 = vor.u32 %v7189_v55, %v6558_v56  ;;  %v8223_v32 = vpop.f32.mrf.mxu0  ;;  %v8227_v36 = vpop.f32.mrf.mxu1 }
 0x109   : > { %3988 = vmatpush.bf16.msra.mxu2 %v5953_v33  ;;  %v7121_v0 = vld [vmem:[%s7522_s17 + $0xca4] sm:$0xf]  ;;  %v6286_v1 = vld [vmem:[%s7522_s17 + $0xcb0] sm:$0xf0]  ;;  %v6689_v8 = vor.u32 %v7221_v57, %v6686_v59 }
 0x10a   : > { %4001 = vmatpush.bf16.msra.mxu3 %v6081_v37  ;;  %v7153_v4 = vld [vmem:[%s7522_s17 + $0xda4] sm:$0xf]  ;;  %3963 = vmatmul.bf16.vlgmr.msra.gmra.mxu0 %v7876_v45  ;;  %v6414_v9 = vld [vmem:[%s7522_s17 + $0xdb0] sm:$0xf0]  ;;  %v6289_v12 = vor.u32 %v7121_v0, %v6286_v1  ;;  %v3692_v37 = vadd.f32 %v8124_v27, %v3679_v3 }
 0x10b   : > { %4007 = vmatpush.bf16.msrb.mxu0 %v6321_v38  ;;  %v7185_v10 = vld [vmem:[%s7522_s17 + $0xea4] sm:$0xf]  ;;  %v6542_v11 = vld [vmem:[%s7522_s17 + $0xeb0] sm:$0xf0]  ;;  %3976 = vmatmul.bf16.vlgmr.msra.gmra.mxu1 %v7883_v50  ;;  %v6417_v13 = vor.u32 %v7153_v4, %v6414_v9 }
 0x10c   : > { %4020 = vmatpush.bf16.msrb.mxu1 %v6449_v41  ;;  %3989 = vmatmul.bf16.vlgmr.msra.gmra.mxu2 %v7881_v49  ;;  %v7217_v58 = vld [vmem:[%s7522_s17 + $0xfa4] sm:$0xf]  ;;  %v6670_v62 = vld [vmem:[%s7522_s17 + $0xfb0] sm:$0xf0]  ;;  %v6545_v16 = vor.u32 %v7185_v10, %v6542_v11  ;;  %v3705_v57 = vadd.f32 %v8154_v20, %v3692_v37 }
 0x10d   : > { %4033 = vmatpush.bf16.msrb.mxu2 %v6577_v42  ;;  %4002 = vmatmul.bf16.vlgmr.msra.gmra.mxu3 %v7887_v53  ;;  %v7117_v19 = vld [vmem:[%s7522_s17 + $0xc84] sm:$0xf]  ;;  %v6270_v22 = vld [vmem:[%s7522_s17 + $0xc90] sm:$0xf0]  ;;  %v6673_v26 = vor.u32 %v7217_v58, %v6670_v62 }
 0x10e   : > { %4046 = vmatpush.bf16.msrb.mxu3 %v6705_v48  ;;  %v7149_v25 = vld [vmem:[%s7522_s17 + $0xd84] sm:$0xf]  ;;  %v6398_v28 = vld [vmem:[%s7522_s17 + $0xd90] sm:$0xf0]  ;;  %v6273_v34 = vor.u32 %v7117_v19, %v6270_v22  ;;  %v3718_v3 = vadd.f32 %v8156_v23, %v3705_v57  ;;  %v4916_v57 = vld [vmem:[%s7522_s17 + $0x1e8] sm:$0xf] }
 0x10f   : > { %4008 = vmatpush.bf16.msrb.mxu0 %v6305_v60  ;;  %v7181_v29 = vld [vmem:[%s7522_s17 + $0xe84] sm:$0xf]  ;;  %v6526_v30 = vld [vmem:[%s7522_s17 + $0xe90] sm:$0xf0]  ;;  %v6401_v38 = vor.u32 %v7149_v25, %v6398_v28  ;;  %v8242_v1 = vpop.f32.mrf.mxu2 }
 0x110   : > { %4021 = vmatpush.bf16.msrb.mxu1 %v6433_v61  ;;  %v7213_v33 = vld [vmem:[%s7522_s17 + $0xf84] sm:$0xf]  ;;  %v6654_v6 = vld [vmem:[%s7522_s17 + $0xf90] sm:$0xf0]  ;;  %v6529_v39 = vor.u32 %v7181_v29, %v6526_v30  ;;  %v8247_v10 = vpop.f32.mrf.mxu3  ;;  %v3758_v58 = vpop.f32.mrf.mxu0 }
 0x111   : > { %4034 = vmatpush.bf16.msrb.mxu2 %v6561_v63  ;;  %v7113_v41 = vld [vmem:[%s7522_s17 + $0xc64] sm:$0xf]  ;;  %v6254_v42 = vld [vmem:[%s7522_s17 + $0xc70] sm:$0xf0]  ;;  %v6657_v46 = vor.u32 %v7213_v33, %v6654_v6 }
 0x112   : > { %4047 = vmatpush.bf16.msrb.mxu3 %v6689_v8  ;;  %v7145_v44 = vld [vmem:[%s7522_s17 + $0xd64] sm:$0xf]  ;;  %v6382_v47 = vld [vmem:[%s7522_s17 + $0xd70] sm:$0xf0]  ;;  %v6257_v27 = vor.u32 %v7113_v41, %v6254_v42 }
 0x113   : > { %4009 = vmatpush.bf16.msrb.mxu0 %v6289_v12  ;;  %v7177_v48 = vld [vmem:[%s7522_s17 + $0xe64] sm:$0xf]  ;;  %v6510_v52 = vld [vmem:[%s7522_s17 + $0xe70] sm:$0xf0]  ;;  %v6385_v59 = vor.u32 %v7145_v44, %v6382_v47  ;;  %v3771_v12 = vpop.f32.mrf.mxu1 }
 0x114   : > { %4022 = vmatpush.bf16.msrb.mxu1 %v6417_v13  ;;  %v7209_v55 = vld [vmem:[%s7522_s17 + $0xf64] sm:$0xf]  ;;  %v6638_v56 = vld [vmem:[%s7522_s17 + $0xf70] sm:$0xf0]  ;;  %v6513_v60 = vor.u32 %v7177_v48, %v6510_v52 }
 0x115   : > { %4035 = vmatpush.bf16.msrb.mxu2 %v6545_v16  ;;  %v7109_v5 = vld [vmem:[%s7522_s17 + $0xc44] sm:$0xf]  ;;  %v6238_v61 = vld [vmem:[%s7522_s17 + $0xc50] sm:$0xf0]  ;;  %v6641_v0 = vor.u32 %v7209_v55, %v6638_v56 }
 0x116   : > { %4048 = vmatpush.bf16.msrb.mxu3 %v6673_v26  ;;  %v7141_v63 = vld [vmem:[%s7522_s17 + $0xd44] sm:$0xf]  ;;  %v6366_v4 = vld [vmem:[%s7522_s17 + $0xd50] sm:$0xf0]  ;;  %v6241_v62 = vor.u32 %v7109_v5, %v6238_v61  ;;  %v6780_v5 = vld [vmem:[%s7522_s17 + $0x1f4] sm:$0xf0] }
 0x117   : > { %4010 = vmatpush.bf16.msrb.mxu0 %v6273_v34  ;;  %v7173_v8 = vld [vmem:[%s7522_s17 + $0xe44] sm:$0xf]  ;;  %v6494_v9 = vld [vmem:[%s7522_s17 + $0xe50] sm:$0xf0]  ;;  %v6369_v13 = vor.u32 %v7141_v63, %v6366_v4  ;;  %v3784_v56 = vpop.f32.mrf.mxu2  ;;  %v5044_v61 = vld [vmem:[%s7522_s17 + $0x2e8] sm:$0xf]  ;;  %v4917_v12 = vor.u32 %v6780_v5, %v4916_v57 }
 0x118   : > { %4023 = vmatpush.bf16.msrb.mxu1 %v6401_v38  ;;  %v7205_v20 = vld [vmem:[%s7522_s17 + $0xf44] sm:$0xf]  ;;  %v6622_v11 = vld [vmem:[%s7522_s17 + $0xf50] sm:$0xf0]  ;;  %v6497_v16 = vor.u32 %v7173_v8, %v6494_v9  ;;  %v3731_v38 = vadd.f32 %v8161_v31, %v3718_v3  ;;  %v4788_v31 = vld [vmem:[%s7522_s17 + $0xe8] sm:$0xf] }
 0x119   : > { %4036 = vmatpush.bf16.msrb.mxu2 %v6529_v39  ;;  %v7105_v19 = vld [vmem:[%s7522_s17 + $0xc24] sm:$0xf]  ;;  %v6222_v22 = vld [vmem:[%s7522_s17 + $0xc30] sm:$0xf0]  ;;  %v6625_v26 = vor.u32 %v7205_v20, %v6622_v11  ;;  %v6812_v63 = vld [vmem:[%s7522_s17 + $0x2f4] sm:$0xf0] }
 0x11a   : > { %4049 = vmatpush.bf16.msrb.mxu3 %v6657_v46  ;;  %v7137_v25 = vld [vmem:[%s7522_s17 + $0xd24] sm:$0xf]  ;;  %v6350_v28 = vld [vmem:[%s7522_s17 + $0xd30] sm:$0xf0]  ;;  %v6225_v6 = vor.u32 %v7105_v19, %v6222_v22  ;;  %v5172_v9 = vld [vmem:[%s7522_s17 + $0x3e8] sm:$0xf]  ;;  %v5045_v3 = vor.u32 %v6812_v63, %v5044_v61 }
 0x11b   : > { %4011 = vmatpush.bf16.msrb.mxu0 %v6257_v27  ;;  %v7169_v29 = vld [vmem:[%s7522_s17 + $0xe24] sm:$0xf]  ;;  %v6478_v30 = vld [vmem:[%s7522_s17 + $0xe30] sm:$0xf0]  ;;  %v6353_v39 = vor.u32 %v7137_v25, %v6350_v28  ;;  %v6748_v27 = vld [vmem:[%s7522_s17 + $0xf4] sm:$0xf0] }
 0x11c   : > { %4024 = vmatpush.bf16.msrb.mxu1 %v6385_v59  ;;  %v7201_v33 = vld [vmem:[%s7522_s17 + $0xf24] sm:$0xf]  ;;  %v6606_v23 = vld [vmem:[%s7522_s17 + $0xf30] sm:$0xf0]  ;;  %v6481_v41 = vor.u32 %v7169_v29, %v6478_v30  ;;  %v3797_v59 = vpop.f32.mrf.mxu3  ;;  %v6844_v20 = vld [vmem:[%s7522_s17 + $0x3f4] sm:$0xf0]  ;;  %v4789_v58 = vor.u32 %v6748_v27, %v4788_v31 }
 0x11d   : > { %4037 = vmatpush.bf16.msrb.mxu2 %v6513_v60  ;;  %v7101_v34 = vld [vmem:[%s7522_s17 + $0xc04] sm:$0xf]  ;;  %v6206_v37 = vld [vmem:[%s7522_s17 + $0xc10] sm:$0xf0]  ;;  %v6609_v47 = vor.u32 %v7201_v33, %v6606_v23  ;;  %v5173_v19 = vor.u32 %v6844_v20, %v5172_v9  ;;  %v6776_v22 = vld [vmem:[%s7522_s17 + $0x1d4] sm:$0xf0] }
 0x11e   : > { %4050 = vmatpush.bf16.msrb.mxu3 %v6641_v0  ;;  %v7133_v42 = vld [vmem:[%s7522_s17 + $0xd04] sm:$0xf]  ;;  %v6334_v44 = vld [vmem:[%s7522_s17 + $0xd10] sm:$0xf0]  ;;  %v6209_v60 = vor.u32 %v7101_v34, %v6206_v37  ;;  %v3744_v0 = vadd.f32 %v8171_v51, %v3731_v38  ;;  %v6744_v51 = vld [vmem:[%s7522_s17 + $0xd4] sm:$0xf0] }
 0x11f   : > { %4012 = vmatpush.bf16.msrb.mxu0 %v6241_v62  ;;  %v7165_v46 = vld [vmem:[%s7522_s17 + $0xe04] sm:$0xf]  ;;  %v6462_v48 = vld [vmem:[%s7522_s17 + $0xe10] sm:$0xf0]  ;;  %v6337_v4 = vor.u32 %v7133_v42, %v6334_v44  ;;  %v5028_v25 = vld [vmem:[%s7522_s17 + $0x2c8] sm:$0xf] }
 0x120   : > { %4025 = vmatpush.bf16.msrb.mxu1 %v6369_v13  ;;  %v7197_v52 = vld [vmem:[%s7522_s17 + $0xf04] sm:$0xf]  ;;  %v6590_v55 = vld [vmem:[%s7522_s17 + $0xf10] sm:$0xf0]  ;;  %v6465_v8 = vor.u32 %v7165_v46, %v6462_v48  ;;  %v3757_v62 = vadd.f32 %v8223_v32, %v3744_v0  ;;  %v4772_v13 = vld [vmem:[%s7522_s17 + $0xc8] sm:$0xf] }
 0x121   : > { %4038 = vmatpush.bf16.msrb.mxu2 %v6497_v16  ;;  %v6593_v11 = vor.u32 %v7197_v52, %v6590_v55  ;;  %v4900_v16 = vld [vmem:[%s7522_s17 + $0x1c8] sm:$0xf]  ;;  %v6840_v29 = vld [vmem:[%s7522_s17 + $0x3d4] sm:$0xf0]  ;;  %v4773_v32 = vor.u32 %v6744_v51, %v4772_v13 }
 0x122   : > { %4051 = vmatpush.bf16.msrb.mxu3 %v6625_v26  ;;  %v6808_v26 = vld [vmem:[%s7522_s17 + $0x2d4] sm:$0xf0]  ;;  %v5156_v28 = vld [vmem:[%s7522_s17 + $0x3c8] sm:$0xf]  ;;  %v3770_v30 = vadd.f32 %v8227_v36, %v3757_v62  ;;  %v4901_v33 = vor.u32 %v6776_v22, %v4900_v16  ;;  %v4490_v22 = vld [vmem:[%s7528_s26] sm:$0xf] }
 0x123   : > { %4013 = vmatpush.bf16.msrb.mxu0 %v6225_v6  ;;  %v5029_v23 = vor.u32 %v6808_v26, %v5028_v25  ;;  %v4756_v6 = vld [vmem:[%s7522_s17 + $0xa8] sm:$0xf]  ;;  %v6740_v34 = vld [vmem:[%s7522_s17 + $0xb4] sm:$0xf0]  ;;  %v5157_v38 = vor.u32 %v6840_v29, %v5156_v28 }
 0x124   : > { %4026 = vmatpush.bf16.msrb.mxu1 %v6353_v39  ;;  %v4884_v37 = vld [vmem:[%s7522_s17 + $0x1a8] sm:$0xf]  ;;  %v6772_v39 = vld [vmem:[%s7522_s17 + $0x1b4] sm:$0xf0]  ;;  %v3783_v36 = vadd.f32 %v8242_v1, %v3770_v30 }
 0x125   : > { %4039 = vmatpush.bf16.msrb.mxu2 %v6481_v41  ;;  %v5012_v41 = vld [vmem:[%s7522_s17 + $0x2a8] sm:$0xf]  ;;  %v6804_v42 = vld [vmem:[%s7522_s17 + $0x2b4] sm:$0xf0]  ;;  %v4885_v1 = vor.u32 %v6772_v39, %v4884_v37 }
 0x126   : > { %4052 = vmatpush.bf16.msrb.mxu3 %v6609_v47  ;;  %v5140_v44 = vld [vmem:[%s7522_s17 + $0x3a8] sm:$0xf]  ;;  %v6836_v46 = vld [vmem:[%s7522_s17 + $0x3b4] sm:$0xf0]  ;;  %v4757_v47 = vor.u32 %v6740_v34, %v4756_v6  ;;  %v5013_v48 = vor.u32 %v6804_v42, %v5012_v41  ;;  %v4492_v41 = vperm.slane %v4490_v22, 0 }
 0x127   : > { %4014 = vmatpush.bf16.msrb.mxu0 %v6209_v60  ;;  %v4740_v52 = vld [vmem:[%s7522_s17 + $0x88] sm:$0xf]  ;;  %v6736_v55 = vld [vmem:[%s7522_s17 + $0x94] sm:$0xf0]  ;;  %v5141_v31 = vor.u32 %v6836_v46, %v5140_v44  ;;  %v3796_v60 = vadd.f32 %v8247_v10, %v3783_v36  ;;  %v3808_v5 = vpop.f32.mrf.mxu0 }
 0x128   : > { %4027 = vmatpush.bf16.msrb.mxu1 %v6337_v4  ;;  %v4868_v56 = vld [vmem:[%s7522_s17 + $0x188] sm:$0xf]  ;;  %v6768_v27 = vld [vmem:[%s7522_s17 + $0x194] sm:$0xf0]  ;;  %v4741_v0 = vor.u32 %v6736_v55, %v4740_v52  ;;  %v3821_v4 = vpop.f32.mrf.mxu1 }
 0x129   : > { %4040 = vmatpush.bf16.msrb.mxu2 %v6465_v8  ;;  %v4996_v57 = vld [vmem:[%s7522_s17 + $0x288] sm:$0xf]  ;;  %v6800_v59 = vld [vmem:[%s7522_s17 + $0x294] sm:$0xf0]  ;;  %v3809_v10 = vadd.f32 %v3808_v5, %v3796_v60  ;;  %v4869_v8 = vor.u32 %v6768_v27, %v4868_v56 }
 0x12a   : > { %4053 = vmatpush.bf16.msrb.mxu3 %v6593_v11  ;;  %4015 = vmatmul.bf16.vlgmr.msrb.gmra.mxu0 %v7969_v2  ;;  %v5124_v61 = vld [vmem:[%s7522_s17 + $0x388] sm:$0xf]  ;;  %v6832_v63 = vld [vmem:[%s7522_s17 + $0x394] sm:$0xf0]  ;;  %v4997_v9 = vor.u32 %v6800_v59, %v4996_v57 }
 0x12b   : > { %4059 = vmatpush.bf16.msra.mxu0 %v4789_v58  ;;  %4028 = vmatmul.bf16.vlgmr.msrb.gmra.mxu1 %v7976_v18  ;;  %v4724_v20 = vld [vmem:[%s7522_s17 + $0x68] sm:$0xf]  ;;  %v6732_v11 = vld [vmem:[%s7522_s17 + $0x74] sm:$0xf0]  ;;  %v5125_v62 = vor.u32 %v6832_v63, %v5124_v61  ;;  %v3822_v25 = vadd.f32 %v3821_v4, %v3809_v10 }
 0x12c   : > { %4072 = vmatpush.bf16.msra.mxu1 %v4917_v12  ;;  %4041 = vmatmul.bf16.vlgmr.msrb.gmra.mxu2 %v7974_v17  ;;  %v4852_v58 = vld [vmem:[%s7522_s17 + $0x168] sm:$0xf]  ;;  %v6764_v12 = vld [vmem:[%s7522_s17 + $0x174] sm:$0xf0] }
 0x12d   : > { %4085 = vmatpush.bf16.msra.mxu2 %v5045_v3  ;;  %4054 = vmatmul.bf16.vlgmr.msrb.gmra.mxu3 %v7980_v21  ;;  %v4980_v3 = vld [vmem:[%s7522_s17 + $0x268] sm:$0xf]  ;;  %v6796_v13 = vld [vmem:[%s7522_s17 + $0x274] sm:$0xf0]  ;;  %v4853_v26 = vor.u32 %v6764_v12, %v4852_v58 }
 0x12e   : > { %4098 = vmatpush.bf16.msra.mxu3 %v5173_v19  ;;  %v5108_v51 = vld [vmem:[%s7522_s17 + $0x368] sm:$0xf]  ;;  %v6828_v16 = vld [vmem:[%s7522_s17 + $0x374] sm:$0xf0]  ;;  %v4725_v19 = vor.u32 %v6732_v11, %v4724_v20  ;;  %v4981_v28 = vor.u32 %v6796_v13, %v4980_v3 }
 0x12f   : > { %4060 = vmatpush.bf16.msra.mxu0 %v4773_v32  ;;  %v4708_v29 = vld [vmem:[%s7522_s17 + $0x48] sm:$0xf]  ;;  %v6728_v32 = vld [vmem:[%s7522_s17 + $0x54] sm:$0xf0]  ;;  %v3810_v44 = vpop.f32.mrf.mxu0 }
 0x130   : > { %4073 = vmatpush.bf16.msra.mxu1 %v4901_v33  ;;  %v4836_v30 = vld [vmem:[%s7522_s17 + $0x148] sm:$0xf]  ;;  %v5109_v33 = vor.u32 %v6828_v16, %v5108_v51  ;;  %v6760_v6 = vld [vmem:[%s7522_s17 + $0x154] sm:$0xf0]  ;;  %v3847_v39 = vpop.f32.mrf.mxu3  ;;  %v4709_v46 = vor.u32 %v6728_v32, %v4708_v29 }
 0x131   : > { %4086 = vmatpush.bf16.msra.mxu2 %v5029_v23  ;;  %v3834_v23 = vpop.f32.mrf.mxu2  ;;  %v4964_v34 = vld [vmem:[%s7522_s17 + $0x248] sm:$0xf]  ;;  %v6792_v37 = vld [vmem:[%s7522_s17 + $0x254] sm:$0xf0] }
 0x132   : > { %4099 = vmatpush.bf16.msra.mxu3 %v5157_v38  ;;  %v3835_v38 = vadd.f32 %v3834_v23, %v3822_v25  ;;  %v5092_v42 = vld [vmem:[%s7522_s17 + $0x348] sm:$0xf]  ;;  %v6824_v36 = vld [vmem:[%s7522_s17 + $0x354] sm:$0xf0]  ;;  %v4965_v52 = vor.u32 %v6792_v37, %v4964_v34 }
 0x133   : > { %4061 = vmatpush.bf16.msra.mxu0 %v4757_v47  ;;  %v3823_v47 = vpop.f32.mrf.mxu1  ;;  %v4692_v55 = vld [vmem:[%s7522_s17 + $0x28] sm:$0xf]  ;;  %v6724_v56 = vld [vmem:[%s7522_s17 + $0x34] sm:$0xf0]  ;;  %v5093_v27 = vor.u32 %v6824_v36, %v5092_v42 }
 0x134   : > { %4074 = vmatpush.bf16.msra.mxu1 %v4885_v1  ;;  %v3848_v1 = vadd.f32 %v3847_v39, %v3835_v38  ;;  %v6756_v57 = vld [vmem:[%s7522_s17 + $0x134] sm:$0xf0]  ;;  %v4948_v59 = vld [vmem:[%s7522_s17 + $0x228] sm:$0xf] }
 0x135   : > { %4087 = vmatpush.bf16.msra.mxu2 %v5013_v48  ;;  %v4837_v48 = vor.u32 %v6760_v6, %v4836_v30  ;;  %v6788_v60 = vld [vmem:[%s7522_s17 + $0x234] sm:$0xf0]  ;;  %v5076_v61 = vld [vmem:[%s7522_s17 + $0x328] sm:$0xf] }
 0x136   : > { %4100 = vmatpush.bf16.msra.mxu3 %v5141_v31  ;;  %v4820_v31 = vld [vmem:[%s7522_s17 + $0x128] sm:$0xf]  ;;  %v4500_v5 = vadd.f32 %v4492_v41, %v3848_v1  ;;  %v6820_v63 = vld [vmem:[%s7522_s17 + $0x334] sm:$0xf0] }
 0x137   : > { %4062 = vmatpush.bf16.msra.mxu0 %v4741_v0  ;;  %v4693_v0 = vor.u32 %v6724_v56, %v4692_v55  ;;  %v4676_v4 = vld [vmem:[%s7522_s17 + $0x8] sm:$0xf]  ;;  %v6720_v10 = vld [vmem:[%s7522_s17 + $0x14] sm:$0xf0] }
 0x138   : > { %4075 = vmatpush.bf16.msra.mxu1 %v4869_v8  ;;  %4504 = vst [vmem:[%s8347_s14] sm:$0xff] %v4500_v5  ;;  %v4821_v8 = vor.u32 %v6756_v57, %v4820_v31  ;;  %v4804_v20 = vld [vmem:[%s7522_s17 + $0x108] sm:$0xf]  ;;  %v6752_v11 = vld [vmem:[%s7522_s17 + $0x114] sm:$0xf0]  ;;  %v3849_v25 = vpop.f32.mrf.mxu3 }
 0x139   : > { %4088 = vmatpush.bf16.msra.mxu2 %v4997_v9  ;;  %v4949_v9 = vor.u32 %v6788_v60, %v4948_v59  ;;  %v4932_v58 = vld [vmem:[%s7522_s17 + $0x208] sm:$0xf]  ;;  %v6784_v12 = vld [vmem:[%s7522_s17 + $0x214] sm:$0xf0]  ;;  %v3836_v51 = vpop.f32.mrf.mxu2  ;;  %v4805_v30 = vor.u32 %v6752_v11, %v4804_v20 }
 0x13a   : > { %4101 = vmatpush.bf16.msra.mxu3 %v5125_v62  ;;  %v5077_v62 = vor.u32 %v6820_v63, %v5076_v61  ;;  %v5060_v3 = vld [vmem:[%s7522_s17 + $0x308] sm:$0xf]  ;;  %v6816_v13 = vld [vmem:[%s7522_s17 + $0x314] sm:$0xf0] }
 0x13b   : > { %4063 = vmatpush.bf16.msra.mxu0 %v4725_v19  ;;  %v5300_v16 = vld [vmem:[%s7522_s17 + $0x4e8] sm:$0xf]  ;;  %v6876_v19 = vld [vmem:[%s7522_s17 + $0x4f4] sm:$0xf0]  ;;  %v5061_v34 = vor.u32 %v6816_v13, %v5060_v3 }
 0x13c   : > { %4076 = vmatpush.bf16.msra.mxu1 %v4853_v26  ;;  %v5428_v22 = vld [vmem:[%s7522_s17 + $0x5e8] sm:$0xf]  ;;  %v4677_v26 = vor.u32 %v6720_v10, %v4676_v4  ;;  %v6940_v32 = vld [vmem:[%s7522_s17 + $0x6f4] sm:$0xf0]  ;;  %v5301_v37 = vor.u32 %v6876_v19, %v5300_v16 }
 0x13d   : > { %4089 = vmatpush.bf16.msra.mxu2 %v4981_v28  ;;  %v6908_v28 = vld [vmem:[%s7522_s17 + $0x5f4] sm:$0xf0]  ;;  %v5556_v29 = vld [vmem:[%s7522_s17 + $0x6e8] sm:$0xf] }
 0x13e   : > { %4102 = vmatpush.bf16.msra.mxu3 %v5109_v33  ;;  %v4933_v33 = vor.u32 %v6784_v12, %v4932_v58  ;;  %v5684_v23 = vld [vmem:[%s7522_s17 + $0x7e8] sm:$0xf]  ;;  %v6972_v6 = vld [vmem:[%s7522_s17 + $0x7f4] sm:$0xf0]  ;;  %v5429_v38 = vor.u32 %v6908_v28, %v5428_v22  ;;  %v5557_v39 = vor.u32 %v6940_v32, %v5556_v29 }
 0x13f   : > { %4064 = vmatpush.bf16.msra.mxu0 %v4709_v46  ;;  %v5284_v41 = vld [vmem:[%s7522_s17 + $0x4c8] sm:$0xf]  ;;  %v6872_v42 = vld [vmem:[%s7522_s17 + $0x4d4] sm:$0xf0]  ;;  %v5685_v44 = vor.u32 %v6972_v6, %v5684_v23 }
 0x140   : > { %4077 = vmatpush.bf16.msra.mxu1 %v4837_v48  ;;  %v5412_v36 = vld [vmem:[%s7522_s17 + $0x5c8] sm:$0xf]  ;;  %v6904_v46 = vld [vmem:[%s7522_s17 + $0x5d4] sm:$0xf0]  ;;  %v5285_v55 = vor.u32 %v6872_v42, %v5284_v41 }
 0x141   : > { %4090 = vmatpush.bf16.msra.mxu2 %v4965_v52  ;;  %v5540_v47 = vld [vmem:[%s7522_s17 + $0x6c8] sm:$0xf]  ;;  %v6936_v1 = vld [vmem:[%s7522_s17 + $0x6d4] sm:$0xf0]  ;;  %v5413_v56 = vor.u32 %v6904_v46, %v5412_v36 }
 0x142   : > { %4103 = vmatpush.bf16.msra.mxu3 %v5093_v27  ;;  %v5668_v48 = vld [vmem:[%s7522_s17 + $0x7c8] sm:$0xf]  ;;  %v6968_v52 = vld [vmem:[%s7522_s17 + $0x7d4] sm:$0xf0]  ;;  %v5541_v31 = vor.u32 %v6936_v1, %v5540_v47 }
 0x143   : > { %4065 = vmatpush.bf16.msra.mxu0 %v4693_v0  ;;  %v5268_v27 = vld [vmem:[%s7522_s17 + $0x4a8] sm:$0xf]  ;;  %v6868_v57 = vld [vmem:[%s7522_s17 + $0x4b4] sm:$0xf0]  ;;  %v5669_v60 = vor.u32 %v6968_v52, %v5668_v48 }
 0x144   : > { %4078 = vmatpush.bf16.msra.mxu1 %v4821_v8  ;;  %v5396_v59 = vld [vmem:[%s7522_s17 + $0x5a8] sm:$0xf]  ;;  %v6900_v5 = vld [vmem:[%s7522_s17 + $0x5b4] sm:$0xf0]  ;;  %v5269_v10 = vor.u32 %v6868_v57, %v5268_v27 }
 0x145   : > { %4091 = vmatpush.bf16.msra.mxu2 %v4949_v9  ;;  %v5524_v61 = vld [vmem:[%s7522_s17 + $0x6a8] sm:$0xf]  ;;  %v6932_v63 = vld [vmem:[%s7522_s17 + $0x6b4] sm:$0xf0]  ;;  %v5397_v8 = vor.u32 %v6900_v5, %v5396_v59 }
 0x146   : > { %4104 = vmatpush.bf16.msra.mxu3 %v5077_v62  ;;  %v5652_v0 = vld [vmem:[%s7522_s17 + $0x7a8] sm:$0xf]  ;;  %v6964_v4 = vld [vmem:[%s7522_s17 + $0x7b4] sm:$0xf0]  ;;  %v5525_v9 = vor.u32 %v6932_v63, %v5524_v61 }
 0x147   : > { %4066 = vmatpush.bf16.msra.mxu0 %v4677_v26  ;;  %v5252_v20 = vld [vmem:[%s7522_s17 + $0x488] sm:$0xf]  ;;  %v6864_v11 = vld [vmem:[%s7522_s17 + $0x494] sm:$0xf0]  ;;  %v5653_v62 = vor.u32 %v6964_v4, %v5652_v0  ;;  %v3860_v22 = vpop.f32.mrf.mxu0 }
 0x148   : > { %4079 = vmatpush.bf16.msra.mxu1 %v4805_v30  ;;  %v5380_v58 = vld [vmem:[%s7522_s17 + $0x588] sm:$0xf]  ;;  %v6896_v12 = vld [vmem:[%s7522_s17 + $0x594] sm:$0xf0]  ;;  %v5253_v19 = vor.u32 %v6864_v11, %v5252_v20  ;;  %v3873_v30 = vpop.f32.mrf.mxu1 }
 0x149   : > { %4092 = vmatpush.bf16.msra.mxu2 %v4933_v33  ;;  %v5508_v3 = vld [vmem:[%s7522_s17 + $0x688] sm:$0xf]  ;;  %v6928_v13 = vld [vmem:[%s7522_s17 + $0x694] sm:$0xf0]  ;;  %v5381_v25 = vor.u32 %v6896_v12, %v5380_v58 }
 0x14a   : > { %4105 = vmatpush.bf16.msra.mxu3 %v5061_v34  ;;  %4067 = vmatmul.bf16.vlgmr.msra.gmra.mxu0 %v7685_v7  ;;  %v5636_v51 = vld [vmem:[%s7522_s17 + $0x788] sm:$0xf]  ;;  %v6960_v16 = vld [vmem:[%s7522_s17 + $0x794] sm:$0xf0]  ;;  %v5509_v26 = vor.u32 %v6928_v13, %v5508_v3 }
 0x14b   : > { %4111 = vmatpush.bf16.msrb.mxu0 %v5301_v37  ;;  %4080 = vmatmul.bf16.vlgmr.msra.gmra.mxu1 %v7699_v15  ;;  %v5236_v28 = vld [vmem:[%s7522_s17 + $0x468] sm:$0xf]  ;;  %v6860_v29 = vld [vmem:[%s7522_s17 + $0x474] sm:$0xf0]  ;;  %v5637_v33 = vor.u32 %v6960_v16, %v5636_v51  ;;  %v3874_v37 = vadd.f32 %v3873_v30, %v3860_v22 }
 0x14c   : > { %4124 = vmatpush.bf16.msrb.mxu1 %v5429_v38  ;;  %4093 = vmatmul.bf16.vlgmr.msra.gmra.mxu2 %v7664_v54  ;;  %v5364_v32 = vld [vmem:[%s7522_s17 + $0x568] sm:$0xf]  ;;  %v6892_v23 = vld [vmem:[%s7522_s17 + $0x574] sm:$0xf0]  ;;  %v5237_v41 = vor.u32 %v6860_v29, %v5236_v28 }
 0x14d   : > { %4137 = vmatpush.bf16.msrb.mxu2 %v5557_v39  ;;  %4106 = vmatmul.bf16.vlgmr.msra.gmra.mxu3 %v7697_v14  ;;  %v5492_v6 = vld [vmem:[%s7522_s17 + $0x668] sm:$0xf]  ;;  %v6924_v34 = vld [vmem:[%s7522_s17 + $0x674] sm:$0xf0]  ;;  %v5365_v42 = vor.u32 %v6892_v23, %v5364_v32 }
 0x14e   : > { %4150 = vmatpush.bf16.msrb.mxu3 %v5685_v44  ;;  %v5620_v38 = vld [vmem:[%s7522_s17 + $0x768] sm:$0xf]  ;;  %v6956_v39 = vld [vmem:[%s7522_s17 + $0x774] sm:$0xf0]  ;;  %v5493_v36 = vor.u32 %v6924_v34, %v5492_v6 }
 0x14f   : > { %4112 = vmatpush.bf16.msrb.mxu0 %v5285_v55  ;;  %v5220_v44 = vld [vmem:[%s7522_s17 + $0x448] sm:$0xf]  ;;  %v6856_v46 = vld [vmem:[%s7522_s17 + $0x454] sm:$0xf0]  ;;  %v3886_v1 = vpop.f32.mrf.mxu2  ;;  %v5621_v48 = vor.u32 %v6956_v39, %v5620_v38  ;;  %v3862_v61 = vpop.f32.mrf.mxu0 }
 0x150   : > { %4125 = vmatpush.bf16.msrb.mxu1 %v5413_v56  ;;  %v5348_v47 = vld [vmem:[%s7522_s17 + $0x548] sm:$0xf]  ;;  %v6888_v52 = vld [vmem:[%s7522_s17 + $0x554] sm:$0xf0]  ;;  %v3899_v27 = vpop.f32.mrf.mxu3 }
 0x151   : > { %4138 = vmatpush.bf16.msrb.mxu2 %v5541_v31  ;;  %v5476_v55 = vld [vmem:[%s7522_s17 + $0x648] sm:$0xf]  ;;  %v6920_v56 = vld [vmem:[%s7522_s17 + $0x654] sm:$0xf0]  ;;  %v3887_v31 = vadd.f32 %v3886_v1, %v3874_v37  ;;  %v5349_v63 = vor.u32 %v6888_v52, %v5348_v47 }
 0x152   : > { %4151 = vmatpush.bf16.msrb.mxu3 %v5669_v60  ;;  %v5604_v57 = vld [vmem:[%s7522_s17 + $0x748] sm:$0xf]  ;;  %v6952_v59 = vld [vmem:[%s7522_s17 + $0x754] sm:$0xf0]  ;;  %v5221_v60 = vor.u32 %v6856_v46, %v5220_v44  ;;  %v5477_v0 = vor.u32 %v6920_v56, %v5476_v55 }
 0x153   : > { %4113 = vmatpush.bf16.msrb.mxu0 %v5269_v10  ;;  %v8415_v5 = vadd.f32 %v3899_v27, %v3887_v31  ;;  %v5204_v4 = vld [vmem:[%s7522_s17 + $0x428] sm:$0xf]  ;;  %v6852_v10 = vld [vmem:[%s7522_s17 + $0x434] sm:$0xf0]  ;;  %v5605_v20 = vor.u32 %v6952_v59, %v5604_v57 }
 0x154   : > { %4126 = vmatpush.bf16.msrb.mxu1 %v5397_v8  ;;  %v5332_v8 = vld [vmem:[%s7522_s17 + $0x528] sm:$0xf]  ;;  %v6884_v11 = vld [vmem:[%s7522_s17 + $0x534] sm:$0xf0]  ;;  %v5205_v13 = vor.u32 %v6852_v10, %v5204_v4 }
 0x155   : > { %4139 = vmatpush.bf16.msrb.mxu2 %v5525_v9  ;;  %v3875_v9 = vpop.f32.mrf.mxu1  ;;  %v5460_v58 = vld [vmem:[%s7522_s17 + $0x628] sm:$0xf]  ;;  %v6948_v3 = vld [vmem:[%s7522_s17 + $0x734] sm:$0xf0] }
 0x156   : > { %4152 = vmatpush.bf16.msrb.mxu3 %v5653_v62  ;;  %v6916_v62 = vld [vmem:[%s7522_s17 + $0x634] sm:$0xf0]  ;;  %v5588_v12 = vld [vmem:[%s7522_s17 + $0x728] sm:$0xf] }
 0x157   : > { %4114 = vmatpush.bf16.msrb.mxu0 %v5253_v19  ;;  %v5188_v51 = vld [vmem:[%s7522_s17 + $0x408] sm:$0xf]  ;;  %v6848_v16 = vld [vmem:[%s7522_s17 + $0x414] sm:$0xf0]  ;;  %v5333_v19 = vor.u32 %v6884_v11, %v5332_v8  ;;  %v5461_v22 = vor.u32 %v6916_v62, %v5460_v58  ;;  %v3888_v29 = vpop.f32.mrf.mxu2  ;;  %v5589_v32 = vor.u32 %v6948_v3, %v5588_v12 }
 0x158   : > { %4127 = vmatpush.bf16.msrb.mxu1 %v5381_v25  ;;  %v5316_v25 = vld [vmem:[%s7522_s17 + $0x508] sm:$0xf]  ;;  %v6912_v30 = vld [vmem:[%s7522_s17 + $0x614] sm:$0xf0]  ;;  %v3901_v6 = vpop.f32.mrf.mxu3  ;;  %v5189_v39 = vor.u32 %v6848_v16, %v5188_v51 }
 0x159   : > { %4140 = vmatpush.bf16.msrb.mxu2 %v5509_v26  ;;  %v6880_v26 = vld [vmem:[%s7522_s17 + $0x514] sm:$0xf0]  ;;  %v5444_v28 = vld [vmem:[%s7522_s17 + $0x608] sm:$0xf] }
 0x15a   : > { %4153 = vmatpush.bf16.msrb.mxu3 %v5637_v33  ;;  %v5572_v33 = vld [vmem:[%s7522_s17 + $0x708] sm:$0xf]  ;;  %v6944_v23 = vld [vmem:[%s7522_s17 + $0x714] sm:$0xf0]  ;;  %v5317_v44 = vor.u32 %v6880_v26, %v5316_v25  ;;  %v5445_v46 = vor.u32 %v6912_v30, %v5444_v28 }
 0x15b   : > { %4115 = vmatpush.bf16.msrb.mxu0 %v5237_v41  ;;  %v5812_v34 = vld [vmem:[%s7522_s17 + $0x8e8] sm:$0xf]  ;;  %v7004_v37 = vld [vmem:[%s7522_s17 + $0x8f4] sm:$0xf0] }
 0x15c   : > { %4128 = vmatpush.bf16.msrb.mxu1 %v5365_v42  ;;  %v5940_v38 = vld [vmem:[%s7522_s17 + $0x9e8] sm:$0xf]  ;;  %v7036_v41 = vld [vmem:[%s7522_s17 + $0x9f4] sm:$0xf0]  ;;  %v5813_v52 = vor.u32 %v7004_v37, %v5812_v34 }
 0x15d   : > { %4141 = vmatpush.bf16.msrb.mxu2 %v5493_v36  ;;  %v6068_v42 = vld [vmem:[%s7522_s17 + $0xae8] sm:$0xf]  ;;  %v7068_v36 = vld [vmem:[%s7522_s17 + $0xaf4] sm:$0xf0]  ;;  %v5941_v55 = vor.u32 %v7036_v41, %v5940_v38 }
 0x15e   : > { %4154 = vmatpush.bf16.msrb.mxu3 %v5621_v48  ;;  %v6196_v47 = vld [vmem:[%s7522_s17 + $0xbe8] sm:$0xf]  ;;  %v7100_v1 = vld [vmem:[%s7522_s17 + $0xbf4] sm:$0xf0]  ;;  %v5573_v48 = vor.u32 %v6944_v23, %v5572_v33  ;;  %v6069_v56 = vor.u32 %v7068_v36, %v6068_v42 }
 0x15f   : > { %4116 = vmatpush.bf16.msrb.mxu0 %v5221_v60  ;;  %v5796_v31 = vld [vmem:[%s7522_s17 + $0x8c8] sm:$0xf]  ;;  %v7000_v27 = vld [vmem:[%s7522_s17 + $0x8d4] sm:$0xf0]  ;;  %v6197_v59 = vor.u32 %v7100_v1, %v6196_v47 }
 0x160   : > { %4129 = vmatpush.bf16.msrb.mxu1 %v5349_v63  ;;  %v5924_v57 = vld [vmem:[%s7522_s17 + $0x9c8] sm:$0xf]  ;;  %v7032_v60 = vld [vmem:[%s7522_s17 + $0x9d4] sm:$0xf0]  ;;  %v5797_v10 = vor.u32 %v7000_v27, %v5796_v31 }
 0x161   : > { %4142 = vmatpush.bf16.msrb.mxu2 %v5477_v0  ;;  %v6052_v61 = vld [vmem:[%s7522_s17 + $0xac8] sm:$0xf]  ;;  %v7064_v63 = vld [vmem:[%s7522_s17 + $0xad4] sm:$0xf0]  ;;  %v5925_v8 = vor.u32 %v7032_v60, %v5924_v57 }
 0x162   : > { %4155 = vmatpush.bf16.msrb.mxu3 %v5605_v20  ;;  %v6180_v0 = vld [vmem:[%s7522_s17 + $0xbc8] sm:$0xf]  ;;  %v7096_v4 = vld [vmem:[%s7522_s17 + $0xbd4] sm:$0xf0]  ;;  %v6053_v9 = vor.u32 %v7064_v63, %v6052_v61 }
 0x163   : > { %4117 = vmatpush.bf16.msrb.mxu0 %v5205_v13  ;;  %v5780_v20 = vld [vmem:[%s7522_s17 + $0x8a8] sm:$0xf]  ;;  %v6996_v11 = vld [vmem:[%s7522_s17 + $0x8b4] sm:$0xf0]  ;;  %v6181_v62 = vor.u32 %v7096_v4, %v6180_v0 }
 0x164   : > { %4130 = vmatpush.bf16.msrb.mxu1 %v5333_v19  ;;  %v5908_v58 = vld [vmem:[%s7522_s17 + $0x9a8] sm:$0xf]  ;;  %v7028_v12 = vld [vmem:[%s7522_s17 + $0x9b4] sm:$0xf0]  ;;  %v5781_v19 = vor.u32 %v6996_v11, %v5780_v20 }
 0x165   : > { %4143 = vmatpush.bf16.msrb.mxu2 %v5461_v22  ;;  %v6036_v3 = vld [vmem:[%s7522_s17 + $0xaa8] sm:$0xf]  ;;  %v7060_v13 = vld [vmem:[%s7522_s17 + $0xab4] sm:$0xf0]  ;;  %v5909_v22 = vor.u32 %v7028_v12, %v5908_v58 }
 0x166   : > { %4156 = vmatpush.bf16.msrb.mxu3 %v5589_v32  ;;  %v6164_v51 = vld [vmem:[%s7522_s17 + $0xba8] sm:$0xf]  ;;  %v7092_v16 = vld [vmem:[%s7522_s17 + $0xbb4] sm:$0xf0]  ;;  %v6037_v25 = vor.u32 %v7060_v13, %v6036_v3 }
 0x167   : > { %4118 = vmatpush.bf16.msrb.mxu0 %v5189_v39  ;;  %v5764_v26 = vld [vmem:[%s7522_s17 + $0x888] sm:$0xf]  ;;  %v6992_v28 = vld [vmem:[%s7522_s17 + $0x894] sm:$0xf0]  ;;  %v6165_v32 = vor.u32 %v7092_v16, %v6164_v51  ;;  %v8469_v38 = vpop.f32.mrf.mxu0 }
 0x168   : > { %4131 = vmatpush.bf16.msrb.mxu1 %v5317_v44  ;;  %v5892_v29 = vld [vmem:[%s7522_s17 + $0x988] sm:$0xf]  ;;  %v7024_v30 = vld [vmem:[%s7522_s17 + $0x994] sm:$0xf0]  ;;  %v5765_v37 = vor.u32 %v6992_v28, %v5764_v26 }
 0x169   : > { %4144 = vmatpush.bf16.msrb.mxu2 %v5445_v46  ;;  %v6020_v33 = vld [vmem:[%s7522_s17 + $0xa88] sm:$0xf]  ;;  %v7056_v23 = vld [vmem:[%s7522_s17 + $0xa94] sm:$0xf0]  ;;  %v5893_v39 = vor.u32 %v7024_v30, %v5892_v29  ;;  %v8474_v46 = vpop.f32.mrf.mxu1 }
 0x16a   : > { %4157 = vmatpush.bf16.msrb.mxu3 %v5573_v48  ;;  %4119 = vmatmul.bf16.vlgmr.msrb.gmra.mxu0 %v7783_v35  ;;  %v6148_v6 = vld [vmem:[%s7522_s17 + $0xb88] sm:$0xf]  ;;  %v7088_v34 = vld [vmem:[%s7522_s17 + $0xb94] sm:$0xf0]  ;;  %v6021_v41 = vor.u32 %v7056_v23, %v6020_v33 }
 0x16b   : > { %4163 = vmatpush.bf16.msra.mxu0 %v5813_v52  ;;  %4132 = vmatmul.bf16.vlgmr.msrb.gmra.mxu1 %v7793_v43  ;;  %v5748_v42 = vld [vmem:[%s7522_s17 + $0x868] sm:$0xf]  ;;  %v6988_v36 = vld [vmem:[%s7522_s17 + $0x874] sm:$0xf0]  ;;  %v6149_v47 = vor.u32 %v7088_v34, %v6148_v6 }
 0x16c   : > { %4176 = vmatpush.bf16.msra.mxu1 %v5941_v55  ;;  %4145 = vmatmul.bf16.vlgmr.msrb.gmra.mxu2 %v7775_v24  ;;  %v5876_v44 = vld [vmem:[%s7522_s17 + $0x968] sm:$0xf]  ;;  %v7020_v1 = vld [vmem:[%s7522_s17 + $0x974] sm:$0xf0]  ;;  %v5749_v31 = vor.u32 %v6988_v36, %v5748_v42 }
 0x16d   : > { %4189 = vmatpush.bf16.msra.mxu2 %v6069_v56  ;;  %4158 = vmatmul.bf16.vlgmr.msrb.gmra.mxu3 %v7789_v40  ;;  %v6004_v48 = vld [vmem:[%s7522_s17 + $0xa68] sm:$0xf]  ;;  %v7052_v52 = vld [vmem:[%s7522_s17 + $0xa74] sm:$0xf0]  ;;  %v5877_v27 = vor.u32 %v7020_v1, %v5876_v44 }
 0x16e   : > { %4202 = vmatpush.bf16.msra.mxu3 %v6197_v59  ;;  %v6132_v55 = vld [vmem:[%s7522_s17 + $0xb68] sm:$0xf]  ;;  %v7084_v56 = vld [vmem:[%s7522_s17 + $0xb74] sm:$0xf0]  ;;  %v6005_v57 = vor.u32 %v7052_v52, %v6004_v48 }
 0x16f   : > { %4164 = vmatpush.bf16.msra.mxu0 %v5797_v10  ;;  %v5732_v59 = vld [vmem:[%s7522_s17 + $0x848] sm:$0xf]  ;;  %v6984_v60 = vld [vmem:[%s7522_s17 + $0x854] sm:$0xf0]  ;;  %v8484_v63 = vpop.f32.mrf.mxu2  ;;  %v6133_v0 = vor.u32 %v7084_v56, %v6132_v55 }
 0x170   : > { %4177 = vmatpush.bf16.msra.mxu1 %v5925_v8  ;;  %v5860_v61 = vld [vmem:[%s7522_s17 + $0x948] sm:$0xf]  ;;  %v7016_v4 = vld [vmem:[%s7522_s17 + $0x954] sm:$0xf0]  ;;  %v5733_v58 = vor.u32 %v6984_v60, %v5732_v59 }
 0x171   : > { %4190 = vmatpush.bf16.msra.mxu2 %v6053_v9  ;;  %v5988_v10 = vld [vmem:[%s7522_s17 + $0xa48] sm:$0xf]  ;;  %v7048_v8 = vld [vmem:[%s7522_s17 + $0xa54] sm:$0xf0]  ;;  %v8489_v9 = vpop.f32.mrf.mxu3  ;;  %v5861_v12 = vor.u32 %v7016_v4, %v5860_v61 }
 0x172   : > { %4203 = vmatpush.bf16.msra.mxu3 %v6181_v62  ;;  %v6116_v20 = vld [vmem:[%s7522_s17 + $0xb48] sm:$0xf]  ;;  %v7080_v11 = vld [vmem:[%s7522_s17 + $0xb54] sm:$0xf0]  ;;  %v3914_v62 = vpop.f32.mrf.mxu0  ;;  %v5989_v3 = vor.u32 %v7048_v8, %v5988_v10 }
 0x173   : > { %4165 = vmatpush.bf16.msra.mxu0 %v5781_v19  ;;  %v5716_v13 = vld [vmem:[%s7522_s17 + $0x828] sm:$0xf]  ;;  %v6980_v51 = vld [vmem:[%s7522_s17 + $0x834] sm:$0xf0]  ;;  %v3927_v19 = vpop.f32.mrf.mxu1 }
 0x174   : > { %4178 = vmatpush.bf16.msra.mxu1 %v5909_v22  ;;  %v5844_v16 = vld [vmem:[%s7522_s17 + $0x928] sm:$0xf]  ;;  %v6117_v22 = vor.u32 %v7080_v11, %v6116_v20  ;;  %v7044_v28 = vld [vmem:[%s7522_s17 + $0xa34] sm:$0xf0]  ;;  %v5717_v30 = vor.u32 %v6980_v51, %v5716_v13 }
 0x175   : > { %4191 = vmatpush.bf16.msra.mxu2 %v6037_v25  ;;  %v7012_v25 = vld [vmem:[%s7522_s17 + $0x934] sm:$0xf0]  ;;  %v5972_v26 = vld [vmem:[%s7522_s17 + $0xa28] sm:$0xf] }
 0x176   : > { %4204 = vmatpush.bf16.msra.mxu3 %v6165_v32  ;;  %v6100_v29 = vld [vmem:[%s7522_s17 + $0xb28] sm:$0xf]  ;;  %v7076_v32 = vld [vmem:[%s7522_s17 + $0xb34] sm:$0xf0]  ;;  %v5845_v6 = vor.u32 %v7012_v25, %v5844_v16  ;;  %v5973_v34 = vor.u32 %v7044_v28, %v5972_v26 }
 0x177   : > { %4166 = vmatpush.bf16.msra.mxu0 %v5765_v37  ;;  %v5700_v33 = vld [vmem:[%s7522_s17 + $0x808] sm:$0xf]  ;;  %v6976_v23 = vld [vmem:[%s7522_s17 + $0x814] sm:$0xf0]  ;;  %v3940_v42 = vpop.f32.mrf.mxu2  ;;  %v6101_v36 = vor.u32 %v7076_v32, %v6100_v29 }
 0x178   : > { %4179 = vmatpush.bf16.msra.mxu1 %v5893_v39  ;;  %v5828_v37 = vld [vmem:[%s7522_s17 + $0x908] sm:$0xf]  ;;  %v7008_v39 = vld [vmem:[%s7522_s17 + $0x914] sm:$0xf0] }
 0x179   : > { %4192 = vmatpush.bf16.msra.mxu2 %v6021_v41  ;;  %v5956_v41 = vld [vmem:[%s7522_s17 + $0xa08] sm:$0xf]  ;;  %v7040_v44 = vld [vmem:[%s7522_s17 + $0xa14] sm:$0xf0]  ;;  %v3953_v48 = vpop.f32.mrf.mxu3  ;;  %v5829_v60 = vor.u32 %v7008_v39, %v5828_v37 }
 0x17a   : > { %4205 = vmatpush.bf16.msra.mxu3 %v6149_v47  ;;  %v6084_v47 = vld [vmem:[%s7522_s17 + $0xb08] sm:$0xf]  ;;  %v7072_v1 = vld [vmem:[%s7522_s17 + $0xb14] sm:$0xf0]  ;;  %v5957_v61 = vor.u32 %v7040_v44, %v5956_v41 }
 0x17b   : > { %4167 = vmatpush.bf16.msra.mxu0 %v5749_v31  ;;  %v6324_v52 = vld [vmem:[%s7522_s17 + $0xce8] sm:$0xf]  ;;  %v7132_v55 = vld [vmem:[%s7522_s17 + $0xcf4] sm:$0xf0]  ;;  %v5701_v31 = vor.u32 %v6976_v23, %v5700_v33  ;;  %v6085_v10 = vor.u32 %v7072_v1, %v6084_v47 }
 0x17c   : > { %4180 = vmatpush.bf16.msra.mxu1 %v5877_v27  ;;  %v6452_v56 = vld [vmem:[%s7522_s17 + $0xde8] sm:$0xf]  ;;  %v7164_v27 = vld [vmem:[%s7522_s17 + $0xdf4] sm:$0xf0]  ;;  %v6325_v8 = vor.u32 %v7132_v55, %v6324_v52 }
 0x17d   : > { %4193 = vmatpush.bf16.msra.mxu2 %v6005_v57  ;;  %v6580_v57 = vld [vmem:[%s7522_s17 + $0xee8] sm:$0xf]  ;;  %v7196_v59 = vld [vmem:[%s7522_s17 + $0xef4] sm:$0xf0]  ;;  %v6453_v20 = vor.u32 %v7164_v27, %v6452_v56 }
 0x17e   : > { %4206 = vmatpush.bf16.msra.mxu3 %v6133_v0  ;;  %v6708_v0 = vld [vmem:[%s7522_s17 + $0xfe8] sm:$0xf]  ;;  %v7228_v4 = vld [vmem:[%s7522_s17 + $0xff4] sm:$0xf0]  ;;  %v6581_v11 = vor.u32 %v7196_v59, %v6580_v57 }
 0x17f   : > { %4168 = vmatpush.bf16.msra.mxu0 %v5733_v58  ;;  %v6308_v58 = vld [vmem:[%s7522_s17 + $0xcc8] sm:$0xf]  ;;  %v7128_v62 = vld [vmem:[%s7522_s17 + $0xcd4] sm:$0xf0] }
 0x180   : > { %4181 = vmatpush.bf16.msra.mxu1 %v5861_v12  ;;  %v6436_v12 = vld [vmem:[%s7522_s17 + $0xdc8] sm:$0xf]  ;;  %v7160_v13 = vld [vmem:[%s7522_s17 + $0xdd4] sm:$0xf0]  ;;  %v6309_v25 = vor.u32 %v7128_v62, %v6308_v58 }
 0x181   : > { %4194 = vmatpush.bf16.msra.mxu2 %v5989_v3  ;;  %v6709_v3 = vor.u32 %v7228_v4, %v6708_v0  ;;  %v6564_v51 = vld [vmem:[%s7522_s17 + $0xec8] sm:$0xf]  ;;  %v7192_v16 = vld [vmem:[%s7522_s17 + $0xed4] sm:$0xf0]  ;;  %v6437_v26 = vor.u32 %v7160_v13, %v6436_v12 }
 0x182   : > { %4207 = vmatpush.bf16.msra.mxu3 %v6117_v22  ;;  %v6692_v19 = vld [vmem:[%s7522_s17 + $0xfc8] sm:$0xf]  ;;  %v7224_v22 = vld [vmem:[%s7522_s17 + $0xfd4] sm:$0xf0]  ;;  %v6565_v28 = vor.u32 %v7192_v16, %v6564_v51  ;;  %v3913_v51 = vadd.f32 %v8469_v38, %v8415_v5 }
 0x183   : > { %4169 = vmatpush.bf16.msra.mxu0 %v5717_v30  ;;  %v6292_v29 = vld [vmem:[%s7522_s17 + $0xca8] sm:$0xf]  ;;  %v7124_v32 = vld [vmem:[%s7522_s17 + $0xcb4] sm:$0xf0]  ;;  %v6693_v33 = vor.u32 %v7224_v22, %v6692_v19 }
 0x184   : > { %4182 = vmatpush.bf16.msra.mxu1 %v5845_v6  ;;  %v6420_v30 = vld [vmem:[%s7522_s17 + $0xda8] sm:$0xf]  ;;  %v7156_v23 = vld [vmem:[%s7522_s17 + $0xdb4] sm:$0xf0]  ;;  %v6293_v41 = vor.u32 %v7124_v32, %v6292_v29 }
 0x185   : > { %4195 = vmatpush.bf16.msra.mxu2 %v5973_v34  ;;  %v6548_v6 = vld [vmem:[%s7522_s17 + $0xea8] sm:$0xf]  ;;  %v7188_v34 = vld [vmem:[%s7522_s17 + $0xeb4] sm:$0xf0]  ;;  %v6421_v42 = vor.u32 %v7156_v23, %v6420_v30 }
 0x186   : > { %4208 = vmatpush.bf16.msra.mxu3 %v6101_v36  ;;  %v6676_v37 = vld [vmem:[%s7522_s17 + $0xfa8] sm:$0xf]  ;;  %v7220_v39 = vld [vmem:[%s7522_s17 + $0xfb4] sm:$0xf0]  ;;  %v6549_v36 = vor.u32 %v7188_v34, %v6548_v6 }
 0x187   : > { %4170 = vmatpush.bf16.msra.mxu0 %v5701_v31  ;;  %v6276_v44 = vld [vmem:[%s7522_s17 + $0xc88] sm:$0xf]  ;;  %v7120_v47 = vld [vmem:[%s7522_s17 + $0xc94] sm:$0xf0]  ;;  %v6677_v48 = vor.u32 %v7220_v39, %v6676_v37  ;;  %v8543_v31 = vpop.f32.mrf.mxu0  ;;  %v3926_v39 = vadd.f32 %v8474_v46, %v3913_v51  ;;  %v6778_v51 = vld [vmem:[%s7522_s17 + $0x1ec] sm:$0xf] }
 0x188   : > { %4183 = vmatpush.bf16.msra.mxu1 %v5829_v60  ;;  %v6404_v1 = vld [vmem:[%s7522_s17 + $0xd88] sm:$0xf]  ;;  %v7152_v52 = vld [vmem:[%s7522_s17 + $0xd94] sm:$0xf0]  ;;  %v6277_v59 = vor.u32 %v7120_v47, %v6276_v44  ;;  %v8547_v60 = vpop.f32.mrf.mxu1 }
 0x189   : > { %4196 = vmatpush.bf16.msra.mxu2 %v5957_v61  ;;  %v6532_v55 = vld [vmem:[%s7522_s17 + $0xe88] sm:$0xf]  ;;  %v7184_v56 = vld [vmem:[%s7522_s17 + $0xe94] sm:$0xf0]  ;;  %v6405_v61 = vor.u32 %v7152_v52, %v6404_v1 }
 0x18a   : > { %4209 = vmatpush.bf16.msra.mxu3 %v6085_v10  ;;  %4171 = vmatmul.bf16.vlgmr.msra.gmra.mxu0 %v7876_v45  ;;  %v6660_v27 = vld [vmem:[%s7522_s17 + $0xf88] sm:$0xf]  ;;  %v7216_v57 = vld [vmem:[%s7522_s17 + $0xf94] sm:$0xf0]  ;;  %v6533_v0 = vor.u32 %v7184_v56, %v6532_v55 }
 0x18b   : > { %4215 = vmatpush.bf16.msrb.mxu0 %v6325_v8  ;;  %4184 = vmatmul.bf16.vlgmr.msra.gmra.mxu1 %v7883_v50  ;;  %v6260_v4 = vld [vmem:[%s7522_s17 + $0xc68] sm:$0xf]  ;;  %v7116_v10 = vld [vmem:[%s7522_s17 + $0xc74] sm:$0xf0] }
 0x18c   : > { %4228 = vmatpush.bf16.msrb.mxu1 %v6453_v20  ;;  %4197 = vmatmul.bf16.vlgmr.msra.gmra.mxu2 %v7881_v49  ;;  %v6388_v8 = vld [vmem:[%s7522_s17 + $0xd68] sm:$0xf]  ;;  %v6661_v20 = vor.u32 %v7216_v57, %v6660_v27  ;;  %v7180_v62 = vld [vmem:[%s7522_s17 + $0xe74] sm:$0xf0]  ;;  %v6261_v13 = vor.u32 %v7116_v10, %v6260_v4 }
 0x18d   : > { %4241 = vmatpush.bf16.msrb.mxu2 %v6581_v11  ;;  %4210 = vmatmul.bf16.vlgmr.msra.gmra.mxu3 %v7887_v53  ;;  %v7148_v11 = vld [vmem:[%s7522_s17 + $0xd74] sm:$0xf0]  ;;  %v6516_v58 = vld [vmem:[%s7522_s17 + $0xe68] sm:$0xf] }
 0x18e   : > { %4254 = vmatpush.bf16.msrb.mxu3 %v6709_v3  ;;  %v6644_v12 = vld [vmem:[%s7522_s17 + $0xf68] sm:$0xf]  ;;  %v7212_v3 = vld [vmem:[%s7522_s17 + $0xf74] sm:$0xf0]  ;;  %v6389_v16 = vor.u32 %v7148_v11, %v6388_v8  ;;  %v6517_v19 = vor.u32 %v7180_v62, %v6516_v58 }
 0x18f   : > { %4216 = vmatpush.bf16.msrb.mxu0 %v6309_v25  ;;  %v6244_v22 = vld [vmem:[%s7522_s17 + $0xc48] sm:$0xf]  ;;  %v7112_v25 = vld [vmem:[%s7522_s17 + $0xc54] sm:$0xf0]  ;;  %v8562_v29 = vpop.f32.mrf.mxu2  ;;  %v3966_v6 = vpop.f32.mrf.mxu0 }
 0x190   : > { %4229 = vmatpush.bf16.msrb.mxu1 %v6437_v26  ;;  %v6372_v26 = vld [vmem:[%s7522_s17 + $0xd48] sm:$0xf]  ;;  %v7144_v32 = vld [vmem:[%s7522_s17 + $0xd54] sm:$0xf0]  ;;  %v8567_v23 = vpop.f32.mrf.mxu3  ;;  %v6245_v34 = vor.u32 %v7112_v25, %v6244_v22  ;;  %v3979_v37 = vpop.f32.mrf.mxu1  ;;  %v4918_v22 = vld [vmem:[%s7522_s17 + $0x1f8] sm:$0xf0] }
 0x191   : > { %4242 = vmatpush.bf16.msrb.mxu2 %v6565_v28  ;;  %v6645_v28 = vor.u32 %v7212_v3, %v6644_v12  ;;  %v6500_v30 = vld [vmem:[%s7522_s17 + $0xe48] sm:$0xf]  ;;  %v7208_v38 = vld [vmem:[%s7522_s17 + $0xf54] sm:$0xf0]  ;;  %v6810_v25 = vld [vmem:[%s7522_s17 + $0x2ec] sm:$0xf]  ;;  %v4921_v37 = vor.u32 %v6778_v51, %v4918_v22 }
 0x192   : > { %4255 = vmatpush.bf16.msrb.mxu3 %v6693_v33  ;;  %v7176_v33 = vld [vmem:[%s7522_s17 + $0xe54] sm:$0xf0]  ;;  %v6628_v5 = vld [vmem:[%s7522_s17 + $0xf48] sm:$0xf]  ;;  %v6798_v51 = vld [vmem:[%s7522_s17 + $0x28c] sm:$0xf] }
 0x193   : > { %4217 = vmatpush.bf16.msrb.mxu0 %v6293_v41  ;;  %v6373_v41 = vor.u32 %v7144_v32, %v6372_v26  ;;  %v7108_v44 = vld [vmem:[%s7522_s17 + $0xc34] sm:$0xf0]  ;;  %v6356_v47 = vld [vmem:[%s7522_s17 + $0xd28] sm:$0xf]  ;;  %v6629_v1 = vor.u32 %v7208_v38, %v6628_v5  ;;  %v5046_v26 = vld [vmem:[%s7522_s17 + $0x2f8] sm:$0xf0] }
 0x194   : > { %4230 = vmatpush.bf16.msrb.mxu1 %v6421_v42  ;;  %v6501_v42 = vor.u32 %v7176_v33, %v6500_v30  ;;  %v6484_v52 = vld [vmem:[%s7522_s17 + $0xe28] sm:$0xf]  ;;  %v7172_v55 = vld [vmem:[%s7522_s17 + $0xe34] sm:$0xf0]  ;;  %v6842_v33 = vld [vmem:[%s7522_s17 + $0x3ec] sm:$0xf] }
 0x195   : > { %4243 = vmatpush.bf16.msrb.mxu2 %v6549_v36  ;;  %v6228_v36 = vld [vmem:[%s7522_s17 + $0xc28] sm:$0xf]  ;;  %v7204_v46 = vld [vmem:[%s7522_s17 + $0xf34] sm:$0xf0]  ;;  %v6485_v4 = vor.u32 %v7172_v55, %v6484_v52  ;;  %v5174_v5 = vld [vmem:[%s7522_s17 + $0x3f8] sm:$0xf0] }
 0x196   : > { %4256 = vmatpush.bf16.msrb.mxu3 %v6677_v48  ;;  %v7140_v48 = vld [vmem:[%s7522_s17 + $0xd34] sm:$0xf0]  ;;  %v6612_v56 = vld [vmem:[%s7522_s17 + $0xf28] sm:$0xf]  ;;  %v6229_v27 = vor.u32 %v7108_v44, %v6228_v36  ;;  %v5177_v36 = vor.u32 %v6842_v33, %v5174_v5  ;;  %v4902_v44 = vld [vmem:[%s7522_s17 + $0x1d8] sm:$0xf0] }
 0x197   : > { %4218 = vmatpush.bf16.msrb.mxu0 %v6277_v59  ;;  %v6212_v57 = vld [vmem:[%s7522_s17 + $0xc08] sm:$0xf]  ;;  %v7104_v59 = vld [vmem:[%s7522_s17 + $0xc14] sm:$0xf0]  ;;  %v6613_v11 = vor.u32 %v7204_v46, %v6612_v56  ;;  %v3992_v3 = vpop.f32.mrf.mxu2  ;;  %v5158_v52 = vld [vmem:[%s7522_s17 + $0x3d8] sm:$0xf0] }
 0x198   : > { %4231 = vmatpush.bf16.msrb.mxu1 %v6405_v61  ;;  %v3939_v61 = vadd.f32 %v8484_v63, %v3926_v39  ;;  %v6340_v10 = vld [vmem:[%s7522_s17 + $0xd08] sm:$0xf]  ;;  %v7136_v8 = vld [vmem:[%s7522_s17 + $0xd14] sm:$0xf0]  ;;  %v6746_v63 = vld [vmem:[%s7522_s17 + $0xec] sm:$0xf]  ;;  %v5049_v39 = vor.u32 %v6810_v25, %v5046_v26 }
 0x199   : > { %4244 = vmatpush.bf16.msrb.mxu2 %v6533_v0  ;;  %v6357_v0 = vor.u32 %v7140_v48, %v6356_v47  ;;  %v7168_v58 = vld [vmem:[%s7522_s17 + $0xe14] sm:$0xf0]  ;;  %v6596_v62 = vld [vmem:[%s7522_s17 + $0xf08] sm:$0xf]  ;;  %v6341_v32 = vor.u32 %v7136_v8, %v6340_v10  ;;  %v6806_v47 = vld [vmem:[%s7522_s17 + $0x2cc] sm:$0xf] }
 0x19a   : > { %4257 = vmatpush.bf16.msrb.mxu3 %v6661_v20  ;;  %v6468_v20 = vld [vmem:[%s7522_s17 + $0xe08] sm:$0xf]  ;;  %v7200_v12 = vld [vmem:[%s7522_s17 + $0xf14] sm:$0xf0]  ;;  %v6838_v48 = vld [vmem:[%s7522_s17 + $0x3cc] sm:$0xf] }
 0x19b   : > { %4219 = vmatpush.bf16.msrb.mxu0 %v6261_v13  ;;  %v4790_v13 = vld [vmem:[%s7522_s17 + $0xf8] sm:$0xf0]  ;;  %v6469_v30 = vor.u32 %v7168_v58, %v6468_v20  ;;  %v6597_v38 = vor.u32 %v7200_v12, %v6596_v62  ;;  %v6834_v8 = vld [vmem:[%s7522_s17 + $0x3ac] sm:$0xf] }
 0x19c   : > { %4232 = vmatpush.bf16.msrb.mxu1 %v6389_v16  ;;  %v4005_v16 = vpop.f32.mrf.mxu3  ;;  %v4793_v6 = vor.u32 %v6746_v63, %v4790_v13  ;;  %v5014_v10 = vld [vmem:[%s7522_s17 + $0x2b8] sm:$0xf0]  ;;  %v6766_v3 = vld [vmem:[%s7522_s17 + $0x18c] sm:$0xf] }
 0x19d   : > { %4245 = vmatpush.bf16.msrb.mxu2 %v6517_v19  ;;  %v6213_v19 = vor.u32 %v7104_v59, %v6212_v57  ;;  %v4758_v57 = vld [vmem:[%s7522_s17 + $0xb8] sm:$0xf0]  ;;  %v6770_v59 = vld [vmem:[%s7522_s17 + $0x1ac] sm:$0xf] }
 0x19e   : > { %4258 = vmatpush.bf16.msrb.mxu3 %v6645_v28  ;;  %v3952_v28 = vadd.f32 %v8489_v9, %v3939_v61  ;;  %v4774_v9 = vld [vmem:[%s7522_s17 + $0xd8] sm:$0xf0]  ;;  %v5161_v61 = vor.u32 %v6838_v48, %v5158_v52  ;;  %v6830_v25 = vld [vmem:[%s7522_s17 + $0x38c] sm:$0xf] }
 0x19f   : > { %4220 = vmatpush.bf16.msrb.mxu0 %v6245_v34  ;;  %v5142_v20 = vld [vmem:[%s7522_s17 + $0x3b8] sm:$0xf0]  ;;  %v6726_v48 = vld [vmem:[%s7522_s17 + $0x4c] sm:$0xf] }
 0x1a0   : > { %4233 = vmatpush.bf16.msrb.mxu1 %v6373_v41  ;;  %v3965_v34 = vadd.f32 %v8543_v31, %v3952_v28  ;;  %v6742_v41 = vld [vmem:[%s7522_s17 + $0xcc] sm:$0xf]  ;;  %v4742_v12 = vld [vmem:[%s7522_s17 + $0x98] sm:$0xf0]  ;;  %v5145_v63 = vor.u32 %v6834_v8, %v5142_v20 }
 0x1a1   : > { %4246 = vmatpush.bf16.msrb.mxu2 %v6501_v42  ;;  %v6774_v42 = vld [vmem:[%s7522_s17 + $0x1cc] sm:$0xf]  ;;  %v4777_v31 = vor.u32 %v6742_v41, %v4774_v9  ;;  %v4870_v13 = vld [vmem:[%s7522_s17 + $0x198] sm:$0xf0] }
 0x1a2   : > { %4259 = vmatpush.bf16.msrb.mxu3 %v6629_v1  ;;  %v5030_v1 = vld [vmem:[%s7522_s17 + $0x2d8] sm:$0xf0]  ;;  %v3978_v55 = vadd.f32 %v8547_v60, %v3965_v34  ;;  %v4905_v56 = vor.u32 %v6774_v42, %v4902_v44  ;;  %v4873_v33 = vor.u32 %v6766_v3, %v4870_v13  ;;  %v6826_v9 = vld [vmem:[%s7522_s17 + $0x36c] sm:$0xf] }
 0x1a3   : > { %4221 = vmatpush.bf16.msrb.mxu0 %v6229_v27  ;;  %v5033_v46 = vor.u32 %v6806_v47, %v5030_v1  ;;  %v6738_v27 = vld [vmem:[%s7522_s17 + $0xac] sm:$0xf]  ;;  %v4998_v16 = vld [vmem:[%s7522_s17 + $0x298] sm:$0xf0] }
 0x1a4   : > { %4234 = vmatpush.bf16.msrb.mxu1 %v6357_v0  ;;  %v4886_v0 = vld [vmem:[%s7522_s17 + $0x1b8] sm:$0xf0]  ;;  %v3991_v60 = vadd.f32 %v8562_v29, %v3978_v55  ;;  %v6734_v29 = vld [vmem:[%s7522_s17 + $0x8c] sm:$0xf]  ;;  %v5001_v5 = vor.u32 %v6798_v51, %v4998_v16 }
 0x1a5   : > { %4247 = vmatpush.bf16.msrb.mxu2 %v6485_v4  ;;  %v6802_v4 = vld [vmem:[%s7522_s17 + $0x2ac] sm:$0xf]  ;;  %v4889_v58 = vor.u32 %v6770_v59, %v4886_v0  ;;  %v5126_v26 = vld [vmem:[%s7522_s17 + $0x398] sm:$0xf0]  ;;  %v4745_v28 = vor.u32 %v6734_v29, %v4742_v12  ;;  %v8645_v0 = vld [vmem:[%s7528_s26] sm:$0xf] }
 0x1a6   : > { %4260 = vmatpush.bf16.msrb.mxu3 %v6613_v11  ;;  %v4761_v11 = vor.u32 %v6738_v27, %v4758_v57  ;;  %v5017_v62 = vor.u32 %v6802_v4, %v5014_v10  ;;  %v5129_v34 = vor.u32 %v6830_v25, %v5126_v26  ;;  %v4982_v41 = vld [vmem:[%s7522_s17 + $0x278] sm:$0xf0]  ;;  %v6790_v27 = vld [vmem:[%s7522_s17 + $0x24c] sm:$0xf]  ;;  %v4493_v4 = vperm.slane %v8645_v0, 1 }
 0x1a7   : > { %4222 = vmatpush.bf16.msrb.mxu0 %v6213_v19  ;;  %v4004_v19 = vadd.f32 %v8567_v23, %v3991_v60  ;;  %v4016_v22 = vpop.f32.mrf.mxu0  ;;  %v6762_v23 = vld [vmem:[%s7522_s17 + $0x16c] sm:$0xf]  ;;  %v5110_v42 = vld [vmem:[%s7522_s17 + $0x378] sm:$0xf0] }
 0x1a8   : > { %4235 = vmatpush.bf16.msrb.mxu1 %v6341_v32  ;;  %v4029_v32 = vpop.f32.mrf.mxu1  ;;  %v4710_v52 = vld [vmem:[%s7522_s17 + $0x58] sm:$0xf0]  ;;  %v5113_v55 = vor.u32 %v6826_v9, %v5110_v42  ;;  %v6822_v10 = vld [vmem:[%s7522_s17 + $0x34c] sm:$0xf] }
 0x1a9   : > { %4248 = vmatpush.bf16.msrb.mxu2 %v6469_v30  ;;  %v4017_v30 = vadd.f32 %v4016_v22, %v4004_v19  ;;  %v4966_v57 = vld [vmem:[%s7522_s17 + $0x258] sm:$0xf0]  ;;  %v4713_v20 = vor.u32 %v6726_v48, %v4710_v52  ;;  %v6722_v12 = vld [vmem:[%s7522_s17 + $0x2c] sm:$0xf] }
 0x1aa   : > { %4261 = vmatpush.bf16.msrb.mxu3 %v6597_v38  ;;  %4223 = vmatmul.bf16.vlgmr.msrb.gmra.mxu0 %v7969_v2  ;;  %v6730_v38 = vld [vmem:[%s7522_s17 + $0x6c] sm:$0xf]  ;;  %v5094_v60 = vld [vmem:[%s7522_s17 + $0x358] sm:$0xf0]  ;;  %v4969_v29 = vor.u32 %v6790_v27, %v4966_v57 }
 0x1ab   : > { %4267 = vmatpush.bf16.msra.mxu0 %v4793_v6  ;;  %4236 = vmatmul.bf16.vlgmr.msrb.gmra.mxu1 %v7976_v18  ;;  %v4726_v6 = vld [vmem:[%s7522_s17 + $0x78] sm:$0xf0]  ;;  %v4030_v44 = vadd.f32 %v4029_v32, %v4017_v30  ;;  %v5097_v13 = vor.u32 %v6822_v10, %v5094_v60  ;;  %v6786_v16 = vld [vmem:[%s7522_s17 + $0x22c] sm:$0xf] }
 0x1ac   : > { %4280 = vmatpush.bf16.msra.mxu1 %v4921_v37  ;;  %4249 = vmatmul.bf16.vlgmr.msrb.gmra.mxu2 %v7974_v17  ;;  %v4854_v37 = vld [vmem:[%s7522_s17 + $0x178] sm:$0xf0]  ;;  %v6818_v25 = vld [vmem:[%s7522_s17 + $0x32c] sm:$0xf] }
 0x1ad   : > { %4293 = vmatpush.bf16.msra.mxu2 %v5049_v39  ;;  %4262 = vmatmul.bf16.vlgmr.msrb.gmra.mxu3 %v7980_v21  ;;  %v6794_v39 = vld [vmem:[%s7522_s17 + $0x26c] sm:$0xf]  ;;  %v4857_v47 = vor.u32 %v6762_v23, %v4854_v37  ;;  %v4694_v3 = vld [vmem:[%s7522_s17 + $0x38] sm:$0xf0] }
 0x1ae   : > { %4306 = vmatpush.bf16.msra.mxu3 %v5177_v36  ;;  %v4729_v36 = vor.u32 %v6730_v38, %v4726_v6  ;;  %v4985_v1 = vor.u32 %v6794_v39, %v4982_v41  ;;  %v4822_v51 = vld [vmem:[%s7522_s17 + $0x138] sm:$0xf0]  ;;  %v6718_v32 = vld [vmem:[%s7522_s17 + $0xc] sm:$0xf] }
 0x1af   : > { %4268 = vmatpush.bf16.msra.mxu0 %v4777_v31  ;;  %v6758_v31 = vld [vmem:[%s7522_s17 + $0x14c] sm:$0xf]  ;;  %v4018_v8 = vpop.f32.mrf.mxu0  ;;  %v4950_v19 = vld [vmem:[%s7522_s17 + $0x238] sm:$0xf0] }
 0x1b0   : > { %4281 = vmatpush.bf16.msra.mxu1 %v4905_v56  ;;  %v4042_v56 = vpop.f32.mrf.mxu2  ;;  %v5078_v26 = vld [vmem:[%s7522_s17 + $0x338] sm:$0xf0]  ;;  %v4953_v38 = vor.u32 %v6786_v16, %v4950_v19  ;;  %v6782_v23 = vld [vmem:[%s7522_s17 + $0x20c] sm:$0xf] }
 0x1b1   : > { %4294 = vmatpush.bf16.msra.mxu2 %v5033_v46  ;;  %v4838_v46 = vld [vmem:[%s7522_s17 + $0x158] sm:$0xf0]  ;;  %v4043_v59 = vadd.f32 %v4042_v56, %v4030_v44  ;;  %v6814_v39 = vld [vmem:[%s7522_s17 + $0x30c] sm:$0xf] }
 0x1b2   : > { %4307 = vmatpush.bf16.msra.mxu3 %v5161_v61  ;;  %v4055_v61 = vpop.f32.mrf.mxu3  ;;  %v4678_v30 = vld [vmem:[%s7522_s17 + $0x18] sm:$0xf0]  ;;  %v6874_v42 = vld [vmem:[%s7522_s17 + $0x4ec] sm:$0xf] }
 0x1b3   : > { %4269 = vmatpush.bf16.msra.mxu0 %v4761_v11  ;;  %v4031_v11 = vpop.f32.mrf.mxu1  ;;  %v4806_v6 = vld [vmem:[%s7522_s17 + $0x118] sm:$0xf0]  ;;  %v6906_v44 = vld [vmem:[%s7522_s17 + $0x5ec] sm:$0xf] }
 0x1b4   : > { %4282 = vmatpush.bf16.msra.mxu1 %v4889_v58  ;;  %v4056_v58 = vadd.f32 %v4055_v61, %v4043_v59  ;;  %v4934_v37 = vld [vmem:[%s7522_s17 + $0x218] sm:$0xf0]  ;;  %v6938_v52 = vld [vmem:[%s7522_s17 + $0x6ec] sm:$0xf] }
 0x1b5   : > { %4295 = vmatpush.bf16.msra.mxu2 %v5017_v62  ;;  %v4841_v62 = vor.u32 %v6758_v31, %v4838_v46  ;;  %v5062_v41 = vld [vmem:[%s7522_s17 + $0x318] sm:$0xf0]  ;;  %v4937_v56 = vor.u32 %v6782_v23, %v4934_v37  ;;  %v6970_v46 = vld [vmem:[%s7522_s17 + $0x7ec] sm:$0xf] }
 0x1b6   : > { %4308 = vmatpush.bf16.msra.mxu3 %v5145_v63  ;;  %v6754_v63 = vld [vmem:[%s7522_s17 + $0x12c] sm:$0xf]  ;;  %v4501_v22 = vadd.f32 %v4493_v4, %v4056_v58  ;;  %v5430_v48 = vld [vmem:[%s7522_s17 + $0x5f8] sm:$0xf0]  ;;  %v5065_v57 = vor.u32 %v6814_v39, %v5062_v41 }
 0x1b7   : > { %4270 = vmatpush.bf16.msra.mxu0 %v4745_v28  ;;  %v4697_v28 = vor.u32 %v6722_v12, %v4694_v3  ;;  %v5558_v31 = vld [vmem:[%s7522_s17 + $0x6f8] sm:$0xf0]  ;;  %v5433_v61 = vor.u32 %v6906_v44, %v5430_v48  ;;  %v6870_v10 = vld [vmem:[%s7522_s17 + $0x4cc] sm:$0xf] }
 0x1b8   : > { %4283 = vmatpush.bf16.msra.mxu1 %v4873_v33  ;;  %v6750_v33 = vld [vmem:[%s7522_s17 + $0x10c] sm:$0xf]  ;;  %4505 = vst [vmem:[%s8347_s14 + $0x8] sm:$0xff] %v4501_v22  ;;  %v4044_v9 = vpop.f32.mrf.mxu2  ;;  %v5686_v27 = vld [vmem:[%s7522_s17 + $0x7f8] sm:$0xf0]  ;;  %v5561_v4 = vor.u32 %v6938_v52, %v5558_v31 }
 0x1b9   : > { %4296 = vmatpush.bf16.msra.mxu2 %v5001_v5  ;;  %v4825_v5 = vor.u32 %v6754_v63, %v4822_v51  ;;  %v5286_v60 = vld [vmem:[%s7522_s17 + $0x4d8] sm:$0xf0]  ;;  %v6902_v8 = vld [vmem:[%s7522_s17 + $0x5cc] sm:$0xf] }
 0x1ba   : > { %4309 = vmatpush.bf16.msra.mxu3 %v5129_v34  ;;  %v5081_v34 = vor.u32 %v6818_v25, %v5078_v26  ;;  %v5414_v11 = vld [vmem:[%s7522_s17 + $0x5d8] sm:$0xf0]  ;;  %v6934_v58 = vld [vmem:[%s7522_s17 + $0x6cc] sm:$0xf]  ;;  %v5289_v3 = vor.u32 %v6870_v10, %v5286_v60 }
 0x1bb   : > { %4271 = vmatpush.bf16.msra.mxu0 %v4729_v36  ;;  %v5302_v36 = vld [vmem:[%s7522_s17 + $0x4f8] sm:$0xf0]  ;;  %v5417_v63 = vor.u32 %v6902_v8, %v5414_v11  ;;  %v6866_v51 = vld [vmem:[%s7522_s17 + $0x4ac] sm:$0xf] }
 0x1bc   : > { %4284 = vmatpush.bf16.msra.mxu1 %v4857_v47  ;;  %v4057_v47 = vpop.f32.mrf.mxu3  ;;  %v5305_v59 = vor.u32 %v6874_v42, %v5302_v36  ;;  %v5670_v12 = vld [vmem:[%s7522_s17 + $0x7d8] sm:$0xf0]  ;;  %v6898_v19 = vld [vmem:[%s7522_s17 + $0x5ac] sm:$0xf] }
 0x1bd   : > { %4297 = vmatpush.bf16.msra.mxu2 %v4985_v1  ;;  %v4681_v1 = vor.u32 %v6718_v32, %v4678_v30  ;;  %v5270_v16 = vld [vmem:[%s7522_s17 + $0x4b8] sm:$0xf0]  ;;  %v6930_v26 = vld [vmem:[%s7522_s17 + $0x6ac] sm:$0xf] }
 0x1be   : > { %4310 = vmatpush.bf16.msra.mxu3 %v5113_v55  ;;  %v4809_v55 = vor.u32 %v6750_v33, %v4806_v6  ;;  %v5398_v25 = vld [vmem:[%s7522_s17 + $0x5b8] sm:$0xf0]  ;;  %v6962_v32 = vld [vmem:[%s7522_s17 + $0x7ac] sm:$0xf]  ;;  %v5273_v33 = vor.u32 %v6866_v51, %v5270_v16 }
 0x1bf   : > { %4272 = vmatpush.bf16.msra.mxu0 %v4713_v20  ;;  %v5689_v20 = vor.u32 %v6970_v46, %v5686_v27  ;;  %v5654_v30 = vld [vmem:[%s7522_s17 + $0x7b8] sm:$0xf0]  ;;  %v6894_v23 = vld [vmem:[%s7522_s17 + $0x58c] sm:$0xf] }
 0x1c0   : > { %4285 = vmatpush.bf16.msra.mxu1 %v4841_v62  ;;  %v5542_v62 = vld [vmem:[%s7522_s17 + $0x6d8] sm:$0xf0]  ;;  %v6958_v39 = vld [vmem:[%s7522_s17 + $0x78c] sm:$0xf] }
 0x1c1   : > { %4298 = vmatpush.bf16.msra.mxu2 %v4969_v29  ;;  %v6966_v29 = vld [vmem:[%s7522_s17 + $0x7cc] sm:$0xf]  ;;  %v5254_v6 = vld [vmem:[%s7522_s17 + $0x498] sm:$0xf0] }
 0x1c2   : > { %4311 = vmatpush.bf16.msra.mxu3 %v5097_v13  ;;  %v5545_v13 = vor.u32 %v6934_v58, %v5542_v62  ;;  %v5673_v22 = vor.u32 %v6966_v29, %v5670_v12  ;;  %v5510_v37 = vld [vmem:[%s7522_s17 + $0x698] sm:$0xf0]  ;;  %v6858_v44 = vld [vmem:[%s7522_s17 + $0x46c] sm:$0xf] }
 0x1c3   : > { %4273 = vmatpush.bf16.msra.mxu0 %v4697_v28  ;;  %v5526_v28 = vld [vmem:[%s7522_s17 + $0x6b8] sm:$0xf0]  ;;  %v6954_v27 = vld [vmem:[%s7522_s17 + $0x76c] sm:$0xf] }
 0x1c4   : > { %4286 = vmatpush.bf16.msra.mxu1 %v4825_v5  ;;  %v5401_v5 = vor.u32 %v6898_v19, %v5398_v25  ;;  %v5638_v41 = vld [vmem:[%s7522_s17 + $0x798] sm:$0xf0]  ;;  %v6854_v10 = vld [vmem:[%s7522_s17 + $0x44c] sm:$0xf] }
 0x1c5   : > { %4299 = vmatpush.bf16.msra.mxu2 %v4953_v38  ;;  %v5529_v38 = vor.u32 %v6930_v26, %v5526_v28  ;;  %v5238_v47 = vld [vmem:[%s7522_s17 + $0x478] sm:$0xf0]  ;;  %v5641_v52 = vor.u32 %v6958_v39, %v5638_v41  ;;  %v6886_v8 = vld [vmem:[%s7522_s17 + $0x54c] sm:$0xf] }
 0x1c6   : > { %4312 = vmatpush.bf16.msra.mxu3 %v5081_v34  ;;  %v5382_v34 = vld [vmem:[%s7522_s17 + $0x598] sm:$0xf0]  ;;  %v6918_v62 = vld [vmem:[%s7522_s17 + $0x64c] sm:$0xf] }
 0x1c7   : > { %4274 = vmatpush.bf16.msra.mxu0 %v4681_v1  ;;  %v4068_v9 = vpop.f32.mrf.mxu0  ;;  %v5385_v42 = vor.u32 %v6894_v23, %v5382_v34  ;;  %v6890_v1 = vld [vmem:[%s7522_s17 + $0x56c] sm:$0xf]  ;;  %v5366_v31 = vld [vmem:[%s7522_s17 + $0x578] sm:$0xf0] }
 0x1c8   : > { %4287 = vmatpush.bf16.msra.mxu1 %v4809_v55  ;;  %v4081_v48 = vpop.f32.mrf.mxu1  ;;  %v6922_v55 = vld [vmem:[%s7522_s17 + $0x66c] sm:$0xf]  ;;  %v5222_v60 = vld [vmem:[%s7522_s17 + $0x458] sm:$0xf0] }
 0x1c9   : > { %4300 = vmatpush.bf16.msra.mxu2 %v4937_v56  ;;  %v5494_v56 = vld [vmem:[%s7522_s17 + $0x678] sm:$0xf0]  ;;  %v4082_v46 = vadd.f32 %v4081_v48, %v4068_v9  ;;  %v5225_v51 = vor.u32 %v6854_v10, %v5222_v60  ;;  %v6850_v26 = vld [vmem:[%s7522_s17 + $0x42c] sm:$0xf] }
 0x1ca   : > { %4313 = vmatpush.bf16.msra.mxu3 %v5065_v57  ;;  %4275 = vmatmul.bf16.vlgmr.msra.gmra.mxu0 %v7685_v7  ;;  %v5657_v7 = vor.u32 %v6962_v32, %v5654_v30  ;;  %v5622_v57 = vld [vmem:[%s7522_s17 + $0x778] sm:$0xf0]  ;;  %v6882_v32 = vld [vmem:[%s7522_s17 + $0x52c] sm:$0xf] }
 0x1cb   : > { %4319 = vmatpush.bf16.msrb.mxu0 %v5305_v59  ;;  %4288 = vmatmul.bf16.vlgmr.msra.gmra.mxu1 %v7699_v15  ;;  %v5241_v59 = vor.u32 %v6858_v44, %v5238_v47  ;;  %v5625_v11 = vor.u32 %v6954_v27, %v5622_v57  ;;  %v5350_v58 = vld [vmem:[%s7522_s17 + $0x558] sm:$0xf0]  ;;  %v6846_v34 = vld [vmem:[%s7522_s17 + $0x40c] sm:$0xf] }
 0x1cc   : > { %4332 = vmatpush.bf16.msrb.mxu1 %v5433_v61  ;;  %4301 = vmatmul.bf16.vlgmr.msra.gmra.mxu2 %v7664_v54  ;;  %v6862_v54 = vld [vmem:[%s7522_s17 + $0x48c] sm:$0xf]  ;;  %v5369_v61 = vor.u32 %v6890_v1, %v5366_v31  ;;  %v5478_v29 = vld [vmem:[%s7522_s17 + $0x658] sm:$0xf0] }
 0x1cd   : > { %4345 = vmatpush.bf16.msrb.mxu2 %v5561_v4  ;;  %4314 = vmatmul.bf16.vlgmr.msra.gmra.mxu3 %v7697_v14  ;;  %v6926_v14 = vld [vmem:[%s7522_s17 + $0x68c] sm:$0xf]  ;;  %v5257_v15 = vor.u32 %v6862_v54, %v5254_v6  ;;  %v5497_v4 = vor.u32 %v6922_v55, %v5494_v56  ;;  %v5481_v25 = vor.u32 %v6918_v62, %v5478_v29  ;;  %v5206_v28 = vld [vmem:[%s7522_s17 + $0x438] sm:$0xf0] }
 0x1ce   : > { %4358 = vmatpush.bf16.msrb.mxu3 %v5689_v20  ;;  %v5513_v36 = vor.u32 %v6926_v14, %v5510_v37  ;;  %v5462_v54 = vld [vmem:[%s7522_s17 + $0x638] sm:$0xf0]  ;;  %v6946_v6 = vld [vmem:[%s7522_s17 + $0x72c] sm:$0xf] }
 0x1cf   : > { %4320 = vmatpush.bf16.msrb.mxu0 %v5289_v3  ;;  %v4094_v20 = vpop.f32.mrf.mxu2  ;;  %v4070_v19 = vpop.f32.mrf.mxu0  ;;  %v5590_v23 = vld [vmem:[%s7522_s17 + $0x738] sm:$0xf0]  ;;  %v6878_v41 = vld [vmem:[%s7522_s17 + $0x50c] sm:$0xf] }
 0x1d0   : > { %4333 = vmatpush.bf16.msrb.mxu1 %v5417_v63  ;;  %v4095_v12 = vadd.f32 %v4094_v20, %v4082_v46  ;;  %v4107_v3 = vpop.f32.mrf.mxu3  ;;  %v6950_v63 = vld [vmem:[%s7522_s17 + $0x74c] sm:$0xf]  ;;  %v4083_v30 = vpop.f32.mrf.mxu1  ;;  %v5190_v14 = vld [vmem:[%s7522_s17 + $0x418] sm:$0xf0] }
 0x1d1   : > { %4346 = vmatpush.bf16.msrb.mxu2 %v5545_v13  ;;  %v5606_v13 = vld [vmem:[%s7522_s17 + $0x758] sm:$0xf0]  ;;  %v6910_v9 = vld [vmem:[%s7522_s17 + $0x60c] sm:$0xf]  ;;  %v5193_v56 = vor.u32 %v6846_v34, %v5190_v14 }
 0x1d2   : > { %4359 = vmatpush.bf16.msrb.mxu3 %v5673_v22  ;;  %v8719_v16 = vadd.f32 %v4107_v3, %v4095_v12  ;;  %v5353_v22 = vor.u32 %v6886_v8, %v5350_v58  ;;  %v5446_v44 = vld [vmem:[%s7522_s17 + $0x618] sm:$0xf0]  ;;  %v6942_v47 = vld [vmem:[%s7522_s17 + $0x70c] sm:$0xf] }
 0x1d3   : > { %4321 = vmatpush.bf16.msrb.mxu0 %v5273_v33  ;;  %v5609_v33 = vor.u32 %v6950_v63, %v5606_v13  ;;  %v5574_v1 = vld [vmem:[%s7522_s17 + $0x718] sm:$0xf0]  ;;  %v7034_v55 = vld [vmem:[%s7522_s17 + $0x9ec] sm:$0xf] }
 0x1d4   : > { %4334 = vmatpush.bf16.msrb.mxu1 %v5401_v5  ;;  %v5334_v5 = vld [vmem:[%s7522_s17 + $0x538] sm:$0xf0]  ;;  %v7066_v27 = vld [vmem:[%s7522_s17 + $0xaec] sm:$0xf]  ;;  %v5577_v60 = vor.u32 %v6942_v47, %v5574_v1 }
 0x1d5   : > { %4347 = vmatpush.bf16.msrb.mxu2 %v5529_v38  ;;  %v6914_v38 = vld [vmem:[%s7522_s17 + $0x62c] sm:$0xf]  ;;  %v5337_v37 = vor.u32 %v6882_v32, %v5334_v5  ;;  %v5814_v31 = vld [vmem:[%s7522_s17 + $0x8f8] sm:$0xf0] }
 0x1d6   : > { %4360 = vmatpush.bf16.msrb.mxu3 %v5657_v7  ;;  %v5209_v7 = vor.u32 %v6850_v26, %v5206_v28  ;;  %v5465_v39 = vor.u32 %v6914_v38, %v5462_v54  ;;  %v5942_v46 = vld [vmem:[%s7522_s17 + $0x9f8] sm:$0xf0]  ;;  %v6998_v58 = vld [vmem:[%s7522_s17 + $0x8cc] sm:$0xf] }
 0x1d7   : > { %4322 = vmatpush.bf16.msrb.mxu0 %v5257_v15  ;;  %v5318_v15 = vld [vmem:[%s7522_s17 + $0x518] sm:$0xf0]  ;;  %v5945_v20 = vor.u32 %v7034_v55, %v5942_v46  ;;  %v7030_v29 = vld [vmem:[%s7522_s17 + $0x9cc] sm:$0xf] }
 0x1d8   : > { %4335 = vmatpush.bf16.msrb.mxu1 %v5385_v42  ;;  %v4096_v42 = vpop.f32.mrf.mxu2  ;;  %v4109_v48 = vpop.f32.mrf.mxu3  ;;  %v6070_v57 = vld [vmem:[%s7522_s17 + $0xaf8] sm:$0xf0]  ;;  %v7062_v63 = vld [vmem:[%s7522_s17 + $0xacc] sm:$0xf] }
 0x1d9   : > { %4348 = vmatpush.bf16.msrb.mxu2 %v5513_v36  ;;  %v5593_v36 = vor.u32 %v6946_v6, %v5590_v23  ;;  %v6198_v10 = vld [vmem:[%s7522_s17 + $0xbf8] sm:$0xf0]  ;;  %v6994_v28 = vld [vmem:[%s7522_s17 + $0x8ac] sm:$0xf] }
 0x1da   : > { %4361 = vmatpush.bf16.msrb.mxu3 %v5641_v52  ;;  %v7002_v52 = vld [vmem:[%s7522_s17 + $0x8ec] sm:$0xf]  ;;  %v5798_v62 = vld [vmem:[%s7522_s17 + $0x8d8] sm:$0xf0] }
 0x1db   : > { %4323 = vmatpush.bf16.msrb.mxu0 %v5241_v59  ;;  %v5321_v59 = vor.u32 %v6878_v41, %v5318_v15  ;;  %v5817_v8 = vor.u32 %v7002_v52, %v5814_v31  ;;  %v5926_v3 = vld [vmem:[%s7522_s17 + $0x9d8] sm:$0xf0]  ;;  %v7026_v30 = vld [vmem:[%s7522_s17 + $0x9ac] sm:$0xf] }
 0x1dc   : > { %4336 = vmatpush.bf16.msrb.mxu1 %v5369_v61  ;;  %v5449_v61 = vor.u32 %v6910_v9, %v5446_v44  ;;  %v6054_v13 = vld [vmem:[%s7522_s17 + $0xad8] sm:$0xf0]  ;;  %v7058_v38 = vld [vmem:[%s7522_s17 + $0xaac] sm:$0xf] }
 0x1dd   : > { %4349 = vmatpush.bf16.msrb.mxu2 %v5497_v4  ;;  %v7098_v4 = vld [vmem:[%s7522_s17 + $0xbec] sm:$0xf]  ;;  %v6182_v19 = vld [vmem:[%s7522_s17 + $0xbd8] sm:$0xf0]  ;;  %v6057_v26 = vor.u32 %v7062_v63, %v6054_v13 }
 0x1de   : > { %4362 = vmatpush.bf16.msrb.mxu3 %v5625_v11  ;;  %v6073_v11 = vor.u32 %v7066_v27, %v6070_v57  ;;  %v6201_v12 = vor.u32 %v7098_v4, %v6198_v10  ;;  %v5782_v32 = vld [vmem:[%s7522_s17 + $0x8b8] sm:$0xf0]  ;;  %v7090_v6 = vld [vmem:[%s7522_s17 + $0xbac] sm:$0xf] }
 0x1df   : > { %4324 = vmatpush.bf16.msrb.mxu0 %v5225_v51  ;;  %v7094_v51 = vld [vmem:[%s7522_s17 + $0xbcc] sm:$0xf]  ;;  %v5910_v5 = vld [vmem:[%s7522_s17 + $0x9b8] sm:$0xf0] }
 0x1e0   : > { %4337 = vmatpush.bf16.msrb.mxu1 %v5353_v22  ;;  %v5801_v22 = vor.u32 %v6998_v58, %v5798_v62  ;;  %v6038_v54 = vld [vmem:[%s7522_s17 + $0xab8] sm:$0xf0]  ;;  %v6990_v14 = vld [vmem:[%s7522_s17 + $0x88c] sm:$0xf] }
 0x1e1   : > { %4350 = vmatpush.bf16.msrb.mxu2 %v5481_v25  ;;  %v5929_v25 = vor.u32 %v7030_v29, %v5926_v3  ;;  %v6166_v23 = vld [vmem:[%s7522_s17 + $0xbb8] sm:$0xf0]  ;;  %v6041_v34 = vor.u32 %v7058_v38, %v6038_v54  ;;  %v7054_v41 = vld [vmem:[%s7522_s17 + $0xa8c] sm:$0xf] }
 0x1e2   : > { %4363 = vmatpush.bf16.msrb.mxu3 %v5609_v33  ;;  %v6185_v33 = vor.u32 %v7094_v51, %v6182_v19  ;;  %v6022_v15 = vld [vmem:[%s7522_s17 + $0xa98] sm:$0xf0]  ;;  %v7086_v9 = vld [vmem:[%s7522_s17 + $0xb8c] sm:$0xf] }
 0x1e3   : > { %4325 = vmatpush.bf16.msrb.mxu0 %v5209_v7  ;;  %v5785_v7 = vor.u32 %v6994_v28, %v5782_v32  ;;  %v6150_v42 = vld [vmem:[%s7522_s17 + $0xb98] sm:$0xf0]  ;;  %v6025_v47 = vor.u32 %v7054_v41, %v6022_v15  ;;  %v6986_v1 = vld [vmem:[%s7522_s17 + $0x86c] sm:$0xf] }
 0x1e4   : > { %4338 = vmatpush.bf16.msrb.mxu1 %v5337_v37  ;;  %v5766_v37 = vld [vmem:[%s7522_s17 + $0x898] sm:$0xf0]  ;;  %v7018_v52 = vld [vmem:[%s7522_s17 + $0x96c] sm:$0xf]  ;;  %v6153_v55 = vor.u32 %v7086_v9, %v6150_v42 }
 0x1e5   : > { %4351 = vmatpush.bf16.msrb.mxu2 %v5465_v39  ;;  %v5894_v39 = vld [vmem:[%s7522_s17 + $0x998] sm:$0xf0]  ;;  %v7050_v46 = vld [vmem:[%s7522_s17 + $0xa6c] sm:$0xf] }
 0x1e6   : > { %4364 = vmatpush.bf16.msrb.mxu3 %v5593_v36  ;;  %v5750_v48 = vld [vmem:[%s7522_s17 + $0x878] sm:$0xf0]  ;;  %v7082_v57 = vld [vmem:[%s7522_s17 + $0xb6c] sm:$0xf] }
 0x1e7   : > { %4326 = vmatpush.bf16.msrb.mxu0 %v5193_v56  ;;  %v8773_v36 = vpop.f32.mrf.mxu0  ;;  %v5878_v56 = vld [vmem:[%s7522_s17 + $0x978] sm:$0xf0]  ;;  %v7046_v29 = vld [vmem:[%s7522_s17 + $0xa4c] sm:$0xf] }
 0x1e8   : > { %4339 = vmatpush.bf16.msrb.mxu1 %v5321_v59  ;;  %v8778_v31 = vpop.f32.mrf.mxu1  ;;  %v6006_v27 = vld [vmem:[%s7522_s17 + $0xa78] sm:$0xf0]  ;;  %v5881_v4 = vor.u32 %v7018_v52, %v5878_v56  ;;  %v7078_v63 = vld [vmem:[%s7522_s17 + $0xb4c] sm:$0xf] }
 0x1e9   : > { %4352 = vmatpush.bf16.msrb.mxu2 %v5449_v61  ;;  %v6134_v59 = vld [vmem:[%s7522_s17 + $0xb78] sm:$0xf0]  ;;  %v5753_v61 = vor.u32 %v6986_v1, %v5750_v48  ;;  %v6009_v10 = vor.u32 %v7050_v46, %v6006_v27  ;;  %v7010_v32 = vld [vmem:[%s7522_s17 + $0x92c] sm:$0xf] }
 0x1ea   : > { %4365 = vmatpush.bf16.msrb.mxu3 %v5577_v60  ;;  %4327 = vmatmul.bf16.vlgmr.msrb.gmra.mxu0 %v7783_v35  ;;  %v7022_v35 = vld [vmem:[%s7522_s17 + $0x98c] sm:$0xf]  ;;  %v6137_v58 = vor.u32 %v7082_v57, %v6134_v59  ;;  %v5862_v62 = vld [vmem:[%s7522_s17 + $0x958] sm:$0xf0] }
 0x1eb   : > { %4371 = vmatpush.bf16.msra.mxu0 %v5817_v8  ;;  %4340 = vmatmul.bf16.vlgmr.msrb.gmra.mxu1 %v7793_v43  ;;  %v5769_v43 = vor.u32 %v6990_v14, %v5766_v37  ;;  %v5897_v44 = vor.u32 %v7022_v35, %v5894_v39  ;;  %v6982_v60 = vld [vmem:[%s7522_s17 + $0x84c] sm:$0xf]  ;;  %v5734_v8 = vld [vmem:[%s7522_s17 + $0x858] sm:$0xf0] }
 0x1ec   : > { %4384 = vmatpush.bf16.msra.mxu1 %v5945_v20  ;;  %4353 = vmatmul.bf16.vlgmr.msrb.gmra.mxu2 %v7775_v24  ;;  %v5913_v24 = vor.u32 %v7026_v30, %v5910_v5  ;;  %v7014_v20 = vld [vmem:[%s7522_s17 + $0x94c] sm:$0xf]  ;;  %v6118_v13 = vld [vmem:[%s7522_s17 + $0xb58] sm:$0xf0]  ;;  %v5737_v51 = vor.u32 %v6982_v60, %v5734_v8 }
 0x1ed   : > { %4397 = vmatpush.bf16.msra.mxu2 %v6073_v11  ;;  %4366 = vmatmul.bf16.vlgmr.msrb.gmra.mxu3 %v7789_v40  ;;  %v6169_v40 = vor.u32 %v7090_v6, %v6166_v23  ;;  %v5718_v28 = vld [vmem:[%s7522_s17 + $0x838] sm:$0xf0]  ;;  %v7042_v38 = vld [vmem:[%s7522_s17 + $0xa2c] sm:$0xf] }
 0x1ee   : > { %4410 = vmatpush.bf16.msra.mxu3 %v6201_v12  ;;  %v5990_v12 = vld [vmem:[%s7522_s17 + $0xa58] sm:$0xf0]  ;;  %v7074_v6 = vld [vmem:[%s7522_s17 + $0xb2c] sm:$0xf] }
 0x1ef   : > { %4372 = vmatpush.bf16.msra.mxu0 %v5801_v22  ;;  %v8788_v11 = vpop.f32.mrf.mxu2  ;;  %v4122_v19 = vpop.f32.mrf.mxu0  ;;  %v5865_v22 = vor.u32 %v7014_v20, %v5862_v62  ;;  %v5846_v5 = vld [vmem:[%s7522_s17 + $0x938] sm:$0xf0]  ;;  %v7006_v35 = vld [vmem:[%s7522_s17 + $0x90c] sm:$0xf] }
 0x1f0   : > { %4385 = vmatpush.bf16.msra.mxu1 %v5929_v25  ;;  %v8793_v3 = vpop.f32.mrf.mxu3  ;;  %v5993_v25 = vor.u32 %v7046_v29, %v5990_v12  ;;  %v4135_v30 = vpop.f32.mrf.mxu1  ;;  %v5974_v54 = vld [vmem:[%s7522_s17 + $0xa38] sm:$0xf0]  ;;  %v5849_v14 = vor.u32 %v7010_v32, %v5846_v5  ;;  %v7038_v39 = vld [vmem:[%s7522_s17 + $0xa0c] sm:$0xf] }
 0x1f1   : > { %4398 = vmatpush.bf16.msra.mxu2 %v6057_v26  ;;  %v6978_v26 = vld [vmem:[%s7522_s17 + $0x82c] sm:$0xf]  ;;  %v6102_v23 = vld [vmem:[%s7522_s17 + $0xb38] sm:$0xf0]  ;;  %v5977_v37 = vor.u32 %v7042_v38, %v5974_v54 }
 0x1f2   : > { %4411 = vmatpush.bf16.msra.mxu3 %v6185_v33  ;;  %v6121_v33 = vor.u32 %v7078_v63, %v6118_v13  ;;  %v6105_v15 = vor.u32 %v7074_v6, %v6102_v23  ;;  %v5958_v9 = vld [vmem:[%s7522_s17 + $0xa18] sm:$0xf0]  ;;  %v7070_v42 = vld [vmem:[%s7522_s17 + $0xb0c] sm:$0xf] }
 0x1f3   : > { %4373 = vmatpush.bf16.msra.mxu0 %v5785_v7  ;;  %v5721_v7 = vor.u32 %v6978_v26, %v5718_v28  ;;  %v6326_v1 = vld [vmem:[%s7522_s17 + $0xcf8] sm:$0xf0]  ;;  %v7162_v48 = vld [vmem:[%s7522_s17 + $0xdec] sm:$0xf]  ;;  %v5961_v57 = vor.u32 %v7038_v39, %v5958_v9 }
 0x1f4   : > { %4386 = vmatpush.bf16.msra.mxu1 %v5913_v24  ;;  %v6974_v24 = vld [vmem:[%s7522_s17 + $0x80c] sm:$0xf]  ;;  %v6582_v46 = vld [vmem:[%s7522_s17 + $0xef8] sm:$0xf0] }
 0x1f5   : > { %4399 = vmatpush.bf16.msra.mxu2 %v6041_v34  ;;  %v5702_v34 = vld [vmem:[%s7522_s17 + $0x818] sm:$0xf0]  ;;  %v7194_v56 = vld [vmem:[%s7522_s17 + $0xeec] sm:$0xf] }
 0x1f6   : > { %4412 = vmatpush.bf16.msra.mxu3 %v6169_v40  ;;  %v5830_v40 = vld [vmem:[%s7522_s17 + $0x918] sm:$0xf0]  ;;  %v5705_v52 = vor.u32 %v6974_v24, %v5702_v34  ;;  %v7226_v59 = vld [vmem:[%s7522_s17 + $0xfec] sm:$0xf]  ;;  %v6585_v8 = vor.u32 %v7194_v56, %v6582_v46 }
 0x1f7   : > { %4374 = vmatpush.bf16.msra.mxu0 %v5769_v43  ;;  %v4148_v41 = vpop.f32.mrf.mxu2  ;;  %v6086_v43 = vld [vmem:[%s7522_s17 + $0xb18] sm:$0xf0]  ;;  %v5833_v27 = vor.u32 %v7006_v35, %v5830_v40  ;;  %v7126_v20 = vld [vmem:[%s7522_s17 + $0xccc] sm:$0xf] }
 0x1f8   : > { %4387 = vmatpush.bf16.msra.mxu1 %v5897_v44  ;;  %v4161_v44 = vpop.f32.mrf.mxu3  ;;  %v7158_v62 = vld [vmem:[%s7522_s17 + $0xdcc] sm:$0xf]  ;;  %v6438_v12 = vld [vmem:[%s7522_s17 + $0xdd8] sm:$0xf0] }
 0x1f9   : > { %4400 = vmatpush.bf16.msra.mxu2 %v6025_v47  ;;  %v7130_v47 = vld [vmem:[%s7522_s17 + $0xcec] sm:$0xf]  ;;  %v6566_v13 = vld [vmem:[%s7522_s17 + $0xed8] sm:$0xf0] }
 0x1fa   : > { %4413 = vmatpush.bf16.msra.mxu3 %v6153_v55  ;;  %v6454_v55 = vld [vmem:[%s7522_s17 + $0xdf8] sm:$0xf0]  ;;  %v7190_v63 = vld [vmem:[%s7522_s17 + $0xecc] sm:$0xf] }
 0x1fb   : > { %4375 = vmatpush.bf16.msra.mxu0 %v5753_v61  ;;  %v6710_v61 = vld [vmem:[%s7522_s17 + $0xff8] sm:$0xf0]  ;;  %v6457_v60 = vor.u32 %v7162_v48, %v6454_v55  ;;  %v6569_v26 = vor.u32 %v7190_v63, %v6566_v13  ;;  %v7122_v28 = vld [vmem:[%s7522_s17 + $0xcac] sm:$0xf] }
 0x1fc   : > { %4388 = vmatpush.bf16.msra.mxu1 %v5881_v4  ;;  %v6089_v4 = vor.u32 %v7070_v42, %v6086_v43  ;;  %v6713_v29 = vor.u32 %v7226_v59, %v6710_v61  ;;  %v6694_v19 = vld [vmem:[%s7522_s17 + $0xfd8] sm:$0xf0]  ;;  %v7154_v30 = vld [vmem:[%s7522_s17 + $0xdac] sm:$0xf]  ;;  %v4121_v59 = vadd.f32 %v8773_v36, %v8719_v16 }
 0x1fd   : > { %4401 = vmatpush.bf16.msra.mxu2 %v6009_v10  ;;  %v6329_v10 = vor.u32 %v7130_v47, %v6326_v1  ;;  %v6294_v32 = vld [vmem:[%s7522_s17 + $0xcb8] sm:$0xf0]  ;;  %v7186_v38 = vld [vmem:[%s7522_s17 + $0xeac] sm:$0xf] }
 0x1fe   : > { %4414 = vmatpush.bf16.msra.mxu3 %v6137_v58  ;;  %v6310_v58 = vld [vmem:[%s7522_s17 + $0xcd8] sm:$0xf0]  ;;  %v7218_v6 = vld [vmem:[%s7522_s17 + $0xfac] sm:$0xf] }
 0x1ff   : > { %4376 = vmatpush.bf16.msra.mxu0 %v5737_v51  ;;  %v7222_v51 = vld [vmem:[%s7522_s17 + $0xfcc] sm:$0xf]  ;;  %v6422_v5 = vld [vmem:[%s7522_s17 + $0xdb8] sm:$0xf0] }
 0x200   : > { %4389 = vmatpush.bf16.msra.mxu1 %v5865_v22  ;;  %v6313_v22 = vor.u32 %v7126_v20, %v6310_v58  ;;  %v6550_v54 = vld [vmem:[%s7522_s17 + $0xeb8] sm:$0xf0]  ;;  %v7118_v34 = vld [vmem:[%s7522_s17 + $0xc8c] sm:$0xf] }
 0x201   : > { %4402 = vmatpush.bf16.msra.mxu2 %v5993_v25  ;;  %v6441_v25 = vor.u32 %v7158_v62, %v6438_v12  ;;  %v6678_v23 = vld [vmem:[%s7522_s17 + $0xfb8] sm:$0xf0]  ;;  %v6553_v24 = vor.u32 %v7186_v38, %v6550_v54  ;;  %v7182_v35 = vld [vmem:[%s7522_s17 + $0xe8c] sm:$0xf] }
 0x202   : > { %4415 = vmatpush.bf16.msra.mxu3 %v6121_v33  ;;  %v6697_v33 = vor.u32 %v7222_v51, %v6694_v19  ;;  %v6534_v40 = vld [vmem:[%s7522_s17 + $0xe98] sm:$0xf0]  ;;  %v7214_v39 = vld [vmem:[%s7522_s17 + $0xf8c] sm:$0xf] }
 0x203   : > { %4377 = vmatpush.bf16.msra.mxu0 %v5721_v7  ;;  %v6425_v7 = vor.u32 %v7154_v30, %v6422_v5  ;;  %v6662_v41 = vld [vmem:[%s7522_s17 + $0xf98] sm:$0xf0]  ;;  %v6537_v43 = vor.u32 %v7182_v35, %v6534_v40  ;;  %v7114_v44 = vld [vmem:[%s7522_s17 + $0xc6c] sm:$0xf] }
 0x204   : > { %4390 = vmatpush.bf16.msra.mxu1 %v5849_v14  ;;  %v6278_v14 = vld [vmem:[%s7522_s17 + $0xc98] sm:$0xf0]  ;;  %v7146_v1 = vld [vmem:[%s7522_s17 + $0xd6c] sm:$0xf]  ;;  %v6665_v48 = vor.u32 %v7214_v39, %v6662_v41 }
 0x205   : > { %4403 = vmatpush.bf16.msra.mxu2 %v5977_v37  ;;  %v6406_v37 = vld [vmem:[%s7522_s17 + $0xd98] sm:$0xf0]  ;;  %v7178_v55 = vld [vmem:[%s7522_s17 + $0xe6c] sm:$0xf] }
 0x206   : > { %4416 = vmatpush.bf16.msra.mxu3 %v6105_v15  ;;  %v6281_v15 = vor.u32 %v7118_v34, %v6278_v14  ;;  %v6262_v47 = vld [vmem:[%s7522_s17 + $0xc78] sm:$0xf0]  ;;  %v7210_v46 = vld [vmem:[%s7522_s17 + $0xf6c] sm:$0xf] }
 0x207   : > { %4378 = vmatpush.bf16.msra.mxu0 %v5705_v52  ;;  %v6390_v52 = vld [vmem:[%s7522_s17 + $0xd78] sm:$0xf0]  ;;  %v7206_v16 = vld [vmem:[%s7522_s17 + $0xf4c] sm:$0xf] }
 0x208   : > { %4391 = vmatpush.bf16.msra.mxu1 %v5833_v27  ;;  %v8851_v9 = vpop.f32.mrf.mxu1  ;;  %v6518_v56 = vld [vmem:[%s7522_s17 + $0xe78] sm:$0xf0]  ;;  %v6393_v61 = vor.u32 %v7146_v1, %v6390_v52  ;;  %v7138_v30 = vld [vmem:[%s7522_s17 + $0xd2c] sm:$0xf] }
 0x209   : > { %4404 = vmatpush.bf16.msra.mxu2 %v5961_v57  ;;  %v6646_v27 = vld [vmem:[%s7522_s17 + $0xf78] sm:$0xf0]  ;;  %v6265_v57 = vor.u32 %v7114_v44, %v6262_v47  ;;  %v7170_v38 = vld [vmem:[%s7522_s17 + $0xe2c] sm:$0xf] }
 0x20a   : > { %4417 = vmatpush.bf16.msra.mxu3 %v6089_v4  ;;  %4379 = vmatmul.bf16.vlgmr.msra.gmra.mxu0 %v7876_v45  ;;  %v6297_v45 = vor.u32 %v7122_v28, %v6294_v32  ;;  %v6521_v4 = vor.u32 %v7178_v55, %v6518_v56  ;;  %v6649_v20 = vor.u32 %v7210_v46, %v6646_v27  ;;  %v6374_v62 = vld [vmem:[%s7522_s17 + $0xd58] sm:$0xf0]  ;;  %v7106_v28 = vld [vmem:[%s7522_s17 + $0xc2c] sm:$0xf] }
 0x20b   : > { %4423 = vmatpush.bf16.msrb.mxu0 %v6329_v10  ;;  %4392 = vmatmul.bf16.vlgmr.msra.gmra.mxu1 %v7883_v50  ;;  %v6681_v50 = vor.u32 %v7218_v6, %v6678_v23  ;;  %v7110_v10 = vld [vmem:[%s7522_s17 + $0xc4c] sm:$0xf]  ;;  %v6502_v12 = vld [vmem:[%s7522_s17 + $0xe58] sm:$0xf0] }
 0x20c   : > { %4436 = vmatpush.bf16.msrb.mxu1 %v6457_v60  ;;  %4405 = vmatmul.bf16.vlgmr.msra.gmra.mxu2 %v7881_v49  ;;  %v7150_v49 = vld [vmem:[%s7522_s17 + $0xd8c] sm:$0xf]  ;;  %v6246_v60 = vld [vmem:[%s7522_s17 + $0xc58] sm:$0xf0] }
 0x20d   : > { %4449 = vmatpush.bf16.msrb.mxu2 %v6585_v8  ;;  %4418 = vmatmul.bf16.vlgmr.msra.gmra.mxu3 %v7887_v53  ;;  %v8847_v53 = vpop.f32.mrf.mxu0  ;;  %v6409_v42 = vor.u32 %v7150_v49, %v6406_v37  ;;  %v7142_v8 = vld [vmem:[%s7522_s17 + $0xd4c] sm:$0xf]  ;;  %v6630_v36 = vld [vmem:[%s7522_s17 + $0xf58] sm:$0xf0]  ;;  %v6249_v51 = vor.u32 %v7110_v10, %v6246_v60 }
 0x20e   : > { %4462 = vmatpush.bf16.msrb.mxu3 %v6713_v29  ;;  %v7174_v29 = vld [vmem:[%s7522_s17 + $0xe4c] sm:$0xf]  ;;  %v6230_v32 = vld [vmem:[%s7522_s17 + $0xc38] sm:$0xf0] }
 0x20f   : > { %4424 = vmatpush.bf16.msrb.mxu0 %v6313_v22  ;;  %v8866_v58 = vpop.f32.mrf.mxu2  ;;  %v4134_v22 = vadd.f32 %v8778_v31, %v4121_v59  ;;  %v6358_v5 = vld [vmem:[%s7522_s17 + $0xd38] sm:$0xf0]  ;;  %v7202_v6 = vld [vmem:[%s7522_s17 + $0xf2c] sm:$0xf]  ;;  %v6233_v23 = vor.u32 %v7106_v28, %v6230_v32 }
 0x210   : > { %4437 = vmatpush.bf16.msrb.mxu1 %v6441_v25  ;;  %v4211_v63 = vpop.f32.mrf.mxu3  ;;  %v4187_v19 = vpop.f32.mrf.mxu1  ;;  %v6377_v25 = vor.u32 %v7142_v8, %v6374_v62  ;;  %v6486_v54 = vld [vmem:[%s7522_s17 + $0xe38] sm:$0xf0]  ;;  %v7102_v34 = vld [vmem:[%s7522_s17 + $0xc0c] sm:$0xf] }
 0x211   : > { %4450 = vmatpush.bf16.msrb.mxu2 %v6569_v26  ;;  %v6505_v26 = vor.u32 %v7174_v29, %v6502_v12  ;;  %v6614_v31 = vld [vmem:[%s7522_s17 + $0xf38] sm:$0xf0]  ;;  %v7134_v49 = vld [vmem:[%s7522_s17 + $0xd0c] sm:$0xf] }
 0x212   : > { %4463 = vmatpush.bf16.msrb.mxu3 %v6697_v33  ;;  %v6633_v33 = vor.u32 %v7206_v16, %v6630_v36  ;;  %v6214_v14 = vld [vmem:[%s7522_s17 + $0xc18] sm:$0xf0]  ;;  %v7166_v35 = vld [vmem:[%s7522_s17 + $0xe0c] sm:$0xf] }
 0x213   : > { %4425 = vmatpush.bf16.msrb.mxu0 %v6297_v45  ;;  %v4147_v45 = vadd.f32 %v8788_v11, %v4134_v22  ;;  %v6342_v37 = vld [vmem:[%s7522_s17 + $0xd18] sm:$0xf0]  ;;  %v7198_v41 = vld [vmem:[%s7522_s17 + $0xf0c] sm:$0xf] }
 0x214   : > { %4438 = vmatpush.bf16.msrb.mxu1 %v6425_v7  ;;  %v6361_v7 = vor.u32 %v7138_v30, %v6358_v5  ;;  %v6470_v40 = vld [vmem:[%s7522_s17 + $0xe18] sm:$0xf0]  ;;  %v6345_v44 = vor.u32 %v7134_v49, %v6342_v37 }
 0x215   : > { %4451 = vmatpush.bf16.msrb.mxu2 %v6553_v24  ;;  %v4174_v13 = vpop.f32.mrf.mxu0  ;;  %v6489_v24 = vor.u32 %v7170_v38, %v6486_v54  ;;  %v4160_v11 = vadd.f32 %v8793_v3, %v4147_v45  ;;  %v6473_v47 = vor.u32 %v7166_v35, %v6470_v40 }
 0x216   : > { %4464 = vmatpush.bf16.msrb.mxu3 %v6681_v50  ;;  %v6617_v50 = vor.u32 %v7202_v6, %v6614_v31 }
 0x217   : > { %4426 = vmatpush.bf16.msrb.mxu0 %v6281_v15  ;;  %v4200_v39 = vpop.f32.mrf.mxu2  ;;  %v6598_v15 = vld [vmem:[%s7522_s17 + $0xf18] sm:$0xf0] }
 0x218   : > { %4439 = vmatpush.bf16.msrb.mxu1 %v6409_v42  ;;  %v4213_v42 = vpop.f32.mrf.mxu3  ;;  %v6601_v1 = vor.u32 %v7198_v41, %v6598_v15 }
 0x219   : > { %4452 = vmatpush.bf16.msrb.mxu2 %v6537_v43  ;;  %v6217_v43 = vor.u32 %v7102_v34, %v6214_v14 }
 0x21a   : > { %4465 = vmatpush.bf16.msrb.mxu3 %v6665_v48  ;;  %v4173_v48 = vadd.f32 %v8847_v53, %v4160_v11  ;;  %v7293_v11 = vld [vmem:[%s7528_s26] sm:$0xf] }
 0x21b   : > { %4427 = vmatpush.bf16.msrb.mxu0 %v6265_v57 }
 0x21c   : > { %4440 = vmatpush.bf16.msrb.mxu1 %v6393_v61  ;;  %v4186_v52 = vadd.f32 %v8851_v9, %v4173_v48  ;;  %v4494_v9 = vperm.slane %v8645_v0, 2 }
 0x21d   : > { %4453 = vmatpush.bf16.msrb.mxu2 %v6521_v4 }
 0x21e   : > { %4466 = vmatpush.bf16.msrb.mxu3 %v6649_v20  ;;  %v4199_v3 = vadd.f32 %v8866_v58, %v4186_v52 }
 0x21f   : > { %4428 = vmatpush.bf16.msrb.mxu0 %v6249_v51 }
 0x220   : > { %4441 = vmatpush.bf16.msrb.mxu1 %v6377_v25  ;;  %v4212_v55 = vadd.f32 %v4211_v63, %v4199_v3 }
 0x221   : > { %4454 = vmatpush.bf16.msrb.mxu2 %v6505_v26 }
 0x222   : > { %4467 = vmatpush.bf16.msrb.mxu3 %v6633_v33 }
 0x223   : > { %4429 = vmatpush.bf16.msrb.mxu0 %v6233_v23 }
 0x224   : > { %4442 = vmatpush.bf16.msrb.mxu1 %v6361_v7 }
 0x225   : > { %4455 = vmatpush.bf16.msrb.mxu2 %v6489_v24 }
 0x226   : > { %4468 = vmatpush.bf16.msrb.mxu3 %v6617_v50 }
 0x227   : > { %4430 = vmatpush.bf16.msrb.mxu0 %v6217_v43  ;;  %v4224_v56 = vpop.f32.mrf.mxu0 }
 0x228   : > { %4443 = vmatpush.bf16.msrb.mxu1 %v6345_v44  ;;  %v4237_v53 = vpop.f32.mrf.mxu1  ;;  %v4225_v46 = vadd.f32 %v4224_v56, %v4212_v55  ;;  %v4495_v44 = vperm.slane %v7293_v11, 3 }
 0x229   : > { %4456 = vmatpush.bf16.msrb.mxu2 %v6473_v47 }
 0x22a   : > { %4469 = vmatpush.bf16.msrb.mxu3 %v6601_v1  ;;  %4431 = vmatmul.bf16.vlgmr.msrb.gmra.mxu0 %v7969_v2  ;;  %v4238_v27 = vadd.f32 %v4237_v53, %v4225_v46 }
 0x22b   : > { %4444 = vmatmul.bf16.vlgmr.msrb.gmra.mxu1 %v7976_v18 }
 0x22c   : > { %4457 = vmatmul.bf16.vlgmr.msrb.gmra.mxu2 %v7974_v17 }
 0x22d   : > { %4470 = vmatmul.bf16.vlgmr.msrb.gmra.mxu3 %v7980_v21 }
 0x22f   : > { %v4250_v57 = vpop.f32.mrf.mxu2  ;;  %v4226_v2 = vpop.f32.mrf.mxu0 }
 0x230   : > { %v4251_v59 = vadd.f32 %v4250_v57, %v4238_v27  ;;  %v4263_v61 = vpop.f32.mrf.mxu3  ;;  %v4239_v4 = vpop.f32.mrf.mxu1 }
 0x232   : > { %v4264_v18 = vadd.f32 %v4263_v61, %v4251_v59 }
 0x234   : > { %v4502_v10 = vadd.f32 %v4494_v9, %v4264_v18 }
 0x236   : > { %4506 = vst [vmem:[%s8347_s14 + $0x10] sm:$0xff] %v4502_v10 }
 0x237   : > { %v4252_v17 = vpop.f32.mrf.mxu2 }
 0x238   : > { %v4265_v60 = vpop.f32.mrf.mxu3 }
 0x247   : > { %v4276_v8 = vpop.f32.mrf.mxu0 }
 0x248   : > { %v4289_v20 = vpop.f32.mrf.mxu1 }
 0x249   : > { %v4290_v21 = vadd.f32 %v4289_v20, %v4276_v8 }
 0x24f   : > { %v4302_v58 = vpop.f32.mrf.mxu2  ;;  %v4278_v63 = vpop.f32.mrf.mxu0 }
 0x250   : > { %v4303_v62 = vadd.f32 %v4302_v58, %v4290_v21  ;;  %v4315_v29 = vpop.f32.mrf.mxu3  ;;  %v4291_v16 = vpop.f32.mrf.mxu1 }
 0x252   : > { %v4316_v12 = vadd.f32 %v4315_v29, %v4303_v62 }
 0x257   : > { %v4304_v36 = vpop.f32.mrf.mxu2 }
 0x258   : > { %v4317_v13 = vpop.f32.mrf.mxu3 }
 0x267   : > { %v4328_v51 = vpop.f32.mrf.mxu0 }
 0x268   : > { %v4341_v0 = vpop.f32.mrf.mxu1  ;;  %v4329_v5 = vadd.f32 %v4328_v51, %v4316_v12 }
 0x26a   : > { %v4342_v31 = vadd.f32 %v4341_v0, %v4329_v5 }
 0x26f   : > { %v4354_v19 = vpop.f32.mrf.mxu2  ;;  %v4330_v25 = vpop.f32.mrf.mxu0 }
 0x270   : > { %v4367_v22 = vpop.f32.mrf.mxu3  ;;  %v4343_v26 = vpop.f32.mrf.mxu1  ;;  %v4355_v45 = vadd.f32 %v4354_v19, %v4342_v31 }
 0x272   : > { %v4368_v34 = vadd.f32 %v4367_v22, %v4355_v45 }
 0x277   : > { %v4356_v28 = vpop.f32.mrf.mxu2 }
 0x278   : > { %v4369_v32 = vpop.f32.mrf.mxu3 }
 0x287   : > { %v4380_v30 = vpop.f32.mrf.mxu0 }
 0x288   : > { %v4393_v33 = vpop.f32.mrf.mxu1  ;;  %v4381_v14 = vadd.f32 %v4380_v30, %v4368_v34 }
 0x28a   : > { %v4394_v49 = vadd.f32 %v4393_v33, %v4381_v14 }
 0x28f   : > { %v4406_v38 = vpop.f32.mrf.mxu2  ;;  %v4382_v6 = vpop.f32.mrf.mxu0 }
 0x290   : > { %v4419_v54 = vpop.f32.mrf.mxu3  ;;  %v4395_v23 = vpop.f32.mrf.mxu1  ;;  %v4407_v50 = vadd.f32 %v4406_v38, %v4394_v49 }
 0x292   : > { %v4420_v37 = vadd.f32 %v4419_v54, %v4407_v50 }
 0x297   : > { %v4408_v7 = vpop.f32.mrf.mxu2 }
 0x298   : > { %v4421_v24 = vpop.f32.mrf.mxu3 }
 0x2a7   : > { %v4432_v35 = vpop.f32.mrf.mxu0 }
 0x2a8   : > { %v4445_v40 = vpop.f32.mrf.mxu1  ;;  %v4433_v39 = vadd.f32 %v4432_v35, %v4420_v37 }
 0x2aa   : > { %v4446_v41 = vadd.f32 %v4445_v40, %v4433_v39 }
 0x2af   : > { %v4458_v15 = vpop.f32.mrf.mxu2  ;;  %v4434_v47 = vpop.f32.mrf.mxu0 }
 0x2b0   : > { %v4459_v42 = vadd.f32 %v4458_v15, %v4446_v41  ;;  %v4471_v43 = vpop.f32.mrf.mxu3  ;;  %v4447_v1 = vpop.f32.mrf.mxu1 }
 0x2b2   : > { %v4472_v48 = vadd.f32 %v4471_v43, %v4459_v42 }
 0x2b4   : > { %v4503_v52 = vadd.f32 %v4495_v44, %v4472_v48 }
 0x2b6   : > { %4507 = vst [vmem:[%s8347_s14 + $0x18] sm:$0xff] %v4503_v52 }
 0x2b7   : > { %v4460_v3 = vpop.f32.mrf.mxu2 }
 0x2b8   : > { %v4473_v55 = vpop.f32.mrf.mxu3 }
 0x2b9 PF: > { %s21_s23 = sadd.s32 1, %s7408_s23   ;;  %s8931_s18 = smov %s7392_s19 }
 0x2ba   : > { %p18_p0 = scmp.ge.s32.totalorder %s21_s23, 4   ;;  %s8932_s19 = smov %s7396_s20 }
 0x2bb   : > { %s8933_s20 = smov %s7492_s30  ;;  %s8934_s21 = smov %s7404_s22 }
 0x2bc   : > { %s8935_s22 = smov %s8937_s25  ;;  %20 = sbr.rel (!%p18_p0) target bundleno = 6 (0x6), region = 110 }
 0x2c1   :  { %4530 = vsyncpa [#allocation4], 1 }
 0x2c2   :  { %4532 = vsyncpa [#allocation4 + $0x1], 1 }
 0x2c3   :  { %4533 = vsyncpa [#allocation6], 1 }
 0x2c4   :  { %4535 = vsyncpa [#allocation6 + $0x1], 1 }

</bundles_post_ra>
